<compile_context>
chip_gen: v6e
topology: v6e:2x2x1
jax: 0.10.0
libtpu: 0.0.40
codegen_flags: <defaults>
</compile_context>

<pallas_src>
import math
from functools import partial

import jax
import jax.numpy as jnp
from jax.experimental import pallas as pl
from jax.experimental.pallas import tpu as pltpu


# --------------------------------------------------------------------------
# In-kernel matmul helpers (MXU, bf16 operands, f32 accumulation)
# --------------------------------------------------------------------------

def _mm(a, b):
    """(M, K) @ (K, N) -> (M, N)."""
    return jax.lax.dot_general(a, b, (((1,), (0,)), ((), ())),
                               preferred_element_type=jnp.float32)


def _mm_nt(a, b):
    """(M, K) x (N, K) -> (M, N) — rhs transposed, handled by the MXU."""
    return jax.lax.dot_general(a, b, (((1,), (1,)), ((), ())),
                               preferred_element_type=jnp.float32)


def _mm_tn(a, b):
    """(K, M) x (K, N) -> (M, N) — lhs transposed, handled by the MXU."""
    return jax.lax.dot_general(a, b, (((0,), (0,)), ((), ())),
                               preferred_element_type=jnp.float32)


# --------------------------------------------------------------------------
# Fused RefOnlyNoisedUNet kernel: 'w' pass + 'r' pass, one grid step per batch
# --------------------------------------------------------------------------

def _fused_refunet_kernel(scales_ref,                                   # SMEM (B, 2)
                          cond_ref, noise_ref, x_ref, enc_ref, bias_ref,
                          w_in_t_ref, wkv1_t_ref,
                          w_qkv1_t_ref, w_o1_t_ref, b_o1_ref,
                          w_q2_t_ref, w_kv2_t_ref, w_o2_t_ref, b_o2_ref,
                          w_out_t_ref, b_out_ref,
                          out_ref, *, d_model, n_enc_valid):
    D = d_model
    bf16 = jnp.bfloat16
    b = pl.program_id(0)

    bias = bias_ref[0]                                   # (D, 1) f32 = b_in + temb[b]

    # ---- 'w' pass: build the ReferenceOnly attn1 K/V (VMEM-local only) -----
    # EulerAncestral add_noise + scale_model_input as a per-batch scalar fma.
    inv = scales_ref[b, 0]
    inv_sigma = scales_ref[b, 1]
    cond_noisy = inv * cond_ref[0] + inv_sigma * noise_ref[0]            # (C, S) f32
    h_w = _mm(w_in_t_ref[...], cond_noisy.astype(bf16)) + bias           # (D, S) f32
    kv_r = _mm(wkv1_t_ref[...], h_w.astype(bf16))                        # (2D, S) f32
    kr = kv_r[:D].astype(bf16)
    vr = kv_r[D:].astype(bf16)

    # ---- 'r' pass: conv_in (1x1) + timestep-embedding bias -----------------
    h = _mm(w_in_t_ref[...], x_ref[0].astype(bf16)) + bias               # (D, S) f32

    # ---- attn1: ReferenceOnly 'r' mode, KV = [self tokens ; reference] -----
    # TODO(synk): single-head attention; AttnProcessor2_0 multi-head split omitted.
    qkv = _mm(w_qkv1_t_ref[...], h.astype(bf16))                         # (3D, S) f32
    q = qkv[:D].astype(bf16)
    ks = qkv[D:2 * D].astype(bf16)
    vs = qkv[2 * D:].astype(bf16)
    s_self = _mm_tn(q, ks)                                               # (S, S) f32
    s_ref = _mm_tn(q, kr)                                                # (S, S) f32
    # Joint softmax over [self ; ref] without materializing the (S, 2S) concat.
    m1 = jnp.maximum(jnp.max(s_self, axis=-1, keepdims=True),
                     jnp.max(s_ref, axis=-1, keepdims=True))             # (S, 1)
    p_self = jnp.exp(s_self - m1)
    p_ref = jnp.exp(s_ref - m1)
    denom = (jnp.sum(p_self, axis=-1, keepdims=True)
             + jnp.sum(p_ref, axis=-1, keepdims=True))
    rinv = pl.reciprocal(denom, approx=True)                             # EUP
    o1 = (_mm_nt(vs, (p_self * rinv).astype(bf16))
          + _mm_nt(vr, (p_ref * rinv).astype(bf16)))                     # (D, S) f32
    h = h + _mm(w_o1_t_ref[...], o1.astype(bf16)) + b_o1_ref[...]

    # ---- attn2: cross-attention on padded encoder_hidden_states ------------
    q2 = _mm(w_q2_t_ref[...], h.astype(bf16)).astype(bf16)               # (D, S)
    kv2 = _mm_nt(w_kv2_t_ref[...], enc_ref[0])                           # (2D, Lpad) f32
    k2 = kv2[:D].astype(bf16)
    v2 = kv2[D:].astype(bf16)
    s2 = _mm_tn(q2, k2)                                                  # (S, Lpad) f32
    l_pad = s2.shape[-1]
    if n_enc_valid < l_pad:                                              # mask pad lanes
        valid = jax.lax.broadcasted_iota(jnp.int32, (1, l_pad), 1) < n_enc_valid
        s2 = jnp.where(valid, s2, jnp.float32(-1e30))
    m2 = jnp.max(s2, axis=-1, keepdims=True)
    p2 = jnp.exp(s2 - m2)
    p2 = p2 * pl.reciprocal(jnp.sum(p2, axis=-1, keepdims=True), approx=True)
    o2 = _mm_nt(v2, p2.astype(bf16))                                     # (D, S) f32
    h = h + _mm(w_o2_t_ref[...], o2.astype(bf16)) + b_o2_ref[...]

    # ---- conv_out: channels-major (C, S) lane-dense write ------------------
    out_ref[0] = _mm(w_out_t_ref[...], h.astype(bf16)) + b_out_ref[...]


# --------------------------------------------------------------------------
# pallas_call wrapper
# --------------------------------------------------------------------------

def _rep_spec(arr):
    """Whole-array block, replicated across the batch grid (weights/biases)."""
    zeros = (0,) * arr.ndim
    return pl.BlockSpec(arr.shape, lambda b, s, _z=zeros: _z)


def fused_block_pass(scales, cond_cs, noise_cs, x_cs, enc_pad, bias_b, fused,
                     n_enc_valid):
    B, C, S = x_cs.shape
    D = fused["b_in"].shape[0]
    Lpad, E = enc_pad.shape[1], enc_pad.shape[2]

    weights = [fused["w_in_t"], fused["wkv1_t"],
               fused["w_qkv1_t"], fused["w_o1_t"], fused["b_o1"],
               fused["w_q2_t"], fused["w_kv2_t"], fused["w_o2_t"], fused["b_o2"],
               fused["w_out_t"], fused["b_out"]]

    lat_spec = pl.BlockSpec((1, C, S), lambda b, s: (b, 0, 0))
    grid_spec = pltpu.PrefetchScalarGridSpec(
        num_scalar_prefetch=1,
        grid=(B,),
        in_specs=[lat_spec, lat_spec, lat_spec,
                  pl.BlockSpec((1, Lpad, E), lambda b, s: (b, 0, 0)),
                  pl.BlockSpec((1, D, 1), lambda b, s: (b, 0, 0))]
                 + [_rep_spec(w) for w in weights],
        out_specs=pl.BlockSpec((1, C, S), lambda b, s: (b, 0, 0)),
    )
    return pl.pallas_call(
        partial(_fused_refunet_kernel, d_model=D, n_enc_valid=n_enc_valid),
        out_shape=jax.ShapeDtypeStruct((B, C, S), jnp.float32),
        grid_spec=grid_spec,
        compiler_params=pltpu.CompilerParams(
            dimension_semantics=("parallel",),
            vmem_limit_bytes=48 * 1024 * 1024),
    )(scales, cond_cs, noise_cs, x_cs, enc_pad, bias_b, *weights)


# --------------------------------------------------------------------------
# Synthetic UNet parameters (same structure/values as the reference version)
# --------------------------------------------------------------------------

ATTN1_NAME = "mid_block.attentions.0.transformer_blocks.0.attn1.processor"


def timestep_embedding(t, dim):
    half = dim // 2
    freqs = jnp.exp(-math.log(10000.0) * jnp.arange(half, dtype=jnp.float32) / half)
    args = t.astype(jnp.float32)[:, None] * freqs[None, :]
    return jnp.concatenate([jnp.cos(args), jnp.sin(args)], axis=-1)


def make_params(key, in_ch, d_model, cross_dim):
    keys = jax.random.split(key, 12)
    w = lambda k, shape: 0.05 * jax.random.normal(k, shape, jnp.float32)
    z = lambda n: jnp.zeros((n,), jnp.float32)
    return dict(
        w_in=w(keys[0], (in_ch, d_model)), b_in=z(d_model),
        w_temb=w(keys[1], (d_model, d_model)), b_temb=z(d_model),
        a1_wq=w(keys[2], (d_model, d_model)),
        a1_wk=w(keys[3], (d_model, d_model)),
        a1_wv=w(keys[4], (d_model, d_model)),
        a1_wo=w(keys[5], (d_model, d_model)), a1_bo=z(d_model),
        a2_wq=w(keys[6], (d_model, d_model)),
        a2_wk=w(keys[7], (cross_dim, d_model)),
        a2_wv=w(keys[8], (cross_dim, d_model)),
        a2_wo=w(keys[9], (d_model, d_model)), a2_bo=z(d_model),
        w_out=w(keys[10], (d_model, in_ch)), b_out=z(in_ch),
    )


def fuse_params(p):
    """Pre-transpose / concatenate weights once (fused QKV / KV projections,
    MXU-friendly orientations), fold the 1/sqrt(D) scale into the query
    weights, and cast all matmul weight slabs to bf16.  Biases stay f32 (added
    after f32 accumulation)."""
    D = p["w_in"].shape[1]
    C = p["w_out"].shape[1]
    scale = 1.0 / math.sqrt(D)
    bf = lambda x: x.astype(jnp.bfloat16)
    return dict(
        w_in_t=bf(p["w_in"].T),                                         # (D, C)
        b_in=p["b_in"].reshape(D, 1),                                   # fused w/ temb on host
        w_temb=p["w_temb"], b_temb=p["b_temb"],
        wkv1_t=bf(jnp.concatenate([p["a1_wk"].T, p["a1_wv"].T], axis=0)),        # (2D, D)
        w_qkv1_t=bf(jnp.concatenate([scale * p["a1_wq"].T, p["a1_wk"].T,
                                     p["a1_wv"].T], axis=0)),                    # (3D, D)
        w_o1_t=bf(p["a1_wo"].T), b_o1=p["a1_bo"].reshape(D, 1),
        w_q2_t=bf(scale * p["a2_wq"].T),
        w_kv2_t=bf(jnp.concatenate([p["a2_wk"].T, p["a2_wv"].T], axis=0)),       # (2D, E)
        w_o2_t=bf(p["a2_wo"].T), b_o2=p["a2_bo"].reshape(D, 1),
        w_out_t=bf(p["w_out"].T),                                        # (C, D)
        b_out=p["b_out"].reshape(C, 1),
    )


def _pad_encoder(enc):
    """Pad the encoder token axis to a lane-dense length and cast to bf16."""
    L = enc.shape[1]
    Lpad = max(128, ((L + 127) // 128) * 128)
    if Lpad != L:
        enc = jnp.pad(enc, ((0, 0), (0, Lpad - L), (0, 0)))
    return enc.astype(jnp.bfloat16), L


# --------------------------------------------------------------------------
# RefOnlyNoisedUNet forward (one jit, ONE pallas_call)
# --------------------------------------------------------------------------

@partial(jax.jit, static_argnames=("is_cfg_guidance",))
def ref_only_noised_unet_forward(fused, alphas_cumprod, sample, timestep,
                                 encoder_hidden_states, cond_lat, noise_key,
                                 noisy_cond_lat=None, is_cfg_guidance=False):
    # is_cfg_guidance only sliced encoder_hidden_states/class_labels for the
    # discarded tail of the 'w' pass in this synthetic UNet — no effect here.
    del is_cfg_guidance
    B, C, H, W = sample.shape
    S = H * W
    D = fused["b_in"].shape[0]

    # Timestep embedding (tiny host-side XLA op), folded with b_in into a
    # single per-batch feature-major bias (B, D, 1) used by both passes.
    temb = timestep_embedding(timestep, D)
    temb = jnp.dot(temb, fused["w_temb"]) + fused["b_temb"]              # (B, D)
    bias_b = fused["b_in"][None, :, :] + temb[:, :, None]                # (B, D, 1)

    # torch.randn_like(cond_lat) -> deterministic JAX noise.
    noise = jax.random.normal(noise_key, cond_lat.shape, cond_lat.dtype)

    if noisy_cond_lat is None:
        # EulerAncestral eval path, fully traced, PER-SAMPLE sigma:
        #   add_noise:          x + sigma * noise
        #   scale_model_input:  x / sqrt(sigma^2 + 1)
        # Folded into two per-batch scalars consumed in-kernel from SMEM.
        t = jnp.broadcast_to(jnp.reshape(timestep, (-1,)).astype(jnp.int32), (B,))
        acp = alphas_cumprod[t]
        sigma = jnp.sqrt((1.0 - acp) / acp)
        inv = jax.lax.rsqrt(sigma * sigma + 1.0)
        scales = jnp.stack([inv, inv * sigma], axis=-1).astype(jnp.float32)  # (B, 2)
        cond_cs = cond_lat.reshape(B, C, S)
        noise_cs = noise.reshape(B, C, S)
    else:
        # TODO(synk): statically specialize to drop the aliased noise operand.
        cond_cs = noisy_cond_lat.reshape(B, C, S)
        noise_cs = cond_cs                         # aliased; multiplied by 0 in-kernel
        scales = jnp.concatenate([jnp.ones((B, 1), jnp.float32),
                                  jnp.zeros((B, 1), jnp.float32)], axis=1)

    enc_pad, n_valid = _pad_encoder(encoder_hidden_states)

    out_cs = fused_block_pass(scales, cond_cs, noise_cs, sample.reshape(B, C, S),
                              enc_pad, bias_b, fused, n_valid)
    return out_cs.reshape(B, C, H, W)


class RefOnlyNoisedUNetPallas:
    """Pallas port of RefOnlyNoisedUNet around a synthetic single-block UNet."""

    def __init__(self, params, alphas_cumprod):
        self.params = params
        self.fused = fuse_params(params)
        self.alphas_cumprod = alphas_cumprod  # schedule shared by both scheds

    def __call__(self, sample, timestep, encoder_hidden_states, *,
                 cross_attention_kwargs, noise_key, class_labels=None,
                 down_block_res_samples=None, mid_block_res_sample=None):
        # TODO(synk): down_block/mid_block additional-residual injection and the
        # is_cfg_guidance per-batch split of ReferenceOnlyAttnProc 'r' mode are
        # not modeled (inputs are None / False here).
        del class_labels, down_block_res_samples, mid_block_res_sample
        return ref_only_noised_unet_forward(
            self.fused, self.alphas_cumprod, sample, timestep,
            encoder_hidden_states, cross_attention_kwargs["cond_lat"], noise_key,
            noisy_cond_lat=cross_attention_kwargs.get("noisy_cond_lat", None),
            is_cfg_guidance=bool(cross_attention_kwargs.get("is_cfg_guidance", False)))


# --------------------------------------------------------------------------

if __name__ == "__main__":
    key = jax.random.PRNGKey(0)
    k_sample, k_cond, k_enc, k_noise, k_params = jax.random.split(key, 5)

    B, C, H, W = 2, 4, 16, 16     # latent NCHW
    D = 32                        # model hidden dim
    L, E = 8, 32                  # encoder_hidden_states: seq, embed dim

    sample = jax.random.normal(k_sample, (B, C, H, W), jnp.float32)
    cond_lat = jax.random.normal(k_cond, (B, C, H, W), jnp.float32)
    encoder_hidden_states = jax.random.normal(k_enc, (B, L, E), jnp.float32)
    timestep = jnp.full((B,), 10, dtype=jnp.int32)

    # DDPM scaled-linear beta schedule -> alphas_cumprod (shared by both scheds)
    betas = jnp.linspace(0.00085 ** 0.5, 0.012 ** 0.5, 1000, dtype=jnp.float32) ** 2
    alphas_cumprod = jnp.cumprod(1.0 - betas)

    params = make_params(k_params, C, D, E)
    model = RefOnlyNoisedUNetPallas(params, alphas_cumprod)

    out = model(sample, timestep, encoder_hidden_states,
                cross_attention_kwargs=dict(cond_lat=cond_lat),
                noise_key=k_noise)
    out = jax.block_until_ready(out)
    assert out.shape == (B, C, H, W) and out.dtype == jnp.float32
    assert bool(jnp.all(jnp.isfinite(out)))
    print("KERNEL_OK")
</pallas_src>

<mosaic_0001>
module attributes {stable_mosaic.version = 11 : i64} {
  func.func @_fused_refunet_kernel(%arg0: i32, %arg1: memref<2x2xf32, #tpu.memory_space<smem>>, %arg2: memref<1x4x256xf32, #tpu.memory_space<vmem>>, %arg3: memref<1x4x256xf32, #tpu.memory_space<vmem>>, %arg4: memref<1x4x256xf32, #tpu.memory_space<vmem>>, %arg5: memref<1x128x32xbf16, #tpu.memory_space<vmem>>, %arg6: memref<1x32x1xf32, #tpu.memory_space<vmem>>, %arg7: memref<32x4xbf16, #tpu.memory_space<vmem>>, %arg8: memref<64x32xbf16, #tpu.memory_space<vmem>>, %arg9: memref<96x32xbf16, #tpu.memory_space<vmem>>, %arg10: memref<32x32xbf16, #tpu.memory_space<vmem>>, %arg11: memref<32x1xf32, #tpu.memory_space<vmem>>, %arg12: memref<32x32xbf16, #tpu.memory_space<vmem>>, %arg13: memref<64x32xbf16, #tpu.memory_space<vmem>>, %arg14: memref<32x32xbf16, #tpu.memory_space<vmem>>, %arg15: memref<32x1xf32, #tpu.memory_space<vmem>>, %arg16: memref<4x32xbf16, #tpu.memory_space<vmem>>, %arg17: memref<4x1xf32, #tpu.memory_space<vmem>>, %arg18: memref<1x4x256xf32, #tpu.memory_space<vmem>>) attributes {dimension_semantics = [#tpu.dimension_semantics<parallel>], iteration_bounds = array<i64: 2>, scalar_prefetch = 1 : i64, scratch_operands = 0 : i64, tpu.core_type = #tpu.core_type<tc>, window_params = [{transform_indices = @transform_0, window_bounds = array<i64: 1, 4, 256>}, {transform_indices = @transform_1, window_bounds = array<i64: 1, 4, 256>}, {transform_indices = @transform_2, window_bounds = array<i64: 1, 4, 256>}, {transform_indices = @transform_3, window_bounds = array<i64: 1, 128, 32>}, {transform_indices = @transform_4, window_bounds = array<i64: 1, 32, 1>}, {pipeline_mode = #tpu.pipeline_mode<synchronous>, transform_indices = @transform_5, window_bounds = array<i64: 32, 4>}, {pipeline_mode = #tpu.pipeline_mode<synchronous>, transform_indices = @transform_6, window_bounds = array<i64: 64, 32>}, {pipeline_mode = #tpu.pipeline_mode<synchronous>, transform_indices = @transform_7, window_bounds = array<i64: 96, 32>}, {pipeline_mode = #tpu.pipeline_mode<synchronous>, transform_indices = @transform_8, window_bounds = array<i64: 32, 32>}, {pipeline_mode = #tpu.pipeline_mode<synchronous>, transform_indices = @transform_9, window_bounds = array<i64: 32, 1>}, {pipeline_mode = #tpu.pipeline_mode<synchronous>, transform_indices = @transform_10, window_bounds = array<i64: 32, 32>}, {pipeline_mode = #tpu.pipeline_mode<synchronous>, transform_indices = @transform_11, window_bounds = array<i64: 64, 32>}, {pipeline_mode = #tpu.pipeline_mode<synchronous>, transform_indices = @transform_12, window_bounds = array<i64: 32, 32>}, {pipeline_mode = #tpu.pipeline_mode<synchronous>, transform_indices = @transform_13, window_bounds = array<i64: 32, 1>}, {pipeline_mode = #tpu.pipeline_mode<synchronous>, transform_indices = @transform_14, window_bounds = array<i64: 4, 32>}, {pipeline_mode = #tpu.pipeline_mode<synchronous>, transform_indices = @transform_15, window_bounds = array<i64: 4, 1>}, {transform_indices = @transform_16, window_bounds = array<i64: 1, 4, 256>}]} {
    %c0 = arith.constant 0 : index
    %c0_0 = arith.constant 0 : index
    %c0_1 = arith.constant 0 : index
    %0 = vector.load %arg6[%c0, %c0_0, %c0_1] : memref<1x32x1xf32, #tpu.memory_space<vmem>>, vector<1x32x1xf32>
    %1 = vector.shape_cast %0 : vector<1x32x1xf32> to vector<32x1xf32>
    %2 = arith.index_cast %arg0 : i32 to index
    %c0_2 = arith.constant 0 : index
    %3 = memref.load %arg1[%2, %c0_2] : memref<2x2xf32, #tpu.memory_space<smem>>
    %4 = arith.index_cast %arg0 : i32 to index
    %c1 = arith.constant 1 : index
    %5 = memref.load %arg1[%4, %c1] : memref<2x2xf32, #tpu.memory_space<smem>>
    %c0_3 = arith.constant 0 : index
    %c0_4 = arith.constant 0 : index
    %c0_5 = arith.constant 0 : index
    %6 = vector.load %arg2[%c0_3, %c0_4, %c0_5] : memref<1x4x256xf32, #tpu.memory_space<vmem>>, vector<1x4x256xf32>
    %7 = vector.shape_cast %6 : vector<1x4x256xf32> to vector<4x256xf32>
    %8 = vector.broadcast %3 : f32 to vector<4x256xf32>
    %9 = arith.mulf %8, %7 : vector<4x256xf32>
    %c0_6 = arith.constant 0 : index
    %c0_7 = arith.constant 0 : index
    %c0_8 = arith.constant 0 : index
    %10 = vector.load %arg3[%c0_6, %c0_7, %c0_8] : memref<1x4x256xf32, #tpu.memory_space<vmem>>, vector<1x4x256xf32>
    %11 = vector.shape_cast %10 : vector<1x4x256xf32> to vector<4x256xf32>
    %12 = vector.broadcast %5 : f32 to vector<4x256xf32>
    %13 = arith.mulf %12, %11 : vector<4x256xf32>
    %14 = arith.addf %9, %13 : vector<4x256xf32>
    %c0_9 = arith.constant 0 : index
    %c0_10 = arith.constant 0 : index
    %15 = vector.load %arg7[%c0_9, %c0_10] : memref<32x4xbf16, #tpu.memory_space<vmem>>, vector<32x4xbf16>
    %16 = arith.truncf %14 : vector<4x256xf32> to vector<4x256xbf16>
    %cst = arith.constant dense<0.000000e+00> : vector<32x256xf32>
    %17 = tpu.matmul %15, %16, %cst {dimension_numbers = #tpu.dot_dimension_numbers<[1], [0], [0], [1], [0, 0, 1, 1], [], []>} : vector<32x4xbf16>, vector<4x256xbf16>, vector<32x256xf32> -> vector<32x256xf32>
    %18 = vector.broadcast %1 : vector<32x1xf32> to vector<32x256xf32>
    %19 = arith.addf %17, %18 : vector<32x256xf32>
    %c0_11 = arith.constant 0 : index
    %c0_12 = arith.constant 0 : index
    %20 = vector.load %arg8[%c0_11, %c0_12] : memref<64x32xbf16, #tpu.memory_space<vmem>>, vector<64x32xbf16>
    %21 = arith.truncf %19 : vector<32x256xf32> to vector<32x256xbf16>
    %cst_13 = arith.constant dense<0.000000e+00> : vector<64x256xf32>
    %22 = tpu.matmul %20, %21, %cst_13 {dimension_numbers = #tpu.dot_dimension_numbers<[1], [0], [0], [1], [0, 0, 1, 1], [], []>} : vector<64x32xbf16>, vector<32x256xbf16>, vector<64x256xf32> -> vector<64x256xf32>
    %23 = vector.extract_strided_slice %22 {offsets = [0, 0], sizes = [32, 256], strides = [1, 1]} : vector<64x256xf32> to vector<32x256xf32>
    %24 = arith.truncf %23 : vector<32x256xf32> to vector<32x256xbf16>
    %25 = vector.extract_strided_slice %22 {offsets = [32, 0], sizes = [32, 256], strides = [1, 1]} : vector<64x256xf32> to vector<32x256xf32>
    %26 = arith.truncf %25 : vector<32x256xf32> to vector<32x256xbf16>
    %c0_14 = arith.constant 0 : index
    %c0_15 = arith.constant 0 : index
    %27 = vector.load %arg7[%c0_14, %c0_15] : memref<32x4xbf16, #tpu.memory_space<vmem>>, vector<32x4xbf16>
    %c0_16 = arith.constant 0 : index
    %c0_17 = arith.constant 0 : index
    %c0_18 = arith.constant 0 : index
    %28 = vector.load %arg4[%c0_16, %c0_17, %c0_18] : memref<1x4x256xf32, #tpu.memory_space<vmem>>, vector<1x4x256xf32>
    %29 = vector.shape_cast %28 : vector<1x4x256xf32> to vector<4x256xf32>
    %30 = arith.truncf %29 : vector<4x256xf32> to vector<4x256xbf16>
    %cst_19 = arith.constant dense<0.000000e+00> : vector<32x256xf32>
    %31 = tpu.matmul %27, %30, %cst_19 {dimension_numbers = #tpu.dot_dimension_numbers<[1], [0], [0], [1], [0, 0, 1, 1], [], []>} : vector<32x4xbf16>, vector<4x256xbf16>, vector<32x256xf32> -> vector<32x256xf32>
    %32 = vector.broadcast %1 : vector<32x1xf32> to vector<32x256xf32>
    %33 = arith.addf %31, %32 : vector<32x256xf32>
    %c0_20 = arith.constant 0 : index
    %c0_21 = arith.constant 0 : index
    %34 = vector.load %arg9[%c0_20, %c0_21] : memref<96x32xbf16, #tpu.memory_space<vmem>>, vector<96x32xbf16>
    %35 = arith.truncf %33 : vector<32x256xf32> to vector<32x256xbf16>
    %cst_22 = arith.constant dense<0.000000e+00> : vector<96x256xf32>
    %36 = tpu.matmul %34, %35, %cst_22 {dimension_numbers = #tpu.dot_dimension_numbers<[1], [0], [0], [1], [0, 0, 1, 1], [], []>} : vector<96x32xbf16>, vector<32x256xbf16>, vector<96x256xf32> -> vector<96x256xf32>
    %37 = vector.extract_strided_slice %36 {offsets = [0, 0], sizes = [32, 256], strides = [1, 1]} : vector<96x256xf32> to vector<32x256xf32>
    %38 = arith.truncf %37 : vector<32x256xf32> to vector<32x256xbf16>
    %39 = vector.extract_strided_slice %36 {offsets = [32, 0], sizes = [32, 256], strides = [1, 1]} : vector<96x256xf32> to vector<32x256xf32>
    %40 = arith.truncf %39 : vector<32x256xf32> to vector<32x256xbf16>
    %41 = vector.extract_strided_slice %36 {offsets = [64, 0], sizes = [32, 256], strides = [1, 1]} : vector<96x256xf32> to vector<32x256xf32>
    %42 = arith.truncf %41 : vector<32x256xf32> to vector<32x256xbf16>
    %cst_23 = arith.constant dense<0.000000e+00> : vector<256x256xf32>
    %43 = tpu.matmul %38, %40, %cst_23 {dimension_numbers = #tpu.dot_dimension_numbers<[0], [0], [1], [1], [0, 1, 1, 1], [], []>} : vector<32x256xbf16>, vector<32x256xbf16>, vector<256x256xf32> -> vector<256x256xf32>
    %cst_24 = arith.constant dense<0.000000e+00> : vector<256x256xf32>
    %44 = tpu.matmul %38, %24, %cst_24 {dimension_numbers = #tpu.dot_dimension_numbers<[0], [0], [1], [1], [0, 1, 1, 1], [], []>} : vector<32x256xbf16>, vector<32x256xbf16>, vector<256x256xf32> -> vector<256x256xf32>
    %cst_25 = arith.constant dense<0xFF800000> : vector<256xf32>
    %45 = vector.multi_reduction <maximumf>, %43, %cst_25 [1] : vector<256x256xf32> to vector<256xf32>
    %46 = vector.shape_cast %45 : vector<256xf32> to vector<256x1xf32>
    %cst_26 = arith.constant dense<0xFF800000> : vector<256xf32>
    %47 = vector.multi_reduction <maximumf>, %44, %cst_26 [1] : vector<256x256xf32> to vector<256xf32>
    %48 = vector.shape_cast %47 : vector<256xf32> to vector<256x1xf32>
    %49 = arith.maximumf %46, %48 : vector<256x1xf32>
    %50 = vector.broadcast %49 : vector<256x1xf32> to vector<256x256xf32>
    %51 = arith.subf %43, %50 : vector<256x256xf32>
    %52 = math.exp %51 : vector<256x256xf32>
    %53 = vector.broadcast %49 : vector<256x1xf32> to vector<256x256xf32>
    %54 = arith.subf %44, %53 : vector<256x256xf32>
    %55 = math.exp %54 : vector<256x256xf32>
    %cst_27 = arith.constant dense<0.000000e+00> : vector<256xf32>
    %56 = vector.multi_reduction <add>, %52, %cst_27 [1] : vector<256x256xf32> to vector<256xf32>
    %57 = vector.shape_cast %56 : vector<256xf32> to vector<256x1xf32>
    %cst_28 = arith.constant dense<0.000000e+00> : vector<256xf32>
    %58 = vector.multi_reduction <add>, %55, %cst_28 [1] : vector<256x256xf32> to vector<256xf32>
    %59 = vector.shape_cast %58 : vector<256xf32> to vector<256x1xf32>
    %60 = arith.addf %57, %59 : vector<256x1xf32>
    %61 = tpu.reciprocal %60 {approx = true} : vector<256x1xf32> -> vector<256x1xf32>
    %62 = vector.broadcast %61 : vector<256x1xf32> to vector<256x256xf32>
    %63 = arith.mulf %52, %62 : vector<256x256xf32>
    %64 = arith.truncf %63 : vector<256x256xf32> to vector<256x256xbf16>
    %cst_29 = arith.constant dense<0.000000e+00> : vector<32x256xf32>
    %65 = tpu.matmul %42, %64, %cst_29 {dimension_numbers = #tpu.dot_dimension_numbers<[1], [1], [0], [0], [0, 0, 1, 0], [], []>} : vector<32x256xbf16>, vector<256x256xbf16>, vector<32x256xf32> -> vector<32x256xf32>
    %66 = vector.broadcast %61 : vector<256x1xf32> to vector<256x256xf32>
    %67 = arith.mulf %55, %66 : vector<256x256xf32>
    %68 = arith.truncf %67 : vector<256x256xf32> to vector<256x256xbf16>
    %cst_30 = arith.constant dense<0.000000e+00> : vector<32x256xf32>
    %69 = tpu.matmul %26, %68, %cst_30 {dimension_numbers = #tpu.dot_dimension_numbers<[1], [1], [0], [0], [0, 0, 1, 0], [], []>} : vector<32x256xbf16>, vector<256x256xbf16>, vector<32x256xf32> -> vector<32x256xf32>
    %70 = arith.addf %65, %69 : vector<32x256xf32>
    %c0_31 = arith.constant 0 : index
    %c0_32 = arith.constant 0 : index
    %71 = vector.load %arg10[%c0_31, %c0_32] : memref<32x32xbf16, #tpu.memory_space<vmem>>, vector<32x32xbf16>
    %72 = arith.truncf %70 : vector<32x256xf32> to vector<32x256xbf16>
    %cst_33 = arith.constant dense<0.000000e+00> : vector<32x256xf32>
    %73 = tpu.matmul %71, %72, %cst_33 {dimension_numbers = #tpu.dot_dimension_numbers<[1], [0], [0], [1], [0, 0, 1, 1], [], []>} : vector<32x32xbf16>, vector<32x256xbf16>, vector<32x256xf32> -> vector<32x256xf32>
    %74 = arith.addf %33, %73 : vector<32x256xf32>
    %c0_34 = arith.constant 0 : index
    %c0_35 = arith.constant 0 : index
    %75 = vector.load %arg11[%c0_34, %c0_35] : memref<32x1xf32, #tpu.memory_space<vmem>>, vector<32x1xf32>
    %76 = vector.broadcast %75 : vector<32x1xf32> to vector<32x256xf32>
    %77 = arith.addf %74, %76 : vector<32x256xf32>
    %c0_36 = arith.constant 0 : index
    %c0_37 = arith.constant 0 : index
    %78 = vector.load %arg12[%c0_36, %c0_37] : memref<32x32xbf16, #tpu.memory_space<vmem>>, vector<32x32xbf16>
    %79 = arith.truncf %77 : vector<32x256xf32> to vector<32x256xbf16>
    %cst_38 = arith.constant dense<0.000000e+00> : vector<32x256xf32>
    %80 = tpu.matmul %78, %79, %cst_38 {dimension_numbers = #tpu.dot_dimension_numbers<[1], [0], [0], [1], [0, 0, 1, 1], [], []>} : vector<32x32xbf16>, vector<32x256xbf16>, vector<32x256xf32> -> vector<32x256xf32>
    %81 = arith.truncf %80 : vector<32x256xf32> to vector<32x256xbf16>
    %c0_39 = arith.constant 0 : index
    %c0_40 = arith.constant 0 : index
    %82 = vector.load %arg13[%c0_39, %c0_40] : memref<64x32xbf16, #tpu.memory_space<vmem>>, vector<64x32xbf16>
    %c0_41 = arith.constant 0 : index
    %c0_42 = arith.constant 0 : index
    %c0_43 = arith.constant 0 : index
    %83 = vector.load %arg5[%c0_41, %c0_42, %c0_43] : memref<1x128x32xbf16, #tpu.memory_space<vmem>>, vector<1x128x32xbf16>
    %84 = vector.shape_cast %83 : vector<1x128x32xbf16> to vector<128x32xbf16>
    %cst_44 = arith.constant dense<0.000000e+00> : vector<64x128xf32>
    %85 = tpu.matmul %82, %84, %cst_44 {dimension_numbers = #tpu.dot_dimension_numbers<[1], [1], [0], [0], [0, 0, 1, 0], [], []>} : vector<64x32xbf16>, vector<128x32xbf16>, vector<64x128xf32> -> vector<64x128xf32>
    %86 = vector.extract_strided_slice %85 {offsets = [0, 0], sizes = [32, 128], strides = [1, 1]} : vector<64x128xf32> to vector<32x128xf32>
    %87 = arith.truncf %86 : vector<32x128xf32> to vector<32x128xbf16>
    %88 = vector.extract_strided_slice %85 {offsets = [32, 0], sizes = [32, 128], strides = [1, 1]} : vector<64x128xf32> to vector<32x128xf32>
    %89 = arith.truncf %88 : vector<32x128xf32> to vector<32x128xbf16>
    %cst_45 = arith.constant dense<0.000000e+00> : vector<256x128xf32>
    %90 = tpu.matmul %81, %87, %cst_45 {dimension_numbers = #tpu.dot_dimension_numbers<[0], [0], [1], [1], [0, 1, 1, 1], [], []>} : vector<32x256xbf16>, vector<32x128xbf16>, vector<256x128xf32> -> vector<256x128xf32>
    %91 = tpu.iota {dimensions = array<i32: 1>} : vector<1x128xi32>
    %c8_i32 = arith.constant 8 : i32
    %92 = vector.broadcast %c8_i32 : i32 to vector<1x128xi32>
    %93 = arith.cmpi slt, %91, %92 : vector<1x128xi32>
    %cst_46 = arith.constant -1.000000e+30 : f32
    %94 = vector.shape_cast %93 : vector<1x128xi1> to vector<1x128xi1>
    %95 = vector.broadcast %94 : vector<1x128xi1> to vector<256x128xi1>
    %96 = vector.broadcast %cst_46 : f32 to vector<256x128xf32>
    %97 = arith.select %95, %90, %96 : vector<256x128xi1>, vector<256x128xf32>
    %cst_47 = arith.constant dense<0xFF800000> : vector<256xf32>
    %98 = vector.multi_reduction <maximumf>, %97, %cst_47 [1] : vector<256x128xf32> to vector<256xf32>
    %99 = vector.shape_cast %98 : vector<256xf32> to vector<256x1xf32>
    %100 = vector.broadcast %99 : vector<256x1xf32> to vector<256x128xf32>
    %101 = arith.subf %97, %100 : vector<256x128xf32>
    %102 = math.exp %101 : vector<256x128xf32>
    %cst_48 = arith.constant dense<0.000000e+00> : vector<256xf32>
    %103 = vector.multi_reduction <add>, %102, %cst_48 [1] : vector<256x128xf32> to vector<256xf32>
    %104 = vector.shape_cast %103 : vector<256xf32> to vector<256x1xf32>
    %105 = tpu.reciprocal %104 {approx = true} : vector<256x1xf32> -> vector<256x1xf32>
    %106 = vector.broadcast %105 : vector<256x1xf32> to vector<256x128xf32>
    %107 = arith.mulf %102, %106 : vector<256x128xf32>
    %108 = arith.truncf %107 : vector<256x128xf32> to vector<256x128xbf16>
    %cst_49 = arith.constant dense<0.000000e+00> : vector<32x256xf32>
    %109 = tpu.matmul %89, %108, %cst_49 {dimension_numbers = #tpu.dot_dimension_numbers<[1], [1], [0], [0], [0, 0, 1, 0], [], []>} : vector<32x128xbf16>, vector<256x128xbf16>, vector<32x256xf32> -> vector<32x256xf32>
    %c0_50 = arith.constant 0 : index
    %c0_51 = arith.constant 0 : index
    %110 = vector.load %arg14[%c0_50, %c0_51] : memref<32x32xbf16, #tpu.memory_space<vmem>>, vector<32x32xbf16>
    %111 = arith.truncf %109 : vector<32x256xf32> to vector<32x256xbf16>
    %cst_52 = arith.constant dense<0.000000e+00> : vector<32x256xf32>
    %112 = tpu.matmul %110, %111, %cst_52 {dimension_numbers = #tpu.dot_dimension_numbers<[1], [0], [0], [1], [0, 0, 1, 1], [], []>} : vector<32x32xbf16>, vector<32x256xbf16>, vector<32x256xf32> -> vector<32x256xf32>
    %113 = arith.addf %77, %112 : vector<32x256xf32>
    %c0_53 = arith.constant 0 : index
    %c0_54 = arith.constant 0 : index
    %114 = vector.load %arg15[%c0_53, %c0_54] : memref<32x1xf32, #tpu.memory_space<vmem>>, vector<32x1xf32>
    %115 = vector.broadcast %114 : vector<32x1xf32> to vector<32x256xf32>
    %116 = arith.addf %113, %115 : vector<32x256xf32>
    %c0_55 = arith.constant 0 : index
    %c0_56 = arith.constant 0 : index
    %117 = vector.load %arg16[%c0_55, %c0_56] : memref<4x32xbf16, #tpu.memory_space<vmem>>, vector<4x32xbf16>
    %118 = arith.truncf %116 : vector<32x256xf32> to vector<32x256xbf16>
    %cst_57 = arith.constant dense<0.000000e+00> : vector<4x256xf32>
    %119 = tpu.matmul %117, %118, %cst_57 {dimension_numbers = #tpu.dot_dimension_numbers<[1], [0], [0], [1], [0, 0, 1, 1], [], []>} : vector<4x32xbf16>, vector<32x256xbf16>, vector<4x256xf32> -> vector<4x256xf32>
    %c0_58 = arith.constant 0 : index
    %c0_59 = arith.constant 0 : index
    %120 = vector.load %arg17[%c0_58, %c0_59] : memref<4x1xf32, #tpu.memory_space<vmem>>, vector<4x1xf32>
    %121 = vector.broadcast %120 : vector<4x1xf32> to vector<4x256xf32>
    %122 = arith.addf %119, %121 : vector<4x256xf32>
    %c0_60 = arith.constant 0 : index
    %c0_61 = arith.constant 0 : index
    %c0_62 = arith.constant 0 : index
    %123 = vector.load %arg18[%c0_60, %c0_61, %c0_62] : memref<1x4x256xf32, #tpu.memory_space<vmem>>, vector<1x4x256xf32>
    %124 = vector.shape_cast %123 : vector<1x4x256xf32> to vector<4x256xf32>
    %125 = vector.shape_cast %122 : vector<4x256xf32> to vector<1x4x256xf32>
    tpu.vector_store %arg18[%c0_60, %c0_61, %c0_62], %125 {strides = array<i32>} : memref<1x4x256xf32, #tpu.memory_space<vmem>>, vector<1x4x256xf32>,
    return
  }
  func.func @transform_0(%arg0: i32, %arg1: memref<2x2xf32, #tpu.memory_space<smem>>) -> (i32, i32, i32) {
    %c0_i32 = arith.constant 0 : i32
    %c0_i32_0 = arith.constant 0 : i32
    %c0_i32_1 = arith.constant 0 : i32
    return %arg0, %c0_i32, %c0_i32_0 : i32, i32, i32
  }
  func.func @transform_1(%arg0: i32, %arg1: memref<2x2xf32, #tpu.memory_space<smem>>) -> (i32, i32, i32) {
    %c0_i32 = arith.constant 0 : i32
    %c0_i32_0 = arith.constant 0 : i32
    %c0_i32_1 = arith.constant 0 : i32
    return %arg0, %c0_i32, %c0_i32_0 : i32, i32, i32
  }
  func.func @transform_2(%arg0: i32, %arg1: memref<2x2xf32, #tpu.memory_space<smem>>) -> (i32, i32, i32) {
    %c0_i32 = arith.constant 0 : i32
    %c0_i32_0 = arith.constant 0 : i32
    %c0_i32_1 = arith.constant 0 : i32
    return %arg0, %c0_i32, %c0_i32_0 : i32, i32, i32
  }
  func.func @transform_3(%arg0: i32, %arg1: memref<2x2xf32, #tpu.memory_space<smem>>) -> (i32, i32, i32) {
    %c0_i32 = arith.constant 0 : i32
    %c0_i32_0 = arith.constant 0 : i32
    %c0_i32_1 = arith.constant 0 : i32
    return %arg0, %c0_i32, %c0_i32_0 : i32, i32, i32
  }
  func.func @transform_4(%arg0: i32, %arg1: memref<2x2xf32, #tpu.memory_space<smem>>) -> (i32, i32, i32) {
    %c0_i32 = arith.constant 0 : i32
    %c0_i32_0 = arith.constant 0 : i32
    %c0_i32_1 = arith.constant 0 : i32
    return %arg0, %c0_i32, %c0_i32_0 : i32, i32, i32
  }
  func.func @transform_5(%arg0: i32, %arg1: memref<2x2xf32, #tpu.memory_space<smem>>) -> (i32, i32) {
    %c0_i32 = arith.constant 0 : i32
    %c0_i32_0 = arith.constant 0 : i32
    %c0_i32_1 = arith.constant 0 : i32
    return %c0_i32, %c0_i32_0 : i32, i32
  }
  func.func @transform_6(%arg0: i32, %arg1: memref<2x2xf32, #tpu.memory_space<smem>>) -> (i32, i32) {
    %c0_i32 = arith.constant 0 : i32
    %c0_i32_0 = arith.constant 0 : i32
    %c0_i32_1 = arith.constant 0 : i32
    return %c0_i32, %c0_i32_0 : i32, i32
  }
  func.func @transform_7(%arg0: i32, %arg1: memref<2x2xf32, #tpu.memory_space<smem>>) -> (i32, i32) {
    %c0_i32 = arith.constant 0 : i32
    %c0_i32_0 = arith.constant 0 : i32
    %c0_i32_1 = arith.constant 0 : i32
    return %c0_i32, %c0_i32_0 : i32, i32
  }
  func.func @transform_8(%arg0: i32, %arg1: memref<2x2xf32, #tpu.memory_space<smem>>) -> (i32, i32) {
    %c0_i32 = arith.constant 0 : i32
    %c0_i32_0 = arith.constant 0 : i32
    %c0_i32_1 = arith.constant 0 : i32
    return %c0_i32, %c0_i32_0 : i32, i32
  }
  func.func @transform_9(%arg0: i32, %arg1: memref<2x2xf32, #tpu.memory_space<smem>>) -> (i32, i32) {
    %c0_i32 = arith.constant 0 : i32
    %c0_i32_0 = arith.constant 0 : i32
    %c0_i32_1 = arith.constant 0 : i32
    return %c0_i32, %c0_i32_0 : i32, i32
  }
  func.func @transform_10(%arg0: i32, %arg1: memref<2x2xf32, #tpu.memory_space<smem>>) -> (i32, i32) {
    %c0_i32 = arith.constant 0 : i32
    %c0_i32_0 = arith.constant 0 : i32
    %c0_i32_1 = arith.constant 0 : i32
    return %c0_i32, %c0_i32_0 : i32, i32
  }
  func.func @transform_11(%arg0: i32, %arg1: memref<2x2xf32, #tpu.memory_space<smem>>) -> (i32, i32) {
    %c0_i32 = arith.constant 0 : i32
    %c0_i32_0 = arith.constant 0 : i32
    %c0_i32_1 = arith.constant 0 : i32
    return %c0_i32, %c0_i32_0 : i32, i32
  }
  func.func @transform_12(%arg0: i32, %arg1: memref<2x2xf32, #tpu.memory_space<smem>>) -> (i32, i32) {
    %c0_i32 = arith.constant 0 : i32
    %c0_i32_0 = arith.constant 0 : i32
    %c0_i32_1 = arith.constant 0 : i32
    return %c0_i32, %c0_i32_0 : i32, i32
  }
  func.func @transform_13(%arg0: i32, %arg1: memref<2x2xf32, #tpu.memory_space<smem>>) -> (i32, i32) {
    %c0_i32 = arith.constant 0 : i32
    %c0_i32_0 = arith.constant 0 : i32
    %c0_i32_1 = arith.constant 0 : i32
    return %c0_i32, %c0_i32_0 : i32, i32
  }
  func.func @transform_14(%arg0: i32, %arg1: memref<2x2xf32, #tpu.memory_space<smem>>) -> (i32, i32) {
    %c0_i32 = arith.constant 0 : i32
    %c0_i32_0 = arith.constant 0 : i32
    %c0_i32_1 = arith.constant 0 : i32
    return %c0_i32, %c0_i32_0 : i32, i32
  }
  func.func @transform_15(%arg0: i32, %arg1: memref<2x2xf32, #tpu.memory_space<smem>>) -> (i32, i32) {
    %c0_i32 = arith.constant 0 : i32
    %c0_i32_0 = arith.constant 0 : i32
    %c0_i32_1 = arith.constant 0 : i32
    return %c0_i32, %c0_i32_0 : i32, i32
  }
  func.func @transform_16(%arg0: i32, %arg1: memref<2x2xf32, #tpu.memory_space<smem>>) -> (i32, i32, i32) {
    %c0_i32 = arith.constant 0 : i32
    %c0_i32_0 = arith.constant 0 : i32
    %c0_i32_1 = arith.constant 0 : i32
    return %arg0, %c0_i32, %c0_i32_0 : i32, i32, i32
  }
}

</mosaic_0001>

<bundles_post_ra>
// kernel: ref_only_noised_unet_forward.1
= control target key start
LH: loop header
LB: loop body
LE: loop exit
PB: predicated region body
PF: predicated region fallthrough
CT: control target
= control target key end

     0   :  { %s6903_s0 = inlined_call_operand.vmem [shape: f32[2,2], index: 0, kind: input, shape index: {}]   ;;  %s6904_s1 = inlined_call_operand.vmem [shape: f32[2,4,256], index: 1, kind: input, shape index: {}]   ;;  %s6905_s2 = inlined_call_operand.vmem [shape: f32[2,4,256], index: 2, kind: input, shape index: {}]   ;;  %s6906_s3 = inlined_call_operand.vmem [shape: f32[2,4,256], index: 3, kind: input, shape index: {}]   ;;  %s6907_s4 = inlined_call_operand.vmem [shape: bf16[2,128,32], index: 4, kind: input, shape index: {}]   ;;  %s6908_s5 = inlined_call_operand.vmem [shape: f32[2,32,1], index: 5, kind: input, shape index: {}]   ;;  %s6909_s6 = inlined_call_operand.vmem [shape: bf16[32,4], index: 6, kind: input, shape index: {}]   ;;  %s6910_s7 = inlined_call_operand.vmem [shape: bf16[64,32], index: 7, kind: input, shape index: {}]   ;;  %s6911_s8 = inlined_call_operand.vmem [shape: bf16[96,32], index: 8, kind: input, shape index: {}]   ;;  %s6912_s9 = inlined_call_operand.vmem [shape: bf16[32,32], index: 9, kind: input, shape index: {}]   ;;  %s6913_s10 = inlined_call_operand.vmem [shape: f32[32,1], index: 10, kind: input, shape index: {}]   ;;  %s6914_s11 = inlined_call_operand.vmem [shape: bf16[32,32], index: 11, kind: input, shape index: {}]   ;;  %s6915_s12 = inlined_call_operand.vmem [shape: bf16[64,32], index: 12, kind: input, shape index: {}]   ;;  %s6916_s13 = inlined_call_operand.vmem [shape: bf16[32,32], index: 13, kind: input, shape index: {}]   ;;  %s6917_s14 = inlined_call_operand.vmem [shape: f32[32,1], index: 14, kind: input, shape index: {}]   ;;  %s6918_s15 = inlined_call_operand.vmem [shape: bf16[4,32], index: 15, kind: input, shape index: {}]   ;;  %s6919_s16 = inlined_call_operand.vmem [shape: f32[4,1], index: 16, kind: input, shape index: {}]   ;;  %s6920_s17 = inlined_call_operand.vmem [shape: f32[2,4,256], index: 17, kind: output, shape index: {}]  }
   0x1   :  { %7111 = sst [smem:[#allocation133_spill]] %s6903_s0 }
   0x2   :  { %7112 = sst [smem:[#allocation134_spill]] %s6904_s1 }
   0x3   :  { %7113 = sst [smem:[#allocation135_spill]] %s6914_s11 }
   0x4   :  { %s7114_s26 = sld [smem:[#allocation133_spill]] }
   0xa   :  { %s22_s11 = sshll.u32 %s7114_s26, 4  ;;  %s23_s11 = int_to_ptr.vmem [resolvable:$true] %s22_s11 }
   0xb   :  { %s4761_s27 = scalar_lea.vmem %s23_s11, 32  ;;  %p4766_p1 = scmp.lt.s32.totalorder %s23_s11, %s23_s11 }
   0xc   :  { %p4762_p0 = scmp.ne.s32.totalorder %s23_s11, %s4761_s27  ;;  %p4767_p2 = scmp.lt.s32.totalorder %s4761_s27, %s4761_s27 }
   0xe   :  { %p4768_p3 = por %p4767_p2, %p4766_p1 }
  0x10   :  { %p4769_p4 = pnand %p4768_p3, %p4762_p0 }
  0x12   :  { %4772 = shalt.err (!%p4769_p4)  }
  0x13   :  { %s4783_s28 = smov [#allocation3]  }
  0x14   :  { %25 = dma.vmem_to_smem %s23_s11, 32, %s4783_s28, [#allocation2] }
  0x15   :  { %4777 = dma.done.wait [#allocation2], 32 }
  0x16   :  { %4778 = vsyncadd [#allocation2], 4294967264 }
  0x17   :  { %27 = sfence }
  0x18   :  { %s4878_s29 = smov 0  }
  0x19 LB: > { %7115 = sst [smem:[#allocation5_spill]] %s4781_s29  ;;  %s4021_s0 = sadd.s32 4294967295, %s4781_s29   ;;  %s4781_s29 = sphi %s4878_s29, %s33_s29  }
  0x1a   : > { %p4025_p5 = scmp.ge.s32.totalorder %s4781_s29, 1  ;;  %p509_p6 = scmp.lt.s32.totalorder %s4781_s29, 3 }
  0x1c   : > { %p510_p7 = pnand %p4025_p5, %p509_p6 }
  0x1e   : > { %513 = sbr.rel (%p510_p7) target bundleno = 3400 (0xd48), region = 84 }
  0x23   : > { %p579_p8 = scmp.lt.s32.totalorder %s4021_s0, 1  ;;  %s4038_s11 = sshll.u32 %s4021_s0, 7  ;;  %v6923_v0 = vmov 0   ;;  %vm671_vm0 = vcmask 1041408   ;;  %vm664_vm1 = vcmask 31744   ;;  %v4282_v19 = vld [vmem:[%s6909_s6] sm:$0xff]  }
  0x24   : > { %s615_s30 = sld [smem:[#allocation3 + %s4038_s11]]  ;;  %s616_s18 = sadd.s32 1, %s4038_s11  ;;  %710 = vmatprep.mubr.bf16.mxu0 %v6923_v0  ;;  %4281 = vset.pattern.permute.xlu1 %v6923_v0  ;;  %v4283_v22 = vld [vmem:[%s6909_s6 + $0x8] sm:$0xff]   ;;  %v4287_v51 = vld [vmem:[%s6910_s7] sm:$0xff]   ;;  %vm763_vm2 = vcmask 261120  }
  0x25   : > { %s7515_s0 = smov (!%p579_p8, %s4021_s0), 1  ;;  %4280 = vset.pattern.permute.xlu0 %v6923_v0  ;;  %808 = vmatprep.mubr.bf16.mxu1 %v6923_v0  ;;  %s617_s19 = sld [smem:[#allocation3 + %s616_s18]]  ;;  %v4288_v60 = vld [vmem:[%s6910_s7 + $0x8] sm:$0xff]  }
  0x26   : > { %s4893_s1 = sshll.u32 %s7515_s0, 3  ;;  %s7116_s22 = sld [smem:[#allocation134_spill]] }
  0x27   : > { %s588_s26 = scalar_lea.vmem %s6905_s2, %s4893_s1  ;;  %s593_s11 = scalar_lea.vmem %s6906_s3, %s4893_s1 }
  0x28   : > { %v621_v2 = vld [vmem:[%s588_s26] sm:$0xff]  ;;  %s4150_s18 = sshll.u32 %s7515_s0, 5 }
  0x29   : > { %v857_v4 = vld [vmem:[%s593_s11] sm:$0xff]  ;;  %s603_s21 = scalar_lea.vmem %s6908_s5, %s4150_s18 }
  0x2a   : > { %v619_v3 = vstv %s615_s30  ;;  %v610_v7 = vld [vmem:[%s603_s21] sm:$0xff]  ;;  %v611_v8 = vld [vmem:[%s603_s21 + $0x8] sm:$0xff]  ;;  %v612_v9 = vld [vmem:[%s603_s21 + $0x10] sm:$0xff]  ;;  %v859_v13 = vcombine.high %v857_v4, %v857_v4  ;;  %v861_v14 = vpack.c.bf16 %v857_v4, %v857_v4 }
  0x2b   : > { %v622_v6 = vstv %s617_s19  ;;  %636 = vperm.xlu1 %4281, %v610_v7   ;;  %646 = vperm.xlu0 %4280, %v612_v9   ;;  %v613_v11 = vld [vmem:[%s603_s21 + $0x18] sm:$0xff]  ;;  %v4286_v7 = vld [vmem:[%s6911_s8 + $0x8] sm:$0xff]   ;;  %s7512_s21 = sld [smem:[#allocation135_spill]] }
  0x2c   : > { %s583_s23 = scalar_lea.vmem %s7116_s22, %s4893_s1  ;;  %s4149_s22 = sshll.u32 %s7515_s0, 6  ;;  %v623_v10 = vmul.f32 %v622_v6, %v621_v2  ;;  %v862_v20 = vpack.c.bf16 %v859_v13, %v859_v13  ;;  %v864_v21 = vsel %vm671_vm0, %v861_v14, 0  ;;  %v4285_v6 = vld [vmem:[%s6911_s8] sm:$0xff]   ;;  %v4290_v9 = vld [vmem:[%s6911_s8 + $0x18] sm:$0xff]   ;;  %v4294_v13 = vld [vmem:[%s6911_s8 + $0x28] sm:$0xff]  }
  0x2d   : > { %v618_v1 = vld [vmem:[%s583_s23] sm:$0xff]  ;;  %s4915_s24 = scalar_lea.vmem %s6907_s4, %s4149_s22  ;;  %s608_s22 = scalar_lea.vmem %s6920_s17, %s4893_s1 }
  0x2e   : > { %v620_v5 = vmul.f32 %v619_v3, %v618_v1 }
  0x2f   : > { %641 = vperm.xlu1 %4281, %v611_v8   ;;  %651 = vperm.xlu0 %4280, %v613_v11   ;;  %v4289_v8 = vld [vmem:[%s6911_s8 + $0x10] sm:$0xff]   ;;  %v4292_v11 = vld [vmem:[%s6911_s8 + $0x20] sm:$0xff]  }
  0x30   : > { %v624_v12 = vadd.f32 %v623_v10, %v620_v5  ;;  %v4291_v10 = vld [vmem:[%s6910_s7 + $0x10] sm:$0xff]  }
  0x32   : > { %v630_v15 = vcombine.high %v624_v12, %v624_v12  ;;  %v632_v16 = vpack.c.bf16 %v624_v12, %v624_v12  ;;  %v4293_v12 = vld [vmem:[%s6910_s7 + $0x18] sm:$0xff]  }
  0x34   : > { %v633_v17 = vpack.c.bf16 %v630_v15, %v630_v15  ;;  %v673_v18 = vsel %vm671_vm0, %v632_v16, 0 }
  0x36   : > { %4041 = vmatprep.subr.msk.bf16.mxu0 %vm671_vm0, %v633_v17 }
  0x37   : > { %693 = vmatpush1.bf16.msra.mxu0 %v673_v18 }
  0x38   : > { %4052 = vmatprep.subr.msk.bf16.mxu0 %vm671_vm0, %v862_v20 }
  0x3a   : > { %4042 = vmatmul.mubr.msk.bf16.vlgmr.msra.gmra.mxu0 %vm664_vm1, %v4282_v19 }
  0x3b   : > { %720 = vmatprep.mubr.bf16.mxu0 %v6923_v0  ;;  %884 = vmatpush1.bf16.msra.mxu0 %v864_v21 }
  0x42   : > { %4043 = vmatmul.mubr.msk.bf16.gmra.mxu0 %vm664_vm1, %v4283_v22 }
  0x43   : > { %901 = vmatprep.mubr.bf16.mxu0 %v6923_v0 }
  0x4a   : > { %4053 = vmatmul.mubr.msk.bf16.vlgmr.msra.gmra.mxu0 %vm664_vm1, %v4282_v19 }
  0x4b   : > { %911 = vmatprep.mubr.bf16.mxu0 %v6923_v0 }
  0x52   : > { %4054 = vmatmul.mubr.msk.bf16.gmra.mxu0 %vm664_vm1, %v4283_v22 }
  0x53   : > { %1018 = vmatprep.mubr.bf16.mxu0 %v6923_v0 }
  0xa6   : > { %v647_v26 = vpop.permute.xlu0 %646  ;;  %v637_v28 = vpop.permute.xlu1 %636 }
  0xaa   : > { %v652_v31 = vpop.permute.xlu0 %651  ;;  %v642_v33 = vpop.permute.xlu1 %641 }
  0xfa   : > { %v712_v23 = vpop.f32.mrf.mxu0 }
  0xfb   : > { %v713_v47 = vadd.f32 %v712_v23, %v637_v28 }
  0xfc   : > { %v714_v24 = vpop.f32.mrf.mxu0 }
  0xfd   : > { %v715_v41 = vadd.f32 %v714_v24, %v637_v28 }
  0xfe   : > { %v716_v25 = vpop.f32.mrf.mxu0 }
  0xff   : > { %v717_v43 = vadd.f32 %v716_v25, %v642_v33 }
 0x100   : > { %v718_v27 = vpop.f32.mrf.mxu0 }
 0x101   : > { %v719_v36 = vadd.f32 %v718_v27, %v642_v33  ;;  %v739_v49 = vpack.c.bf16 %v717_v43, %v713_v47 }
 0x102   : > { %v722_v29 = vpop.f32.mrf.mxu0 }
 0x103   : > { %v723_v39 = vadd.f32 %v722_v29, %v647_v26  ;;  %v740_v46 = vpack.c.bf16 %v719_v36, %v715_v41 }
 0x104   : > { %v724_v30 = vpop.f32.mrf.mxu0 }
 0x105   : > { %v725_v37 = vadd.f32 %v724_v30, %v647_v26 }
 0x106   : > { %v726_v32 = vpop.f32.mrf.mxu0 }
 0x107   : > { %v727_v34 = vadd.f32 %v726_v32, %v652_v31 }
 0x108   : > { %v728_v35 = vpop.f32.mrf.mxu0 }
 0x109   : > { %v729_v38 = vadd.f32 %v728_v35, %v652_v31  ;;  %v741_v45 = vpack.c.bf16 %v727_v34, %v723_v39 }
 0x10a   : > { %v903_v40 = vpop.f32.mrf.mxu0 }
 0x10b   : > { %v742_v42 = vpack.c.bf16 %v729_v38, %v725_v37  ;;  %v4964_v4 = vadd.f32 %v903_v40, %v637_v28 }
 0x10c   : > { %v905_v44 = vpop.f32.mrf.mxu0 }
 0x10d   : > { %788 = vmatprep.subr.bf16.mxu1 %v742_v42  ;;  %v4953_v62 = vadd.f32 %v905_v44, %v637_v28  ;;  %7124 = vst [vmem:[#allocation13_spill] sm:$0xff] %v4964_v4 }
 0x10e   : > { %789 = vmatpush1.bf16.msra.mxu1 %v741_v45  ;;  %v907_v48 = vpop.f32.mrf.mxu0 }
 0x10f   : > { %790 = vmatprep.subr.bf16.mxu1 %v740_v46  ;;  %7122 = vst [vmem:[#allocation11_spill] sm:$0xff] %v4953_v62  ;;  %v4957_v1 = vadd.f32 %v907_v48, %v642_v33 }
 0x110   : > { %v909_v50 = vpop.f32.mrf.mxu0 }
 0x111   : > { %v4942_v57 = vadd.f32 %v909_v50, %v642_v33  ;;  %7123 = vst [vmem:[#allocation12_spill] sm:$0xff] %v4957_v1  ;;  %v934_v5 = vpack.c.bf16 %v4957_v1, %v4964_v4 }
 0x112   : > { %791 = vmatpush1.bf16.msra.mxu1 %v739_v49  ;;  %v913_v52 = vpop.f32.mrf.mxu0 }
 0x113   : > { %7118 = vst [vmem:[#allocation7_spill] sm:$0xff] %v4942_v57  ;;  %v4951_v61 = vadd.f32 %v913_v52, %v647_v26  ;;  %v935_v3 = vpack.c.bf16 %v4942_v57, %v4953_v62 }
 0x114   : > { %v915_v53 = vpop.f32.mrf.mxu0 }
 0x115   : > { %4048 = vmatmul.mubr.msk.bf16.vlgmr.msra.gmra.mxu1 %vm763_vm2, %v4287_v51  ;;  %v4944_v58 = vadd.f32 %v915_v53, %v647_v26  ;;  %7121 = vst [vmem:[#allocation10_spill] sm:$0xff] %v4951_v61 }
 0x116   : > { %v917_v54 = vpop.f32.mrf.mxu0  ;;  %818 = vmatprep.mubr.bf16.mxu1 %v6923_v0 }
 0x117   : > { %v4940_v55 = vadd.f32 %v917_v54, %v652_v31  ;;  %7119 = vst [vmem:[#allocation8_spill] sm:$0xff] %v4944_v58 }
 0x118   : > { %v919_v56 = vpop.f32.mrf.mxu0 }
 0x119   : > { %7117 = vst [vmem:[#allocation6_spill] sm:$0xff] %v4940_v55  ;;  %v4946_v59 = vadd.f32 %v919_v56, %v652_v31  ;;  %v936_v2 = vpack.c.bf16 %v4940_v55, %v4951_v61 }
 0x11b   : > { %7120 = vst [vmem:[#allocation9_spill] sm:$0xff] %v4946_v59  ;;  %v937_v63 = vpack.c.bf16 %v4946_v59, %v4944_v58 }
 0x11d   : > { %998 = vmatprep.subr.bf16.mxu0 %v937_v63  ;;  %4049 = vmatmul.mubr.msk.bf16.gmra.mxu1 %vm763_vm2, %v4288_v60 }
 0x11e   : > { %999 = vmatpush1.bf16.msra.mxu0 %v936_v2  ;;  %828 = vmatprep.mubr.bf16.mxu1 %v6923_v0 }
 0x11f   : > { %1000 = vmatprep.subr.bf16.mxu0 %v935_v3 }
 0x122   : > { %1001 = vmatpush1.bf16.msra.mxu0 %v934_v5 }
 0x125   : > { %4061 = vmatmul.mubr.msk.bf16.vlgmr.msra.gmra.mxu0 %vm763_vm2, %v4285_v6  ;;  %4050 = vmatmul.mubr.msk.bf16.gmra.mxu1 %vm763_vm2, %v4291_v10 }
 0x126   : > { %1028 = vmatprep.mubr.bf16.mxu0 %v6923_v0  ;;  %838 = vmatprep.mubr.bf16.mxu1 %v6923_v0 }
 0x12d   : > { %4062 = vmatmul.mubr.msk.bf16.gmra.mxu0 %vm763_vm2, %v4286_v7  ;;  %4051 = vmatmul.mubr.msk.bf16.gmra.mxu1 %vm763_vm2, %v4293_v12 }
 0x12e   : > { %1038 = vmatprep.mubr.bf16.mxu0 %v6923_v0  ;;  %1203 = vmatprep.mubr.bf16.mxu1 %v6923_v0 }
 0x135   : > { %4063 = vmatmul.mubr.msk.bf16.gmra.mxu0 %vm763_vm2, %v4289_v8 }
 0x136   : > { %1048 = vmatprep.mubr.bf16.mxu0 %v6923_v0 }
 0x13d   : > { %4064 = vmatmul.mubr.msk.bf16.gmra.mxu0 %vm763_vm2, %v4290_v9 }
 0x13e   : > { %1058 = vmatprep.mubr.bf16.mxu0 %v6923_v0 }
 0x145   : > { %4065 = vmatmul.mubr.msk.bf16.gmra.mxu0 %vm763_vm2, %v4292_v11 }
 0x146   : > { %1068 = vmatprep.mubr.bf16.mxu0 %v6923_v0 }
 0x14d   : > { %4066 = vmatmul.mubr.msk.bf16.gmra.mxu0 %vm763_vm2, %v4294_v13 }
 0x14e   : > { %1396 = vmatprep.mubr.bf16.mxu0 %v6923_v0 }
 0x1d5   : > { %v810_v14 = vpop.f32.mrf.mxu1 }
 0x1d7   : > { %v812_v15 = vpop.f32.mrf.mxu1 }
 0x1d9   : > { %v814_v16 = vpop.f32.mrf.mxu1 }
 0x1da   : > { %v849_v27 = vpack.c.bf16 %v814_v16, %v810_v14 }
 0x1db   : > { %v816_v17 = vpop.f32.mrf.mxu1 }
 0x1dc   : > { %v850_v23 = vpack.c.bf16 %v816_v17, %v812_v15 }
 0x1dd   : > { %v820_v18 = vpop.f32.mrf.mxu1 }
 0x1df   : > { %v822_v19 = vpop.f32.mrf.mxu1 }
 0x1e1   : > { %v824_v20 = vpop.f32.mrf.mxu1 }
 0x1e2   : > { %v851_v21 = vpack.c.bf16 %v824_v20, %v820_v18 }
 0x1e3   : > { %v826_v22 = vpop.f32.mrf.mxu1 }
 0x1e4   : > { %v852_v24 = vpack.c.bf16 %v826_v22, %v822_v19 }
 0x1e5   : > { %v1020_v25 = vpop.f32.mrf.mxu0  ;;  %v5009_v50 = vpop.f32.mrf.mxu1 }
 0x1e6   : > { %1376 = vmatprep.subr.bf16.mxu0 %v852_v24  ;;  %7125 = vst [vmem:[#allocation14_spill] sm:$0xff] %v5009_v50 }
 0x1e7   : > { %v1022_v26 = vpop.f32.mrf.mxu0  ;;  %1377 = vmatpush1.bf16.msra.mxu0 %v851_v21  ;;  %v5013_v52 = vpop.f32.mrf.mxu1 }
 0x1e8   : > { %1378 = vmatprep.subr.bf16.mxu0 %v850_v23 }
 0x1e9   : > { %v1024_v28 = vpop.f32.mrf.mxu0  ;;  %v5017_v54 = vpop.f32.mrf.mxu1 }
 0x1ea   : > { %v1079_v29 = vpack.c.bf16 %v1024_v28, %v1020_v25  ;;  %7127 = vst [vmem:[#allocation16_spill] sm:$0xff] %v5017_v54 }
 0x1eb   : > { %v1026_v30 = vpop.f32.mrf.mxu0  ;;  %1379 = vmatpush1.bf16.msra.mxu0 %v849_v27  ;;  %v5027_v3 = vpop.f32.mrf.mxu1 }
 0x1ec   : > { %v1080_v31 = vpack.c.bf16 %v1026_v30, %v1022_v26  ;;  %1091 = vxpose.xlu0.c.b16.start [1/2] (short) %v1079_v29, 128  ;;  %v854_v29 = vpack.c.bf16 %v5027_v3, %v5013_v52 }
 0x1ed   : > { %v1030_v32 = vpop.f32.mrf.mxu0  ;;  %v5033_v6 = vpop.f32.mrf.mxu1 }
 0x1ee   : > { %1107 = vxpose.xlu1.c.b16.start [1/2] (short) %v1080_v31, 128  ;;  %7129 = vst [vmem:[#allocation18_spill] sm:$0xff] %v5033_v6 }
 0x1ef   : > { %v1032_v33 = vpop.f32.mrf.mxu0  ;;  %v5037_v8 = vpop.f32.mrf.mxu1 }
 0x1f0   : > { %7131 = vst [vmem:[#allocation20_spill] sm:$0xff] %v5037_v8 }
 0x1f1   : > { %v1034_v34 = vpop.f32.mrf.mxu0  ;;  %v5041_v11 = vpop.f32.mrf.mxu1 }
 0x1f2   : > { %v1081_v35 = vpack.c.bf16 %v1034_v34, %v1030_v32  ;;  %7133 = vst [vmem:[#allocation22_spill] sm:$0xff] %v5041_v11 }
 0x1f3   : > { %v1036_v36 = vpop.f32.mrf.mxu0  ;;  %v5111_v31 = vpop.f32.mrf.mxu1 }
 0x1f4   : > { %v1082_v37 = vpack.c.bf16 %v1036_v36, %v1032_v33  ;;  %1092 = vxpose.xlu0.c.b16.end [2/2] (short) %v1081_v35, 128  ;;  %7135 = vst [vmem:[#allocation24_spill] sm:$0xff] %v5111_v31 }
 0x1f5   : > { %v1040_v38 = vpop.f32.mrf.mxu0 }
 0x1f6   : > { %1108 = vxpose.xlu1.c.b16.end [2/2] (short) %v1082_v37, 128 }
 0x1f7   : > { %v1042_v39 = vpop.f32.mrf.mxu0 }
 0x1f9   : > { %v1044_v40 = vpop.f32.mrf.mxu0 }
 0x1fa   : > { %v1083_v49 = vpack.c.bf16 %v1044_v40, %v1040_v38 }
 0x1fb   : > { %v1046_v41 = vpop.f32.mrf.mxu0 }
 0x1fc   : > { %v1084_v47 = vpack.c.bf16 %v1046_v41, %v1042_v39 }
 0x1fd   : > { %v1050_v42 = vpop.f32.mrf.mxu0 }
 0x1ff   : > { %v1052_v43 = vpop.f32.mrf.mxu0 }
 0x201   : > { %v1054_v44 = vpop.f32.mrf.mxu0 }
 0x202   : > { %v1085_v45 = vpack.c.bf16 %v1054_v44, %v1050_v42 }
 0x203   : > { %v1056_v46 = vpop.f32.mrf.mxu0 }
 0x204   : > { %v1086_v48 = vpack.c.bf16 %v1056_v46, %v1052_v43 }
 0x205   : > { %v5011_v51 = vpop.f32.mrf.mxu0 }
 0x206   : > { %1183 = vmatprep.subr.bf16.mxu1 %v1086_v48  ;;  %7126 = vst [vmem:[#allocation15_spill] sm:$0xff] %v5011_v51 }
 0x207   : > { %1184 = vmatpush1.bf16.msra.mxu1 %v1085_v45  ;;  %v5015_v53 = vpop.f32.mrf.mxu0 }
 0x208   : > { %1185 = vmatprep.subr.bf16.mxu1 %v1084_v47 }
 0x209   : > { %v5019_v56 = vpop.f32.mrf.mxu0 }
 0x20a   : > { %7128 = vst [vmem:[#allocation17_spill] sm:$0xff] %v5019_v56 }
 0x20b   : > { %1186 = vmatpush1.bf16.msra.mxu1 %v1083_v49  ;;  %v5029_v5 = vpop.f32.mrf.mxu0 }
 0x20c   : > { %v1088_v30 = vpack.c.bf16 %v5029_v5, %v5015_v53 }
 0x20d   : > { %v5035_v7 = vpop.f32.mrf.mxu0 }
 0x20e   : > { %7130 = vst [vmem:[#allocation19_spill] sm:$0xff] %v5035_v7 }
 0x20f   : > { %v5039_v9 = vpop.f32.mrf.mxu0 }
 0x210   : > { %7132 = vst [vmem:[#allocation21_spill] sm:$0xff] %v5039_v9 }
 0x211   : > { %v5043_v12 = vpop.f32.mrf.mxu0 }
 0x212   : > { %7134 = vst [vmem:[#allocation23_spill] sm:$0xff] %v5043_v12 }
 0x213   : > { %v5113_v32 = vpop.f32.mrf.mxu0 }
 0x214   : > { %7136 = vst [vmem:[#allocation25_spill] sm:$0xff] %v5113_v32 }
 0x252   : > { %v1099_v60 = vpop.trf.xlu0 }
 0x253   : > { %4067 = vmatmul.mubr.msk.bf16.vlgmr.msra.gmra.mxu1 %vm763_vm2, %v1099_v60  ;;  %4083 = vmatmul.mubr.msk.bf16.vlgmr.msra.gmra.mxu0 %vm763_vm2, %v1099_v60 }
 0x254   : > { %1213 = vmatprep.mubr.bf16.mxu1 %v6923_v0  ;;  %1406 = vmatprep.mubr.bf16.mxu0 %v6923_v0  ;;  %v1115_v21 = vpop.trf.xlu1 }
 0x256   : > { %v1100_v10 = vpop.trf.xlu0 }
 0x258   : > { %v1116_v22 = vpop.trf.xlu1 }
 0x25a   : > { %v1101_v15 = vpop.trf.xlu0 }
 0x25b   : > { %4068 = vmatmul.mubr.msk.bf16.gmra.mxu1 %vm763_vm2, %v1100_v10  ;;  %4084 = vmatmul.mubr.msk.bf16.gmra.mxu0 %vm763_vm2, %v1100_v10 }
 0x25c   : > { %1223 = vmatprep.mubr.bf16.mxu1 %v6923_v0  ;;  %1416 = vmatprep.mubr.bf16.mxu0 %v6923_v0  ;;  %v1117_v23 = vpop.trf.xlu1 }
 0x25e   : > { %v1102_v16 = vpop.trf.xlu0 }
 0x260   : > { %v1118_v24 = vpop.trf.xlu1 }
 0x262   : > { %v1103_v17 = vpop.trf.xlu0 }
 0x263   : > { %4069 = vmatmul.mubr.msk.bf16.gmra.mxu1 %vm763_vm2, %v1101_v15  ;;  %4085 = vmatmul.mubr.msk.bf16.gmra.mxu0 %vm763_vm2, %v1101_v15 }
 0x264   : > { %1233 = vmatprep.mubr.bf16.mxu1 %v6923_v0  ;;  %1426 = vmatprep.mubr.bf16.mxu0 %v6923_v0  ;;  %v1119_v25 = vpop.trf.xlu1 }
 0x266   : > { %v1104_v18 = vpop.trf.xlu0 }
 0x268   : > { %v1120_v26 = vpop.trf.xlu1 }
 0x26a   : > { %v1105_v19 = vpop.trf.xlu0 }
 0x26b   : > { %4070 = vmatmul.mubr.msk.bf16.gmra.mxu1 %vm763_vm2, %v1102_v16  ;;  %4086 = vmatmul.mubr.msk.bf16.gmra.mxu0 %vm763_vm2, %v1102_v16 }
 0x26c   : > { %1243 = vmatprep.mubr.bf16.mxu1 %v6923_v0  ;;  %1436 = vmatprep.mubr.bf16.mxu0 %v6923_v0  ;;  %v1121_v27 = vpop.trf.xlu1 }
 0x26e   : > { %v1106_v20 = vpop.trf.xlu0 }
 0x270   : > { %v1122_v28 = vpop.trf.xlu1 }
 0x273   : > { %4071 = vmatmul.mubr.msk.bf16.gmra.mxu1 %vm763_vm2, %v1103_v17  ;;  %4087 = vmatmul.mubr.msk.bf16.gmra.mxu0 %vm763_vm2, %v1103_v17 }
 0x274   : > { %1253 = vmatprep.mubr.bf16.mxu1 %v6923_v0  ;;  %1446 = vmatprep.mubr.bf16.mxu0 %v6923_v0 }
 0x27b   : > { %4072 = vmatmul.mubr.msk.bf16.gmra.mxu1 %vm763_vm2, %v1104_v18  ;;  %4088 = vmatmul.mubr.msk.bf16.gmra.mxu0 %vm763_vm2, %v1104_v18 }
 0x27c   : > { %1263 = vmatprep.mubr.bf16.mxu1 %v6923_v0  ;;  %1456 = vmatprep.mubr.bf16.mxu0 %v6923_v0 }
 0x283   : > { %4073 = vmatmul.mubr.msk.bf16.gmra.mxu1 %vm763_vm2, %v1105_v19  ;;  %4089 = vmatmul.mubr.msk.bf16.gmra.mxu0 %vm763_vm2, %v1105_v19 }
 0x284   : > { %1273 = vmatprep.mubr.bf16.mxu1 %v6923_v0  ;;  %1466 = vmatprep.mubr.bf16.mxu0 %v6923_v0 }
 0x28b   : > { %4074 = vmatmul.mubr.msk.bf16.gmra.mxu1 %vm763_vm2, %v1106_v20  ;;  %4090 = vmatmul.mubr.msk.bf16.gmra.mxu0 %vm763_vm2, %v1106_v20 }
 0x28c   : > { %1283 = vmatprep.mubr.bf16.mxu1 %v6923_v0  ;;  %1476 = vmatprep.mubr.bf16.mxu0 %v6923_v0 }
 0x293   : > { %4075 = vmatmul.mubr.msk.bf16.gmra.mxu1 %vm763_vm2, %v1115_v21  ;;  %4091 = vmatmul.mubr.msk.bf16.gmra.mxu0 %vm763_vm2, %v1115_v21 }
 0x294   : > { %1293 = vmatprep.mubr.bf16.mxu1 %v6923_v0  ;;  %1486 = vmatprep.mubr.bf16.mxu0 %v6923_v0 }
 0x29b   : > { %4076 = vmatmul.mubr.msk.bf16.gmra.mxu1 %vm763_vm2, %v1116_v22  ;;  %4092 = vmatmul.mubr.msk.bf16.gmra.mxu0 %vm763_vm2, %v1116_v22 }
 0x29c   : > { %1303 = vmatprep.mubr.bf16.mxu1 %v6923_v0  ;;  %1496 = vmatprep.mubr.bf16.mxu0 %v6923_v0 }
 0x2a3   : > { %4077 = vmatmul.mubr.msk.bf16.gmra.mxu1 %vm763_vm2, %v1117_v23  ;;  %4093 = vmatmul.mubr.msk.bf16.gmra.mxu0 %vm763_vm2, %v1117_v23 }
 0x2a4   : > { %1313 = vmatprep.mubr.bf16.mxu1 %v6923_v0  ;;  %1506 = vmatprep.mubr.bf16.mxu0 %v6923_v0 }
 0x2ab   : > { %4078 = vmatmul.mubr.msk.bf16.gmra.mxu1 %vm763_vm2, %v1118_v24  ;;  %4094 = vmatmul.mubr.msk.bf16.gmra.mxu0 %vm763_vm2, %v1118_v24 }
 0x2ac   : > { %1323 = vmatprep.mubr.bf16.mxu1 %v6923_v0  ;;  %1516 = vmatprep.mubr.bf16.mxu0 %v6923_v0 }
 0x2b3   : > { %4079 = vmatmul.mubr.msk.bf16.gmra.mxu1 %vm763_vm2, %v1119_v25  ;;  %4095 = vmatmul.mubr.msk.bf16.gmra.mxu0 %vm763_vm2, %v1119_v25 }
 0x2b4   : > { %1333 = vmatprep.mubr.bf16.mxu1 %v6923_v0  ;;  %1526 = vmatprep.mubr.bf16.mxu0 %v6923_v0 }
 0x2bb   : > { %4080 = vmatmul.mubr.msk.bf16.gmra.mxu1 %vm763_vm2, %v1120_v26  ;;  %4096 = vmatmul.mubr.msk.bf16.gmra.mxu0 %vm763_vm2, %v1120_v26 }
 0x2bc   : > { %1343 = vmatprep.mubr.bf16.mxu1 %v6923_v0  ;;  %1536 = vmatprep.mubr.bf16.mxu0 %v6923_v0 }
 0x2c3   : > { %4081 = vmatmul.mubr.msk.bf16.gmra.mxu1 %vm763_vm2, %v1121_v27  ;;  %4097 = vmatmul.mubr.msk.bf16.gmra.mxu0 %vm763_vm2, %v1121_v27 }
 0x2c4   : > { %1353 = vmatprep.mubr.bf16.mxu1 %v6923_v0  ;;  %1546 = vmatprep.mubr.bf16.mxu0 %v6923_v0 }
 0x2cb   : > { %4082 = vmatmul.mubr.msk.bf16.gmra.mxu1 %vm763_vm2, %v1122_v28  ;;  %4098 = vmatmul.mubr.msk.bf16.gmra.mxu0 %vm763_vm2, %v1122_v28 }
 0x2cc   : > { %2645 = vmatprep.mubr.bf16.mxu1 %v854_v29  ;;  %2698 = vmatprep.mubr.bf16.mxu0 %v1088_v30 }
 0x313   : > { %v5115_v33 = vpop.f32.mrf.mxu1  ;;  %v5117_v34 = vpop.f32.mrf.mxu0 }
 0x314   : > { %7137 = vst [vmem:[#allocation26_spill] sm:$0xff] %v5115_v33  ;;  %7138 = vst [vmem:[#allocation27_spill] sm:$0xff] %v5117_v34 }
 0x315   : > { %v5119_v35 = vpop.f32.mrf.mxu1  ;;  %v5121_v36 = vpop.f32.mrf.mxu0 }
 0x316   : > { %7139 = vst [vmem:[#allocation28_spill] sm:$0xff] %v5119_v35  ;;  %7140 = vst [vmem:[#allocation29_spill] sm:$0xff] %v5121_v36 }
 0x317   : > { %v5123_v37 = vpop.f32.mrf.mxu1  ;;  %v5125_v38 = vpop.f32.mrf.mxu0 }
 0x318   : > { %7141 = vst [vmem:[#allocation30_spill] sm:$0xff] %v5123_v37  ;;  %7142 = vst [vmem:[#allocation31_spill] sm:$0xff] %v5125_v38 }
 0x319   : > { %v5127_v39 = vpop.f32.mrf.mxu1  ;;  %v5129_v40 = vpop.f32.mrf.mxu0 }
 0x31a   : > { %7143 = vst [vmem:[#allocation32_spill] sm:$0xff] %v5127_v39  ;;  %7144 = vst [vmem:[#allocation33_spill] sm:$0xff] %v5129_v40 }
 0x31b   : > { %v5131_v41 = vpop.f32.mrf.mxu1  ;;  %v5133_v42 = vpop.f32.mrf.mxu0 }
 0x31c   : > { %7145 = vst [vmem:[#allocation34_spill] sm:$0xff] %v5131_v41  ;;  %7146 = vst [vmem:[#allocation35_spill] sm:$0xff] %v5133_v42 }
 0x31d   : > { %v5135_v43 = vpop.f32.mrf.mxu1  ;;  %v5137_v44 = vpop.f32.mrf.mxu0 }
 0x31e   : > { %7147 = vst [vmem:[#allocation36_spill] sm:$0xff] %v5135_v43  ;;  %7148 = vst [vmem:[#allocation37_spill] sm:$0xff] %v5137_v44 }
 0x31f   : > { %v5139_v45 = vpop.f32.mrf.mxu1  ;;  %v5141_v46 = vpop.f32.mrf.mxu0 }
 0x320   : > { %7149 = vst [vmem:[#allocation38_spill] sm:$0xff] %v5139_v45  ;;  %7150 = vst [vmem:[#allocation39_spill] sm:$0xff] %v5141_v46 }
 0x321   : > { %v5143_v47 = vpop.f32.mrf.mxu1  ;;  %v5145_v48 = vpop.f32.mrf.mxu0 }
 0x322   : > { %7151 = vst [vmem:[#allocation40_spill] sm:$0xff] %v5143_v47  ;;  %7152 = vst [vmem:[#allocation41_spill] sm:$0xff] %v5145_v48 }
 0x323   : > { %v5147_v49 = vpop.f32.mrf.mxu1  ;;  %v5149_v52 = vpop.f32.mrf.mxu0 }
 0x324   : > { %7153 = vst [vmem:[#allocation42_spill] sm:$0xff] %v5147_v49  ;;  %7154 = vst [vmem:[#allocation43_spill] sm:$0xff] %v5149_v52 }
 0x325   : > { %v5151_v53 = vpop.f32.mrf.mxu1  ;;  %v5153_v60 = vpop.f32.mrf.mxu0 }
 0x326   : > { %7155 = vst [vmem:[#allocation44_spill] sm:$0xff] %v5151_v53  ;;  %7156 = vst [vmem:[#allocation45_spill] sm:$0xff] %v5153_v60  ;;  %v1569_v3 = vmax.f32 %v5147_v49, %v5151_v53 }
 0x327   : > { %v5157_v5 = vpop.f32.mrf.mxu1  ;;  %v5159_v10 = vpop.f32.mrf.mxu0 }
 0x328   : > { %7157 = vst [vmem:[#allocation46_spill] sm:$0xff] %v5157_v5  ;;  %7158 = vst [vmem:[#allocation47_spill] sm:$0xff] %v5159_v10  ;;  %1570 = vmax.xlane.f32.xlu1 %v1569_v3 }
 0x329   : > { %v5161_v15 = vpop.f32.mrf.mxu1  ;;  %v5163_v16 = vpop.f32.mrf.mxu0 }
 0x32a   : > { %7159 = vst [vmem:[#allocation48_spill] sm:$0xff] %v5161_v15  ;;  %7160 = vst [vmem:[#allocation49_spill] sm:$0xff] %v5163_v16  ;;  %v1572_v17 = vmax.f32 %v5157_v5, %v5161_v15 }
 0x32b   : > { %v5167_v18 = vpop.f32.mrf.mxu1  ;;  %v5169_v19 = vpop.f32.mrf.mxu0 }
 0x32c   : > { %7161 = vst [vmem:[#allocation50_spill] sm:$0xff] %v5169_v19  ;;  %1573 = vmax.xlane.f32.xlu0 %v1572_v17 }
 0x32d   : > { %v5171_v20 = vpop.f32.mrf.mxu1  ;;  %v5173_v21 = vpop.f32.mrf.mxu0 }
 0x32e   : > { %7162 = vst [vmem:[#allocation51_spill] sm:$0xff] %v5173_v21  ;;  %v1575_v22 = vmax.f32 %v5167_v18, %v5171_v20  ;;  %v1671_v27 = vmax.f32 %v5169_v19, %v5173_v21 }
 0x32f   : > { %v5177_v23 = vpop.f32.mrf.mxu1  ;;  %v5179_v24 = vpop.f32.mrf.mxu0 }
 0x330   : > { %7163 = vst [vmem:[#allocation52_spill] sm:$0xff] %v5177_v23  ;;  %7164 = vst [vmem:[#allocation53_spill] sm:$0xff] %v5179_v24  ;;  %1576 = vmax.xlane.f32.xlu1 %v1575_v22 }
 0x331   : > { %v5181_v25 = vpop.f32.mrf.mxu1  ;;  %v5183_v26 = vpop.f32.mrf.mxu0 }
 0x332   : > { %7165 = vst [vmem:[#allocation54_spill] sm:$0xff] %v5181_v25  ;;  %7166 = vst [vmem:[#allocation55_spill] sm:$0xff] %v5183_v26  ;;  %v1578_v28 = vmax.f32 %v5177_v23, %v5181_v25  ;;  %v1674_v22 = vmax.f32 %v5179_v24, %v5183_v26  ;;  %v1665_v23 = vmax.f32 %v5149_v52, %v5153_v60 }
 0x333   : > { %v5189_v29 = vpop.f32.mrf.mxu1  ;;  %v5191_v30 = vpop.f32.mrf.mxu0 }
 0x334   : > { %1672 = vmax.xlane.f32.xlu1 %v1671_v27  ;;  %1579 = vmax.xlane.f32.xlu0 %v1578_v28 }
 0x335   : > { %v5193_v3 = vpop.f32.mrf.mxu1  ;;  %v5195_v17 = vpop.f32.mrf.mxu0 }
 0x336   : > { %v1581_v0 = vmax.f32 %v5189_v29, %v5193_v3  ;;  %v1677_v28 = vmax.f32 %v5191_v30, %v5195_v17 }
 0x337   : > { %v5201_v14 = vpop.f32.mrf.mxu1  ;;  %v5203_v13 = vpop.f32.mrf.mxu0 }
 0x338   : > { %1675 = vmax.xlane.f32.xlu0 %v1674_v22  ;;  %1582 = vmax.xlane.f32.xlu1 %v1581_v0 }
 0x339   : > { %v5205_v2 = vpop.f32.mrf.mxu1  ;;  %v5207_v27 = vpop.f32.mrf.mxu0 }
 0x33a   : > { %v1584_v63 = vmax.f32 %v5201_v14, %v5205_v2  ;;  %v1680_v0 = vmax.f32 %v5203_v13, %v5207_v27 }
 0x33b   : > { %v5213_v4 = vpop.f32.mrf.mxu1  ;;  %v5215_v1 = vpop.f32.mrf.mxu0 }
 0x33c   : > { %1678 = vmax.xlane.f32.xlu1 %v1677_v28  ;;  %1585 = vmax.xlane.f32.xlu0 %v1584_v63 }
 0x33d   : > { %v5217_v59 = vpop.f32.mrf.mxu1  ;;  %v5219_v22 = vpop.f32.mrf.mxu0 }
 0x33e   : > { %v1587_v62 = vmax.f32 %v5213_v4, %v5217_v59  ;;  %v1683_v63 = vmax.f32 %v5215_v1, %v5219_v22 }
 0x33f   : > { %v5225_v61 = vpop.f32.mrf.mxu1  ;;  %v5227_v55 = vpop.f32.mrf.mxu0 }
 0x340   : > { %1681 = vmax.xlane.f32.xlu0 %v1680_v0  ;;  %1588 = vmax.xlane.f32.xlu1 %v1587_v62 }
 0x341   : > { %v5229_v58 = vpop.f32.mrf.mxu1  ;;  %v5231_v28 = vpop.f32.mrf.mxu0 }
 0x342   : > { %v1590_v57 = vmax.f32 %v5225_v61, %v5229_v58  ;;  %v1686_v62 = vmax.f32 %v5227_v55, %v5231_v28 }
 0x343   : > { %v5237_v7 = vpop.f32.mrf.mxu1  ;;  %v5239_v12 = vpop.f32.mrf.mxu0 }
 0x344   : > { %1684 = vmax.xlane.f32.xlu1 %v1683_v63  ;;  %1591 = vmax.xlane.f32.xlu0 %v1590_v57 }
 0x345   : > { %v5241_v6 = vpop.f32.mrf.mxu1  ;;  %v5243_v0 = vpop.f32.mrf.mxu0 }
 0x346   : > { %v1593_v11 = vmax.f32 %v5237_v7, %v5241_v6  ;;  %v1689_v57 = vmax.f32 %v5239_v12, %v5243_v0 }
 0x347   : > { %v5249_v51 = vpop.f32.mrf.mxu1  ;;  %v5251_v56 = vpop.f32.mrf.mxu0 }
 0x348   : > { %1687 = vmax.xlane.f32.xlu0 %v1686_v62  ;;  %1594 = vmax.xlane.f32.xlu1 %v1593_v11 }
 0x349   : > { %v5253_v50 = vpop.f32.mrf.mxu1  ;;  %v5255_v63 = vpop.f32.mrf.mxu0 }
 0x34a   : > { %v1596_v54 = vmax.f32 %v5249_v51, %v5253_v50  ;;  %v1692_v11 = vmax.f32 %v5251_v56, %v5255_v63 }
 0x34b   : > { %v5261_v32 = vpop.f32.mrf.mxu1  ;;  %v5263_v9 = vpop.f32.mrf.mxu0 }
 0x34c   : > { %1690 = vmax.xlane.f32.xlu1 %v1689_v57  ;;  %1597 = vmax.xlane.f32.xlu0 %v1596_v54 }
 0x34d   : > { %v5265_v31 = vpop.f32.mrf.mxu1  ;;  %v5267_v62 = vpop.f32.mrf.mxu0 }
 0x34e   : > { %v1599_v57 = vmax.f32 %v5261_v32, %v5265_v31 }
 0x34f   : > { %v5271_v8 = vpop.f32.mrf.mxu1  ;;  %v5273_v15 = vpop.f32.mrf.mxu0 }
 0x350   : > { %1693 = vmax.xlane.f32.xlu0 %v1692_v11  ;;  %v1695_v11 = vmax.f32 %v5263_v9, %v5267_v62 }
 0x351   : > { %v5275_v5 = vpop.f32.mrf.mxu1  ;;  %v5277_v26 = vpop.f32.mrf.mxu0 }
 0x352   : > { %v1602_v54 = vmax.f32 %v5271_v8, %v5275_v5 }
 0x353   : > { %v5283_v53 = vpop.f32.mrf.mxu1  ;;  %v5285_v49 = vpop.f32.mrf.mxu0 }
 0x354   : > { %7167 = vst [vmem:[#allocation56_spill] sm:$0xff] %v5283_v53  ;;  %7168 = vst [vmem:[#allocation57_spill] sm:$0xff] %v5285_v49  ;;  %1600 = vmax.xlane.f32.xlu0 %v1599_v57  ;;  %1603 = vmax.xlane.f32.xlu1 %v1602_v54  ;;  %v1698_v54 = vmax.f32 %v5273_v15, %v5277_v26  ;;  %v1563_v49 = vmax.f32 %v5131_v41, %v5135_v43 }
 0x355   : > { %v5287_v24 = vpop.f32.mrf.mxu1  ;;  %v5289_v25 = vpop.f32.mrf.mxu0  ;;  %v1557_v41 = vmax.f32 %v5115_v33, %v5119_v35  ;;  %v1560_v33 = vmax.f32 %v5123_v37, %v5127_v39 }
 0x356   : > { %7169 = vst [vmem:[#allocation58_spill] sm:$0xff] %v5287_v24  ;;  %7170 = vst [vmem:[#allocation59_spill] sm:$0xff] %v5289_v25 }
 0x357   : > { %v5295_v21 = vpop.f32.mrf.mxu1  ;;  %v5297_v19 = vpop.f32.mrf.mxu0 }
 0x358   : > { %7171 = vst [vmem:[#allocation60_spill] sm:$0xff] %v5295_v21  ;;  %7172 = vst [vmem:[#allocation61_spill] sm:$0xff] %v5297_v19  ;;  %1696 = vmax.xlane.f32.xlu0 %v1695_v11  ;;  %1666 = vmax.xlane.f32.xlu1 %v1665_v23  ;;  %v1668_v23 = vmax.f32 %v5159_v10, %v5163_v16  ;;  %v1659_v19 = vmax.f32 %v5133_v42, %v5137_v44 }
 0x359   : > { %v5299_v53 = vpop.f32.mrf.mxu1  ;;  %v5301_v57 = vpop.f32.mrf.mxu0  ;;  %v1653_v42 = vmax.f32 %v5117_v34, %v5121_v36 }
 0x35a   : > { %7173 = vst [vmem:[#allocation62_spill] sm:$0xff] %v5299_v53  ;;  %7174 = vst [vmem:[#allocation63_spill] sm:$0xff] %v5301_v57 }
 0x35b   : > { %v5307_v25 = vpop.f32.mrf.mxu1  ;;  %v5309_v24 = vpop.f32.mrf.mxu0 }
 0x35c   : > { %7175 = vst [vmem:[#allocation64_spill] sm:$0xff] %v5309_v24  ;;  %1699 = vmax.xlane.f32.xlu0 %v1698_v54  ;;  %1564 = vmax.xlane.f32.xlu1 %v1563_v49  ;;  %v1566_v49 = vmax.f32 %v5139_v45, %v5143_v47 }
 0x35d   : > { %v5311_v21 = vpop.f32.mrf.mxu1  ;;  %v5313_v11 = vpop.f32.mrf.mxu0 }
 0x35f   : > { %v5319_v57 = vpop.f32.mrf.mxu1  ;;  %v5321_v53 = vpop.f32.mrf.mxu0 }
 0x360   : > { %7176 = vst [vmem:[#allocation65_spill] sm:$0xff] %v5319_v57  ;;  %7177 = vst [vmem:[#allocation66_spill] sm:$0xff] %v5321_v53  ;;  %1669 = vmax.xlane.f32.xlu0 %v1668_v23  ;;  %1660 = vmax.xlane.f32.xlu1 %v1659_v19  ;;  %v1662_v19 = vmax.f32 %v5141_v46, %v5145_v48 }
 0x361   : > { %v5323_v43 = vpop.f32.mrf.mxu1  ;;  %v5325_v54 = vpop.f32.mrf.mxu0 }
 0x362   : > { %7178 = vst [vmem:[#allocation67_spill] sm:$0xff] %v5323_v43  ;;  %7179 = vst [vmem:[#allocation68_spill] sm:$0xff] %v5325_v54 }
 0x363   : > { %v5331_v16 = vpop.f32.mrf.mxu1  ;;  %v5333_v10 = vpop.f32.mrf.mxu0 }
 0x364   : > { %7180 = vst [vmem:[#allocation69_spill] sm:$0xff] %v5331_v16  ;;  %7181 = vst [vmem:[#allocation70_spill] sm:$0xff] %v5333_v10  ;;  %1567 = vmax.xlane.f32.xlu0 %v1566_v49  ;;  %1558 = vmax.xlane.f32.xlu1 %v1557_v41 }
 0x365   : > { %v5335_v44 = vpop.f32.mrf.mxu1  ;;  %v5337_v23 = vpop.f32.mrf.mxu0 }
 0x366   : > { %7182 = vst [vmem:[#allocation71_spill] sm:$0xff] %v5335_v44  ;;  %7183 = vst [vmem:[#allocation72_spill] sm:$0xff] %v5337_v23  ;;  %v1617_v49 = vmax.f32 %v5331_v16, %v5335_v44 }
 0x367   : > { %v5343_v47 = vpop.f32.mrf.mxu1  ;;  %v5345_v45 = vpop.f32.mrf.mxu0 }
 0x368   : > { %7184 = vst [vmem:[#allocation73_spill] sm:$0xff] %v5343_v47  ;;  %7185 = vst [vmem:[#allocation74_spill] sm:$0xff] %v5345_v45  ;;  %1663 = vmax.xlane.f32.xlu0 %v1662_v19  ;;  %1654 = vmax.xlane.f32.xlu1 %v1653_v42  ;;  %v1656_v42 = vmax.f32 %v5125_v38, %v5129_v40 }
 0x369   : > { %v5349_v41 = vpop.f32.mrf.mxu1  ;;  %v5351_v35 = vpop.f32.mrf.mxu0 }
 0x36a   : > { %7186 = vst [vmem:[#allocation75_spill] sm:$0xff] %v5349_v41  ;;  %7187 = vst [vmem:[#allocation76_spill] sm:$0xff] %v5351_v35 }
 0x36b   : > { %v5355_v48 = vpop.f32.mrf.mxu1  ;;  %v5357_v46 = vpop.f32.mrf.mxu0 }
 0x36c   : > { %7188 = vst [vmem:[#allocation77_spill] sm:$0xff] %v5355_v48  ;;  %7189 = vst [vmem:[#allocation78_spill] sm:$0xff] %v5357_v46  ;;  %1561 = vmax.xlane.f32.xlu0 %v1560_v33  ;;  %1618 = vmax.xlane.f32.xlu1 %v1617_v49  ;;  %v1620_v33 = vmax.f32 %v5343_v47, %v5349_v41 }
 0x36d   : > { %v5359_v36 = vpop.f32.mrf.mxu1  ;;  %v5361_v19 = vpop.f32.mrf.mxu0 }
 0x36e   : > { %7190 = vst [vmem:[#allocation79_spill] sm:$0xff] %v5359_v36  ;;  %7191 = vst [vmem:[#allocation80_spill] sm:$0xff] %v5361_v19  ;;  %v1623_v44 = vmax.f32 %v5355_v48, %v5359_v36  ;;  %v1719_v49 = vmax.f32 %v5357_v46, %v5361_v19 }
 0x36f   : > { %v5367_v16 = vpop.f32.mrf.mxu1  ;;  %v5369_v34 = vpop.f32.mrf.mxu0 }
 0x370   : > { %7192 = vst [vmem:[#allocation81_spill] sm:$0xff] %v5367_v16  ;;  %7193 = vst [vmem:[#allocation82_spill] sm:$0xff] %v5369_v34  ;;  %1657 = vmax.xlane.f32.xlu0 %v1656_v42  ;;  %1624 = vmax.xlane.f32.xlu1 %v1623_v44 }
 0x371   : > { %v5375_v39 = vpop.f32.mrf.mxu1  ;;  %v5377_v37 = vpop.f32.mrf.mxu0 }
 0x372   : > { %7194 = vst [vmem:[#allocation83_spill] sm:$0xff] %v5375_v39  ;;  %7195 = vst [vmem:[#allocation84_spill] sm:$0xff] %v5377_v37  ;;  %v1626_v42 = vmax.f32 %v5367_v16, %v5375_v39 }
 0x373   : > { %v5379_v40 = vpop.f32.mrf.mxu1  ;;  %v5381_v38 = vpop.f32.mrf.mxu0 }
 0x374   : > { %7196 = vst [vmem:[#allocation85_spill] sm:$0xff] %v5379_v40  ;;  %7197 = vst [vmem:[#allocation86_spill] sm:$0xff] %v5381_v38  ;;  %1621 = vmax.xlane.f32.xlu0 %v1620_v33  ;;  %1720 = vmax.xlane.f32.xlu1 %v1719_v49  ;;  %v1722_v33 = vmax.f32 %v5369_v34, %v5377_v37 }
 0x375   : > { %v5385_v44 = vpop.f32.mrf.mxu1  ;;  %v5387_v36 = vpop.f32.mrf.mxu0 }
 0x376   : > { %7198 = vst [vmem:[#allocation87_spill] sm:$0xff] %v5385_v44  ;;  %7199 = vst [vmem:[#allocation88_spill] sm:$0xff] %v5387_v36  ;;  %v1629_v41 = vmax.f32 %v5379_v40, %v5385_v44  ;;  %v1725_v49 = vmax.f32 %v5381_v38, %v5387_v36 }
 0x377   : > { %v5391_v47 = vpop.f32.mrf.mxu1  ;;  %v5393_v19 = vpop.f32.mrf.mxu0 }
 0x378   : > { %7200 = vst [vmem:[#allocation89_spill] sm:$0xff] %v5391_v47  ;;  %7201 = vst [vmem:[#allocation90_spill] sm:$0xff] %v5393_v19  ;;  %1627 = vmax.xlane.f32.xlu0 %v1626_v42  ;;  %1630 = vmax.xlane.f32.xlu1 %v1629_v41 }
 0x379   : > { %v5399_v39 = vpop.f32.mrf.mxu1  ;;  %v5401_v16 = vpop.f32.mrf.mxu0 }
 0x37a   : > { %7202 = vst [vmem:[#allocation91_spill] sm:$0xff] %v5399_v39  ;;  %7203 = vst [vmem:[#allocation92_spill] sm:$0xff] %v5401_v16  ;;  %v1632_v42 = vmax.f32 %v5391_v47, %v5399_v39 }
 0x37b   : > { %v5403_v46 = vpop.f32.mrf.mxu1  ;;  %v5405_v48 = vpop.f32.mrf.mxu0 }
 0x37c   : > { %7204 = vst [vmem:[#allocation93_spill] sm:$0xff] %v5403_v46  ;;  %7205 = vst [vmem:[#allocation94_spill] sm:$0xff] %v5405_v48  ;;  %1723 = vmax.xlane.f32.xlu0 %v1722_v33  ;;  %1726 = vmax.xlane.f32.xlu1 %v1725_v49  ;;  %v1728_v33 = vmax.f32 %v5393_v19, %v5401_v16 }
 0x37d   : > { %v5409_v41 = vpop.f32.mrf.mxu1  ;;  %v5411_v44 = vpop.f32.mrf.mxu0 }
 0x37e   : > { %7206 = vst [vmem:[#allocation95_spill] sm:$0xff] %v5409_v41  ;;  %7207 = vst [vmem:[#allocation96_spill] sm:$0xff] %v5411_v44  ;;  %v1635_v37 = vmax.f32 %v5403_v46, %v5409_v41  ;;  %v1731_v49 = vmax.f32 %v5405_v48, %v5411_v44 }
 0x37f   : > { %v5415_v34 = vpop.f32.mrf.mxu1  ;;  %v5417_v36 = vpop.f32.mrf.mxu0 }
 0x380   : > { %7208 = vst [vmem:[#allocation97_spill] sm:$0xff] %v5415_v34  ;;  %7209 = vst [vmem:[#allocation98_spill] sm:$0xff] %v5417_v36  ;;  %1633 = vmax.xlane.f32.xlu0 %v1632_v42  ;;  %1636 = vmax.xlane.f32.xlu1 %v1635_v37 }
 0x381   : > { %v5423_v39 = vpop.f32.mrf.mxu1  ;;  %v5425_v47 = vpop.f32.mrf.mxu0 }
 0x382   : > { %7210 = vst [vmem:[#allocation99_spill] sm:$0xff] %v5423_v39  ;;  %7211 = vst [vmem:[#allocation100_spill] sm:$0xff] %v5425_v47  ;;  %v1638_v42 = vmax.f32 %v5415_v34, %v5423_v39 }
 0x383   : > { %v5427_v38 = vpop.f32.mrf.mxu1  ;;  %v5429_v40 = vpop.f32.mrf.mxu0 }
 0x384   : > { %7212 = vst [vmem:[#allocation101_spill] sm:$0xff] %v5427_v38  ;;  %7213 = vst [vmem:[#allocation102_spill] sm:$0xff] %v5429_v40  ;;  %1729 = vmax.xlane.f32.xlu0 %v1728_v33  ;;  %1732 = vmax.xlane.f32.xlu1 %v1731_v49  ;;  %v1734_v33 = vmax.f32 %v5417_v36, %v5425_v47 }
 0x385   : > { %v5433_v37 = vpop.f32.mrf.mxu1  ;;  %v5435_v41 = vpop.f32.mrf.mxu0 }
 0x386   : > { %7214 = vst [vmem:[#allocation103_spill] sm:$0xff] %v5433_v37  ;;  %7215 = vst [vmem:[#allocation104_spill] sm:$0xff] %v5435_v41  ;;  %v1641_v16 = vmax.f32 %v5427_v38, %v5433_v37  ;;  %v1737_v49 = vmax.f32 %v5429_v40, %v5435_v41 }
 0x387   : > { %v5439_v19 = vpop.f32.mrf.mxu1  ;;  %v5441_v44 = vpop.f32.mrf.mxu0 }
 0x388   : > { %7216 = vst [vmem:[#allocation105_spill] sm:$0xff] %v5439_v19  ;;  %7217 = vst [vmem:[#allocation106_spill] sm:$0xff] %v5441_v44  ;;  %1639 = vmax.xlane.f32.xlu0 %v1638_v42  ;;  %1642 = vmax.xlane.f32.xlu1 %v1641_v16 }
 0x389   : > { %v5447_v39 = vpop.f32.mrf.mxu1  ;;  %v5449_v34 = vpop.f32.mrf.mxu0 }
 0x38a   : > { %7218 = vst [vmem:[#allocation107_spill] sm:$0xff] %v5447_v39  ;;  %7219 = vst [vmem:[#allocation108_spill] sm:$0xff] %v5449_v34  ;;  %v1644_v42 = vmax.f32 %v5439_v19, %v5447_v39  ;;  %v1740_v41 = vmax.f32 %v5441_v44, %v5449_v34  ;;  %v1713_v19 = vmax.f32 %v5333_v10, %v5337_v23 }
 0x38b   : > { %v5451_v48 = vpop.f32.mrf.mxu1  ;;  %v5453_v46 = vpop.f32.mrf.mxu0  ;;  %v1716_v34 = vmax.f32 %v5345_v45, %v5351_v35 }
 0x38c   : > { %7220 = vst [vmem:[#allocation109_spill] sm:$0xff] %v5451_v48  ;;  %7221 = vst [vmem:[#allocation110_spill] sm:$0xff] %v5453_v46  ;;  %1735 = vmax.xlane.f32.xlu0 %v1734_v33  ;;  %1738 = vmax.xlane.f32.xlu1 %v1737_v49 }
 0x38d   : > { %v5457_v16 = vpop.f32.mrf.mxu1  ;;  %v5459_v37 = vpop.f32.mrf.mxu0 }
 0x38e   : > { %7222 = vst [vmem:[#allocation111_spill] sm:$0xff] %v5457_v16  ;;  %7223 = vst [vmem:[#allocation112_spill] sm:$0xff] %v5459_v37  ;;  %v1647_v47 = vmax.f32 %v5451_v48, %v5457_v16  ;;  %v1743_v33 = vmax.f32 %v5453_v46, %v5459_v37 }
 0x38f   : > { %v5463_v36 = vpop.f32.mrf.mxu1  ;;  %v5471_v39 = vpop.f32.mrf.mxu0 }
 0x390   : > { %7224 = vst [vmem:[#allocation113_spill] sm:$0xff] %v5463_v36  ;;  %1645 = vmax.xlane.f32.xlu0 %v1644_v42  ;;  %1648 = vmax.xlane.f32.xlu1 %v1647_v47  ;;  %7226 = vst [vmem:[#allocation115_spill] sm:$0xff] %v5471_v39 }
 0x391   : > { %v5469_v49 = vpop.f32.mrf.mxu1  ;;  %v5477_v42 = vpop.f32.mrf.mxu0 }
 0x392   : > { %7225 = vst [vmem:[#allocation114_spill] sm:$0xff] %v5469_v49  ;;  %v1650_v40 = vmax.f32 %v5463_v36, %v5469_v49  ;;  %7227 = vst [vmem:[#allocation116_spill] sm:$0xff] %v5477_v42  ;;  %v1746_v47 = vmax.f32 %v5471_v39, %v5477_v42 }
 0x394   : > { %1741 = vmax.xlane.f32.xlu0 %v1740_v41  ;;  %1744 = vmax.xlane.f32.xlu1 %v1743_v33 }
 0x398   : > { %1714 = vmax.xlane.f32.xlu1 %v1713_v19  ;;  %1651 = vmax.xlane.f32.xlu0 %v1650_v40 }
 0x39c   : > { %1747 = vmax.xlane.f32.xlu0 %v1746_v47 }
 0x3a0   : > { %1717 = vmax.xlane.f32.xlu0 %v1716_v34 }
 0x3b1   : > { %v5483_v41 = vpop.xlane.xlu1 %1570 }
 0x3b5   : > { %v5485_v33 = vpop.xlane.xlu0 %1573 }
 0x3b6   : > { %7228 = vst [vmem:[#allocation117_spill] sm:$0xff] %v5485_v33 }
 0x3b9   : > { %v5487_v23 = vpop.xlane.xlu1 %1576 }
 0x3bd   : > { %v5489_v10 = vpop.xlane.xlu1 %1672  ;;  %v5491_v44 = vpop.xlane.xlu0 %1579 }
 0x3c1   : > { %v5493_v19 = vpop.xlane.xlu0 %1675  ;;  %v5495_v40 = vpop.xlane.xlu1 %1582 }
 0x3c5   : > { %v5497_v42 = vpop.xlane.xlu1 %1678  ;;  %v5499_v47 = vpop.xlane.xlu0 %1585 }
 0x3c9   : > { %v5501_v35 = vpop.xlane.xlu0 %1681  ;;  %v1589_v34 = vpop.xlane.xlu1 %1588 }
 0x3cd   : > { %v1685_v45 = vpop.xlane.xlu1 %1684  ;;  %v1592_v39 = vpop.xlane.xlu0 %1591 }
 0x3ce   : > { %v1759_v49 = vmax.f32 %v1589_v34, %v1685_v45 }
 0x3d0   : > { %v1801_v36 = vsub.f32 %v5213_v4, %v1759_v49  ;;  %v1802_v38 = vsub.f32 %v5217_v59, %v1759_v49  ;;  %v1993_v37 = vsub.f32 %v5215_v1, %v1759_v49  ;;  %v1994_v53 = vsub.f32 %v5219_v22, %v1759_v49 }
 0x3d1   : > { %v1688_v46 = vpop.xlane.xlu0 %1687  ;;  %v1595_v16 = vpop.xlane.xlu1 %1594 }
 0x3d2   : > { %v1760_v48 = vmax.f32 %v1592_v39, %v1688_v46  ;;  %v1885_v60 = vmul.f32 1.442695, %v1801_v36  ;;  %v1887_v52 = vmul.f32 1.442695, %v1802_v38  ;;  %v2077_v54 = vmul.f32 1.442695, %v1993_v37 }
 0x3d3   : > { %v2079_v1 = vmul.f32 1.442695, %v1994_v53 }
 0x3d4   : > { %v1803_v33 = vsub.f32 %v5225_v61, %v1760_v48  ;;  %v1804_v57 = vsub.f32 %v5229_v58, %v1760_v48  ;;  %4313 = vpow2.f32 %v1885_v60  ;;  %v1995_v24 = vsub.f32 %v5227_v55, %v1760_v48 }
 0x3d5   : > { %v1691_v43 = vpop.xlane.xlu1 %1690  ;;  %v1598_v45 = vpop.xlane.xlu0 %1597  ;;  %4315 = vpow2.f32 %v1887_v52  ;;  %v1996_v36 = vsub.f32 %v5231_v28, %v1760_v48 }
 0x3d6   : > { %v1889_v4 = vmul.f32 1.442695, %v1803_v33  ;;  %v1891_v34 = vmul.f32 1.442695, %v1804_v57  ;;  %v1761_v59 = vmax.f32 %v1595_v16, %v1691_v43  ;;  %4317 = vpow2.f32 %v2077_v54 }
 0x3d7   : > { %v2081_v61 = vmul.f32 1.442695, %v1995_v24  ;;  %v2083_v60 = vmul.f32 1.442695, %v1996_v36 }
 0x3d8   : > { %4319 = vpow2.f32 %v1889_v4  ;;  %v1805_v38 = vsub.f32 %v5237_v7, %v1761_v59  ;;  %v1806_v58 = vsub.f32 %v5241_v6, %v1761_v59  ;;  %v1997_v43 = vsub.f32 %v5239_v12, %v1761_v59 }
 0x3d9   : > { %v1694_v39 = vpop.xlane.xlu0 %1693  ;;  %4321 = vpow2.f32 %v1891_v34  ;;  %v1998_v7 = vsub.f32 %v5243_v0, %v1761_v59 }
 0x3da   : > { %4323 = vpow2.f32 %v2079_v1  ;;  %v1762_v46 = vmax.f32 %v1598_v45, %v1694_v39  ;;  %v1893_v22 = vmul.f32 1.442695, %v1805_v38  ;;  %v1895_v28 = vmul.f32 1.442695, %v1806_v58 }
 0x3db   : > { %4325 = vpow2.f32 %v2081_v61  ;;  %v2085_v37 = vmul.f32 1.442695, %v1997_v43 }
 0x3dc   : > { %v1807_v52 = vsub.f32 %v5249_v51, %v1762_v46  ;;  %v1808_v55 = vsub.f32 %v5253_v50, %v1762_v46  ;;  %v1999_v6 = vsub.f32 %v5251_v56, %v1762_v46  ;;  %4327 = vpow2.f32 %v2083_v60 }
 0x3dd   : > { %v1601_v53 = vpop.xlane.xlu0 %1600  ;;  %v1604_v48 = vpop.xlane.xlu1 %1603  ;;  %v2000_v54 = vsub.f32 %v5255_v63, %v1762_v46  ;;  %4329 = vpow2.f32 %v1893_v22  ;;  %v2087_v50 = vmul.f32 1.442695, %v1998_v7 }
 0x3de   : > { %v1897_v57 = vmul.f32 1.442695, %v1807_v52  ;;  %v1899_v24 = vmul.f32 1.442695, %v1808_v55  ;;  %4331 = vpow2.f32 %v1895_v28  ;;  %v2089_v0 = vmul.f32 1.442695, %v1999_v6 }
 0x3df   : > { %v2091_v56 = vmul.f32 1.442695, %v2000_v54 }
 0x3e0   : > { %4333 = vpow2.f32 %v1897_v57 }
 0x3e1   : > { %v1697_v12 = vpop.xlane.xlu0 %1696  ;;  %v5519_v16 = vpop.xlane.xlu1 %1666  ;;  %4335 = vpow2.f32 %v1899_v24  ;;  %v1757_v24 = vmax.f32 %v5495_v40, %v5497_v42 }
 0x3e2   : > { %v1763_v51 = vmax.f32 %v1601_v53, %v1697_v12  ;;  %v5521_v49 = vpop.eup %4313  ;;  %4337 = vpow2.f32 %v2085_v37 }
 0x3e3   : > { %7229 = vst [vmem:[#allocation118_spill] sm:$0xff] %v5521_v49  ;;  %v5523_v33 = vpop.eup %4315  ;;  %4339 = vpow2.f32 %v2087_v50  ;;  %v1797_v42 = vsub.f32 %v5189_v29, %v1757_v24  ;;  %v1758_v29 = vmax.f32 %v5499_v47, %v5501_v35  ;;  %v1990_v47 = vsub.f32 %v5195_v17, %v1757_v24 }
 0x3e4   : > { %7230 = vst [vmem:[#allocation119_spill] sm:$0xff] %v5523_v33  ;;  %v1809_v45 = vsub.f32 %v5261_v32, %v1763_v51  ;;  %v1810_v63 = vsub.f32 %v5265_v31, %v1763_v51  ;;  %v5527_v4 = vpop.eup %4317  ;;  %v2001_v34 = vsub.f32 %v5263_v9, %v1763_v51  ;;  %v2002_v58 = vsub.f32 %v5267_v62, %v1763_v51 }
 0x3e5   : > { %7231 = vst [vmem:[#allocation120_spill] sm:$0xff] %v5527_v4  ;;  %v1700_v59 = vpop.xlane.xlu0 %1699  ;;  %v5530_v1 = vpop.xlane.xlu1 %1564  ;;  %4341 = vpow2.f32 %v2089_v0  ;;  %v2195_v31 = vadd.f32 %v5523_v33, %v5521_v49  ;;  %v2071_v17 = vmul.f32 1.442695, %v1990_v47  ;;  %v7253_v49 = vld [vmem:[#allocation65_spill] sm:$0xff]  ;;  %v7261_v33 = vld [vmem:[#allocation66_spill] sm:$0xff] }
 0x3e6   : > { %v5532_v36 = vpop.eup %4319  ;;  %v1901_v38 = vmul.f32 1.442695, %v1809_v45  ;;  %v1903_v39 = vmul.f32 1.442695, %v1810_v63  ;;  %4343 = vpow2.f32 %v2091_v56  ;;  %v1764_v9 = vmax.f32 %v1604_v48, %v1700_v59 }
 0x3e7   : > { %7232 = vst [vmem:[#allocation121_spill] sm:$0xff] %v5532_v36  ;;  %v5535_v61 = vpop.eup %4321  ;;  %v2093_v46 = vmul.f32 1.442695, %v2001_v34  ;;  %2196 = vadd.xlane.f32.xlu1 %v2195_v31  ;;  %v2095_v62 = vmul.f32 1.442695, %v2002_v58  ;;  %v1798_v45 = vsub.f32 %v5193_v3, %v1757_v24  ;;  %v1989_v31 = vsub.f32 %v5191_v30, %v1757_v24 }
 0x3e8   : > { %7233 = vst [vmem:[#allocation122_spill] sm:$0xff] %v5535_v61  ;;  %v5539_v32 = vpop.eup %4323  ;;  %4345 = vpow2.f32 %v1901_v38  ;;  %v2198_v60 = vadd.f32 %v5535_v61, %v5532_v36  ;;  %v1811_v52 = vsub.f32 %v5271_v8, %v1764_v9  ;;  %v1812_v55 = vsub.f32 %v5275_v5, %v1764_v9 }
 0x3e9   : > { %7234 = vst [vmem:[#allocation123_spill] sm:$0xff] %v5539_v32  ;;  %v5543_v22 = vpop.xlane.xlu0 %1669  ;;  %v5545_v43 = vpop.xlane.xlu1 %1660  ;;  %4347 = vpow2.f32 %v1903_v39  ;;  %v2003_v53 = vsub.f32 %v5273_v15, %v1764_v9  ;;  %v2291_v48 = vadd.f32 %v5539_v32, %v5527_v4  ;;  %v2004_v57 = vsub.f32 %v5277_v26, %v1764_v9 }
 0x3ea   : > { %2199 = vadd.xlane.f32.xlu0 %v2198_v60  ;;  %v5552_v28 = vpop.eup %4325  ;;  %v1905_v7 = vmul.f32 1.442695, %v1811_v52  ;;  %4349 = vpow2.f32 %v2093_v46  ;;  %v1907_v8 = vmul.f32 1.442695, %v1812_v55  ;;  %v1877_v58 = vmul.f32 1.442695, %v1797_v42 }
 0x3eb   : > { %7235 = vst [vmem:[#allocation124_spill] sm:$0xff] %v5552_v28  ;;  %v5555_v6 = vpop.eup %4327  ;;  %2292 = vadd.xlane.f32.xlu1 %v2291_v48  ;;  %4351 = vpow2.f32 %v2095_v62  ;;  %v2097_v12 = vmul.f32 1.442695, %v2003_v53  ;;  %v2099_v26 = vmul.f32 1.442695, %v2004_v57  ;;  %v1799_v55 = vsub.f32 %v5201_v14, %v1758_v29 }
 0x3ec   : > { %7236 = vst [vmem:[#allocation125_spill] sm:$0xff] %v5555_v6  ;;  %v5563_v54 = vpop.eup %4329  ;;  %4353 = vpow2.f32 %v1905_v7  ;;  %v2294_v34 = vadd.f32 %v5555_v6, %v5552_v28  ;;  %v1879_v35 = vmul.f32 1.442695, %v1798_v45  ;;  %v1800_v53 = vsub.f32 %v5205_v2, %v1758_v29 }
 0x3ed   : > { %v5559_v5 = vpop.xlane.xlu0 %1567  ;;  %v5561_v15 = vpop.xlane.xlu1 %1558  ;;  %7237 = vst [vmem:[#allocation126_spill] sm:$0xff] %v5563_v54  ;;  %4355 = vpow2.f32 %v1907_v8  ;;  %v2069_v30 = vmul.f32 1.442695, %v1989_v31  ;;  %v1881_v2 = vmul.f32 1.442695, %v1799_v55  ;;  %v1992_v45 = vsub.f32 %v5207_v27, %v1758_v29 }
 0x3ee   : > { %v5565_v37 = vpop.eup %4331  ;;  %4357 = vpow2.f32 %v2097_v12  ;;  %2295 = vadd.xlane.f32.xlu0 %v2294_v34  ;;  %v1991_v12 = vsub.f32 %v5203_v13, %v1758_v29  ;;  %v1883_v42 = vmul.f32 1.442695, %v1800_v53  ;;  %v1756_v53 = vmax.f32 %v5491_v44, %v5493_v19 }
 0x3ef   : > { %7238 = vst [vmem:[#allocation127_spill] sm:$0xff] %v5565_v37  ;;  %v5567_v50 = vpop.eup %4333  ;;  %v2201_v63 = vadd.f32 %v5565_v37, %v5563_v54  ;;  %4359 = vpow2.f32 %v2099_v26  ;;  %v1755_v26 = vmax.f32 %v5487_v23, %v5489_v10  ;;  %v2075_v29 = vmul.f32 1.442695, %v1992_v45 }
 0x3f0   : > { %7239 = vst [vmem:[#allocation128_spill] sm:$0xff] %v5567_v50  ;;  %v5569_v51 = vpop.eup %4335  ;;  %4361 = vpow2.f32 %v1877_v58  ;;  %v2073_v10 = vmul.f32 1.442695, %v1991_v12 }
 0x3f1   : > { %v5572_v40 = vpop.xlane.xlu0 %1663  ;;  %v5574_v0 = vpop.xlane.xlu1 %1654  ;;  %2202 = vadd.xlane.f32.xlu1 %v2201_v63  ;;  %v2204_v3 = vadd.f32 %v5569_v51, %v5567_v50  ;;  %4363 = vpow2.f32 %v1879_v35  ;;  %v1793_v27 = vsub.f32 %v5167_v18, %v1755_v26  ;;  %v1794_v47 = vsub.f32 %v5171_v20, %v1755_v26  ;;  %v7260_v50 = vld [vmem:[#allocation68_spill] sm:$0xff] }
 0x3f2   : > { %v5576_v56 = vpop.eup %4337  ;;  %4365 = vpow2.f32 %v2069_v30  ;;  %v1611_v18 = vmax.f32 %v5307_v25, %v5311_v21 }
 0x3f3   : > { %7240 = vst [vmem:[#allocation129_spill] sm:$0xff] %v5576_v56  ;;  %v5583_v59 = vpop.eup %4339  ;;  %2205 = vadd.xlane.f32.xlu0 %v2204_v3  ;;  %4367 = vpow2.f32 %v2071_v17  ;;  %v1869_v30 = vmul.f32 1.442695, %v1793_v27  ;;  %v7244_v17 = vld [vmem:[#allocation50_spill] sm:$0xff]  ;;  %v1871_v20 = vmul.f32 1.442695, %v1794_v47 }
 0x3f4   : > { %v5587_v38 = vpop.eup %4341  ;;  %v2297_v62 = vadd.f32 %v5583_v59, %v5576_v56  ;;  %4369 = vpow2.f32 %v1881_v2  ;;  %v7245_v2 = vld [vmem:[#allocation51_spill] sm:$0xff]  ;;  %v7248_v27 = vld [vmem:[#allocation64_spill] sm:$0xff]  ;;  %v7250_v47 = vld [vmem:[#allocation54_spill] sm:$0xff]  ;;  %v1710_v56 = vmax.f32 %v7261_v33, %v7260_v50 }
 0x3f5   : > { %7241 = vst [vmem:[#allocation130_spill] sm:$0xff] %v5587_v38  ;;  %v5591_v39 = vpop.eup %4343  ;;  %v5594_v9 = vpop.xlane.xlu0 %1561  ;;  %4371 = vpow2.f32 %v1883_v42  ;;  %v1986_v12 = vsub.f32 %v7245_v2, %v1755_v26  ;;  %v1753_v42 = vmax.f32 %v5483_v41, %v5519_v16  ;;  %v7251_v41 = vld [vmem:[#allocation53_spill] sm:$0xff]  ;;  %v7252_v2 = vld [vmem:[#allocation67_spill] sm:$0xff] }
 0x3f6   : > { %v5596_v46 = vpop.xlane.xlu1 %1618  ;;  %v5598_v60 = vpop.eup %4345  ;;  %2298 = vadd.xlane.f32.xlu1 %v2297_v62  ;;  %v2300_v24 = vadd.f32 %v5591_v39, %v5587_v38  ;;  %4373 = vpow2.f32 %v2073_v10  ;;  %v1987_v16 = vsub.f32 %v7251_v41, %v1756_v53  ;;  %v1614_v4 = vmax.f32 %v7253_v49, %v7252_v2 }
 0x3f7   : > { %7242 = vst [vmem:[#allocation131_spill] sm:$0xff] %v5598_v60  ;;  %v5603_v52 = vpop.eup %4347  ;;  %4375 = vpow2.f32 %v2075_v29  ;;  %v1707_v29 = vmax.f32 %v7248_v27, %v5313_v11 }
 0x3f8   : > { %v5611_v57 = vpop.eup %4349  ;;  %v2207_v14 = vadd.f32 %v5603_v52, %v5598_v60  ;;  %2301 = vadd.xlane.f32.xlu0 %v2300_v24  ;;  %v1985_v24 = vsub.f32 %v7244_v17, %v1755_v26  ;;  %v1796_v26 = vsub.f32 %v7250_v47, %v1756_v53  ;;  %4377 = vpow2.f32 %v1869_v30  ;;  %v7256_v47 = vld [vmem:[#allocation44_spill] sm:$0xff] }
 0x3f9   : > { %v5607_v48 = vpop.xlane.xlu0 %1657  ;;  %v5617_v8 = vpop.eup %4351  ;;  %4379 = vpow2.f32 %v1871_v20  ;;  %v1790_v30 = vsub.f32 %v7256_v47, %v1753_v42  ;;  %v7263_v47 = vld [vmem:[#allocation43_spill] sm:$0xff] }
 0x3fa   : > { %v5609_v7 = vpop.xlane.xlu1 %1624  ;;  %2208 = vadd.xlane.f32.xlu1 %v2207_v14  ;;  %v5623_v63 = vpop.eup %4353  ;;  %v2303_v13 = vadd.f32 %v5617_v8, %v5611_v57  ;;  %v2061_v17 = vmul.f32 1.442695, %v1985_v24  ;;  %v7257_v24 = vld [vmem:[#allocation117_spill] sm:$0xff]  ;;  %v1981_v6 = vsub.f32 %v7263_v47, %v1753_v42 }
 0x3fb   : > { %7243 = vst [vmem:[#allocation132_spill] sm:$0xff] %v5623_v63  ;;  %v5629_v58 = vpop.eup %4355  ;;  %v5678_v41 = vmax.f32 %v7257_v24, %v5543_v22  ;;  %v7265_v24 = vld [vmem:[#allocation45_spill] sm:$0xff] }
 0x3fc   : > { %v5633_v23 = vpop.eup %4357  ;;  %v2210_v31 = vadd.f32 %v5629_v58, %v5623_v63  ;;  %4381 = vpow2.f32 %v2061_v17  ;;  %v1863_v17 = vmul.f32 1.442695, %v1790_v30 }
 0x3fd   : > { %v5625_v34 = vpop.xlane.xlu0 %1621  ;;  %v5638_v35 = vpop.eup %4359 }
 0x3fe   : > { %v5627_v3 = vpop.xlane.xlu1 %1720  ;;  %2304 = vadd.xlane.f32.xlu1 %v2303_v13  ;;  %2211 = vadd.xlane.f32.xlu0 %v2210_v31  ;;  %v2306_v14 = vadd.f32 %v5638_v35, %v5633_v23  ;;  %v5655_v45 = vpop.eup %4361  ;;  %v7247_v13 = vld [vmem:[#allocation52_spill] sm:$0xff] }
 0x3ff   : > { %7246 = vst [vmem:[#allocation50_spill] sm:$0xff] %v5655_v45  ;;  %v1795_v10 = vsub.f32 %v7247_v13, %v1756_v53  ;;  %v2063_v13 = vmul.f32 1.442695, %v1986_v12 }
 0x401   : > { %v1628_v62 = vpop.xlane.xlu0 %1627  ;;  %v1873_v54 = vmul.f32 1.442695, %v1795_v10  ;;  %v2065_v10 = vmul.f32 1.442695, %v1987_v16  ;;  %4383 = vpow2.f32 %v2063_v13  ;;  %v7266_v16 = vld [vmem:[#allocation46_spill] sm:$0xff]  ;;  %v7267_v13 = vld [vmem:[#allocation48_spill] sm:$0xff] }
 0x402   : > { %v5641_v55 = vpop.xlane.xlu1 %1630  ;;  %1612 = vmax.xlane.f32.xlu1 %v1611_v18  ;;  %2307 = vadd.xlane.f32.xlu0 %v2306_v14  ;;  %v5662_v18 = vpop.eup %4363  ;;  %v7254_v14 = vld [vmem:[#allocation42_spill] sm:$0xff]  ;;  %v1791_v47 = vsub.f32 %v7266_v16, %v5678_v41 }
 0x403   : > { %7249 = vst [vmem:[#allocation51_spill] sm:$0xff] %v5662_v18  ;;  %v1789_v36 = vsub.f32 %v7254_v14, %v1753_v42  ;;  %v2189_v20 = vadd.f32 %v5662_v18, %v5655_v45  ;;  %v7259_v14 = vld [vmem:[#allocation55_spill] sm:$0xff]  ;;  %4385 = vpow2.f32 %v1873_v54 }
 0x404   : > { %v1988_v61 = vsub.f32 %v7259_v14, %v1756_v53  ;;  %v1982_v53 = vsub.f32 %v7265_v24, %v1753_v42  ;;  %v2053_v42 = vmul.f32 1.442695, %v1981_v6  ;;  %v7269_v24 = vld [vmem:[#allocation34_spill] sm:$0xff]  ;;  %v1865_v6 = vmul.f32 1.442695, %v1791_v47 }
 0x405   : > { %v1724_v44 = vpop.xlane.xlu0 %1723 }
 0x406   : > { %v5653_v19 = vpop.xlane.xlu1 %1726  ;;  %v5660_v31 = vmax.f32 %v1628_v62, %v1724_v44  ;;  %1708 = vmax.xlane.f32.xlu1 %v1707_v29  ;;  %v5673_v44 = vpop.eup %4365  ;;  %1615 = vmax.xlane.f32.xlu0 %v1614_v4  ;;  %v1875_v29 = vmul.f32 1.442695, %v1796_v26  ;;  %v5692_v4 = vmax.f32 %v5530_v1, %v5545_v43  ;;  %v1861_v26 = vmul.f32 1.442695, %v1789_v36 }
 0x407   : > { %7255 = vst [vmem:[#allocation52_spill] sm:$0xff] %v5673_v44  ;;  %v5682_v12 = vpop.eup %4367  ;;  %v2067_v43 = vmul.f32 1.442695, %v1988_v61  ;;  %v1792_v36 = vsub.f32 %v7267_v13, %v5678_v41  ;;  %v2055_v16 = vmul.f32 1.442695, %v1982_v53  ;;  %v7271_v61 = vld [vmem:[#allocation36_spill] sm:$0xff] }
 0x408   : > { %7258 = vst [vmem:[#allocation64_spill] sm:$0xff] %v5682_v12  ;;  %v5687_v32 = vpop.eup %4369  ;;  %v2285_v1 = vadd.f32 %v5682_v12, %v5673_v44  ;;  %4387 = vpow2.f32 %v1875_v29  ;;  %v1785_v54 = vsub.f32 %v7269_v24, %v5692_v4  ;;  %v1786_v29 = vsub.f32 %v7271_v61, %v5692_v4  ;;  %v7273_v24 = vld [vmem:[#allocation56_spill] sm:$0xff]  ;;  %v7275_v53 = vld [vmem:[#allocation49_spill] sm:$0xff] }
 0x409   : > { %v5669_v28 = vpop.xlane.xlu0 %1633  ;;  %7262 = vst [vmem:[#allocation54_spill] sm:$0xff] %v5687_v32  ;;  %v5694_v22 = vpop.eup %4371  ;;  %4389 = vpow2.f32 %v2065_v10  ;;  %v7272_v10 = vld [vmem:[#allocation58_spill] sm:$0xff]  ;;  %v1867_v18 = vmul.f32 1.442695, %v1792_v36  ;;  %v1984_v61 = vsub.f32 %v7275_v53, %v5678_v41  ;;  %v7277_v36 = vld [vmem:[#allocation35_spill] sm:$0xff] }
 0x40a   : > { %v5671_v62 = vpop.xlane.xlu1 %1636  ;;  %2190 = vadd.xlane.f32.xlu1 %v2189_v20  ;;  %7264 = vst [vmem:[#allocation53_spill] sm:$0xff] %v5694_v22  ;;  %1711 = vmax.xlane.f32.xlu0 %v1710_v56  ;;  %v5707_v20 = vpop.eup %4373  ;;  %v2192_v30 = vadd.f32 %v5694_v22, %v5687_v32  ;;  %4391 = vpow2.f32 %v1861_v26  ;;  %v7274_v32 = vld [vmem:[#allocation47_spill] sm:$0xff]  ;;  %v5727_v26 = vmax.f32 %v5559_v5, %v5572_v40  ;;  %v1853_v22 = vmul.f32 1.442695, %v1785_v54  ;;  %v7279_v54 = vld [vmem:[#allocation37_spill] sm:$0xff] }
 0x40b   : > { %7268 = vst [vmem:[#allocation67_spill] sm:$0xff] %v5707_v20  ;;  %v5713_v56 = vpop.eup %4375  ;;  %4393 = vpow2.f32 %v1863_v17  ;;  %v1983_v12 = vsub.f32 %v7274_v32, %v5678_v41  ;;  %v1977_v32 = vsub.f32 %v7277_v36, %v5692_v4  ;;  %v5739_v5 = vmax.f32 %v5561_v15, %v5574_v0  ;;  %v7282_v36 = vld [vmem:[#allocation38_spill] sm:$0xff] }
 0x40c   : > { %7270 = vst [vmem:[#allocation65_spill] sm:$0xff] %v5713_v56  ;;  %4395 = vpow2.f32 %v2067_v43  ;;  %v2288_v17 = vadd.f32 %v5713_v56, %v5707_v20  ;;  %v5733_v47 = vpop.eup %4377  ;;  %v1855_v43 = vmul.f32 1.442695, %v1786_v29  ;;  %v7281_v29 = vld [vmem:[#allocation57_spill] sm:$0xff]  ;;  %v1787_v15 = vsub.f32 %v7282_v36, %v5727_v26  ;;  %v7283_v0 = vld [vmem:[#allocation62_spill] sm:$0xff]  ;;  %v7284_v20 = vld [vmem:[#allocation60_spill] sm:$0xff] }
 0x40d   : > { %v5697_v14 = vpop.xlane.xlu0 %1729  ;;  %4397 = vpow2.f32 %v2053_v42  ;;  %7276 = vst [vmem:[#allocation42_spill] sm:$0xff] %v5733_v47  ;;  %v5745_v41 = vpop.eup %4379  ;;  %v2057_v53 = vmul.f32 1.442695, %v1983_v12  ;;  %v1608_v56 = vmax.f32 %v7284_v20, %v7283_v0  ;;  %v2059_v38 = vmul.f32 1.442695, %v1984_v61  ;;  %v7288_v61 = vld [vmem:[#allocation28_spill] sm:$0xff] }
 0x40e   : > { %v5699_v45 = vpop.xlane.xlu1 %1732  ;;  %2286 = vadd.xlane.f32.xlu1 %v2285_v1  ;;  %2193 = vadd.xlane.f32.xlu0 %v2192_v30  ;;  %v1605_v1 = vmax.f32 %v7273_v24, %v7272_v10  ;;  %4399 = vpow2.f32 %v2055_v16  ;;  %7278 = vst [vmem:[#allocation44_spill] sm:$0xff] %v5745_v41  ;;  %v1978_v30 = vsub.f32 %v7279_v54, %v5692_v4  ;;  %v7280_v16 = vld [vmem:[#allocation59_spill] sm:$0xff]  ;;  %v7285_v10 = vld [vmem:[#allocation40_spill] sm:$0xff]  ;;  %v5757_v24 = vpop.eup %4381  ;;  %v2045_v4 = vmul.f32 1.442695, %v1977_v32 }
 0x40f   : > { %4401 = vpow2.f32 %v1865_v6  ;;  %v1788_v6 = vsub.f32 %v7285_v10, %v5727_v26  ;;  %7286 = vst [vmem:[#allocation117_spill] sm:$0xff] %v5757_v24  ;;  %v5763_v36 = vpop.eup %4383  ;;  %v2183_v10 = vadd.f32 %v5745_v41, %v5733_v47  ;;  %v7290_v32 = vld [vmem:[#allocation39_spill] sm:$0xff]  ;;  %v5775_v0 = vmax.f32 %v5594_v9, %v5607_v48  ;;  %v7293_v47 = vld [vmem:[#allocation41_spill] sm:$0xff] }
 0x410   : > { %4403 = vpow2.f32 %v1867_v18  ;;  %v1980_v41 = vsub.f32 %v7293_v47, %v5727_v26 }
 0x411   : > { %v5717_v44 = vpop.xlane.xlu0 %1639  ;;  %4405 = vpow2.f32 %v1853_v22  ;;  %v1782_v22 = vsub.f32 %v7288_v61, %v5739_v5 }
 0x412   : > { %v5719_v13 = vpop.xlane.xlu1 %1642  ;;  %1606 = vmax.xlane.f32.xlu1 %v1605_v1  ;;  %2289 = vadd.xlane.f32.xlu0 %v2288_v17  ;;  %v1701_v1 = vmax.f32 %v7281_v29, %v7280_v16  ;;  %4407 = vpow2.f32 %v1855_v43  ;;  %v7287_v17 = vld [vmem:[#allocation26_spill] sm:$0xff]  ;;  %v2047_v16 = vmul.f32 1.442695, %v1978_v30  ;;  %v1857_v43 = vmul.f32 1.442695, %v1787_v15  ;;  %v7291_v30 = vld [vmem:[#allocation63_spill] sm:$0xff] }
 0x413   : > { %v1781_v18 = vsub.f32 %v7287_v17, %v5739_v5  ;;  %4409 = vpow2.f32 %v2057_v53  ;;  %v1979_v17 = vsub.f32 %v7290_v32, %v5727_v26  ;;  %v7292_v29 = vld [vmem:[#allocation61_spill] sm:$0xff]  ;;  %v7295_v32 = vld [vmem:[#allocation27_spill] sm:$0xff]  ;;  %v2279_v26 = vadd.f32 %v5763_v36, %v5757_v24 }
 0x414   : > { %v1704_v61 = vmax.f32 %v7292_v29, %v7291_v30  ;;  %4411 = vpow2.f32 %v2059_v38  ;;  %v1973_v37 = vsub.f32 %v7295_v32, %v5739_v5  ;;  %v1847_v30 = vmul.f32 1.442695, %v1782_v22  ;;  %v7297_v38 = vld [vmem:[#allocation29_spill] sm:$0xff]  ;;  %v7300_v22 = vld [vmem:[#allocation32_spill] sm:$0xff] }
 0x415   : > { %v5741_v40 = vpop.xlane.xlu0 %1735  ;;  %4413 = vpow2.f32 %v2045_v4  ;;  %v1845_v15 = vmul.f32 1.442695, %v1781_v18  ;;  %v2049_v4 = vmul.f32 1.442695, %v1979_v17  ;;  %v7299_v18 = vld [vmem:[#allocation30_spill] sm:$0xff]  ;;  %v1784_v60 = vsub.f32 %v7300_v22, %v5775_v0  ;;  %v7301_v17 = vld [vmem:[#allocation109_spill] sm:$0xff] }
 0x416   : > { %v5743_v42 = vpop.xlane.xlu1 %1738  ;;  %1702 = vmax.xlane.f32.xlu1 %v1701_v1  ;;  %1609 = vmax.xlane.f32.xlu0 %v1608_v56  ;;  %v5769_v1 = vpop.eup %4385  ;;  %v1859_v56 = vmul.f32 1.442695, %v1788_v6  ;;  %4415 = vpow2.f32 %v2047_v16  ;;  %v1974_v6 = vsub.f32 %v7297_v38, %v5739_v5  ;;  %v2051_v16 = vmul.f32 1.442695, %v1980_v41  ;;  %v7302_v41 = vld [vmem:[#allocation111_spill] sm:$0xff] }
 0x417   : > { %7289 = vst [vmem:[#allocation55_spill] sm:$0xff] %v5769_v1  ;;  %v5777_v20 = vpop.eup %4387  ;;  %4417 = vpow2.f32 %v1857_v43  ;;  %v2037_v43 = vmul.f32 1.442695, %v1973_v37 }
 0x418   : > { %v5783_v53 = vpop.eup %4389  ;;  %4419 = vpow2.f32 %v1859_v56  ;;  %v2186_v5 = vadd.f32 %v5777_v20, %v5769_v1 }
 0x419   : > { %v5761_v12 = vpop.xlane.xlu0 %1645  ;;  %7294 = vst [vmem:[#allocation68_spill] sm:$0xff] %v5783_v53  ;;  %v5789_v63 = vpop.eup %4391  ;;  %4421 = vpow2.f32 %v1845_v15  ;;  %v7304_v15 = vld [vmem:[#allocation31_spill] sm:$0xff] }
 0x41a   : > { %v1649_v54 = vpop.xlane.xlu1 %1648  ;;  %2184 = vadd.xlane.f32.xlu1 %v2183_v10  ;;  %7296 = vst [vmem:[#allocation66_spill] sm:$0xff] %v5789_v63  ;;  %1705 = vmax.xlane.f32.xlu0 %v1704_v61  ;;  %v5795_v47 = vpop.eup %4393  ;;  %v1783_v10 = vsub.f32 %v7299_v18, %v5775_v0  ;;  %4423 = vpow2.f32 %v1847_v30  ;;  %v1975_v37 = vsub.f32 %v7304_v15, %v5775_v0  ;;  %v1851_v30 = vmul.f32 1.442695, %v1784_v60  ;;  %v7307_v15 = vld [vmem:[#allocation110_spill] sm:$0xff] }
 0x41b   : > { %7298 = vst [vmem:[#allocation43_spill] sm:$0xff] %v5795_v47  ;;  %v5799_v29 = vpop.eup %4395  ;;  %4425 = vpow2.f32 %v2049_v4 }
 0x41c   : > { %v5805_v61 = vpop.eup %4397  ;;  %v1849_v22 = vmul.f32 1.442695, %v1783_v10  ;;  %4427 = vpow2.f32 %v2051_v16  ;;  %v7309_v16 = vld [vmem:[#allocation112_spill] sm:$0xff] }
 0x41d   : > { %v5787_v9 = vpop.xlane.xlu0 %1741  ;;  %v5808_v18 = vpop.eup %4399  ;;  %4429 = vpow2.f32 %v2037_v43 }
 0x41e   : > { %v1745_v48 = vpop.xlane.xlu1 %1744  ;;  %2280 = vadd.xlane.f32.xlu1 %v2279_v26  ;;  %2187 = vadd.xlane.f32.xlu0 %v2186_v5  ;;  %v5813_v26 = vpop.eup %4401 }
 0x41f   : > { %v1779_v32 = vmax.f32 %v1649_v54, %v1745_v48  ;;  %v2039_v54 = vmul.f32 1.442695, %v1974_v6  ;;  %v2177_v48 = vadd.f32 %v5795_v47, %v5789_v63  ;;  %7303 = vst [vmem:[#allocation45_spill] sm:$0xff] %v5813_v26  ;;  %v5821_v1 = vpop.eup %4403  ;;  %v7305_v6 = vld [vmem:[#allocation33_spill] sm:$0xff] }
 0x420   : > { %v1976_v5 = vsub.f32 %v7305_v6, %v5775_v0  ;;  %v5827_v4 = vpop.eup %4405  ;;  %v2273_v0 = vadd.f32 %v5808_v18, %v5805_v61  ;;  %v7310_v6 = vld [vmem:[#allocation101_spill] sm:$0xff] }
 0x421   : > { %v1841_v38 = vsub.f32 %v7301_v17, %v1779_v32  ;;  %v1652_v24 = vpop.xlane.xlu0 %1651  ;;  %v1842_v56 = vsub.f32 %v7302_v41, %v1779_v32  ;;  %v5819_v17 = vmax.f32 %v5719_v13, %v5743_v42  ;;  %v2282_v41 = vadd.f32 %v5799_v29, %v5783_v53  ;;  %7306 = vst [vmem:[#allocation46_spill] sm:$0xff] %v5827_v4  ;;  %v5830_v13 = vpop.eup %4407 }
 0x422   : > { %2178 = vadd.xlane.f32.xlu1 %v2177_v48  ;;  %v2033_v63 = vsub.f32 %v7307_v15, %v1779_v32  ;;  %7308 = vst [vmem:[#allocation48_spill] sm:$0xff] %v5830_v13  ;;  %4431 = vpow2.f32 %v2039_v54  ;;  %v2034_v60 = vsub.f32 %v7309_v16, %v1779_v32  ;;  %v2041_v48 = vmul.f32 1.442695, %v1975_v37  ;;  %v5837_v43 = vpop.eup %4409  ;;  %v7311_v32 = vld [vmem:[#allocation103_spill] sm:$0xff] }
 0x423   : > { %v1965_v10 = vmul.f32 1.442695, %v1841_v38  ;;  %v1967_v42 = vmul.f32 1.442695, %v1842_v56  ;;  %2283 = vadd.xlane.f32.xlu0 %v2282_v41  ;;  %4433 = vpow2.f32 %v1849_v22  ;;  %v1837_v53 = vsub.f32 %v7310_v6, %v5819_v17  ;;  %v5841_v15 = vpop.eup %4411  ;;  %v7314_v6 = vld [vmem:[#allocation114_spill] sm:$0xff] }
 0x424   : > { %4435 = vpow2.f32 %v1851_v30  ;;  %v2043_v38 = vmul.f32 1.442695, %v1976_v5  ;;  %v2180_v54 = vadd.f32 %v5821_v1, %v5813_v26  ;;  %v1838_v41 = vsub.f32 %v7311_v32, %v5819_v17  ;;  %v5847_v16 = vpop.eup %4413  ;;  %v7313_v5 = vld [vmem:[#allocation113_spill] sm:$0xff] }
 0x425   : > { %v1748_v47 = vpop.xlane.xlu0 %1747  ;;  %4437 = vpow2.f32 %v1965_v10  ;;  %v2157_v22 = vmul.f32 1.442695, %v2033_v63  ;;  %v2171_v37 = vadd.f32 %v5830_v13, %v5827_v4  ;;  %7312 = vst [vmem:[#allocation34_spill] sm:$0xff] %v5847_v16  ;;  %v2159_v30 = vmul.f32 1.442695, %v2034_v60  ;;  %v7315_v63 = vld [vmem:[#allocation115_spill] sm:$0xff] }
 0x426   : > { %2274 = vadd.xlane.f32.xlu1 %v2273_v0  ;;  %v1780_v56 = vmax.f32 %v1652_v24, %v1748_v47  ;;  %4439 = vpow2.f32 %v1967_v42  ;;  %v5851_v24 = vpop.eup %4415  ;;  %v1957_v47 = vmul.f32 1.442695, %v1837_v53  ;;  %v5855_v10 = vmax.f32 %v5761_v12, %v5787_v9  ;;  %v7317_v60 = vld [vmem:[#allocation116_spill] sm:$0xff]  ;;  %v7318_v12 = vld [vmem:[#allocation102_spill] sm:$0xff] }
 0x427   : > { %2181 = vadd.xlane.f32.xlu0 %v2180_v54  ;;  %4441 = vpow2.f32 %v2041_v48  ;;  %v5858_v4 = vpop.eup %4417  ;;  %v5867_v53 = vmax.f32 %v5671_v62, %v5699_v45  ;;  %v2029_v9 = vsub.f32 %v7318_v12, %v5819_v17  ;;  %v7322_v45 = vld [vmem:[#allocation105_spill] sm:$0xff] }
 0x428   : > { %v1843_v0 = vsub.f32 %v7313_v5, %v1780_v56  ;;  %v1844_v26 = vsub.f32 %v7314_v6, %v1780_v56  ;;  %v2035_v32 = vsub.f32 %v7315_v63, %v1780_v56  ;;  %7316 = vst [vmem:[#allocation36_spill] sm:$0xff] %v5858_v4  ;;  %4443 = vpow2.f32 %v2043_v38  ;;  %v5863_v6 = vpop.eup %4419 }
 0x429   : > { %v2036_v54 = vsub.f32 %v7317_v60, %v1780_v56  ;;  %v2276_v5 = vadd.f32 %v5841_v15, %v5837_v43  ;;  %4445 = vpow2.f32 %v2157_v22  ;;  %v5871_v63 = vpop.eup %4421  ;;  %v1959_v38 = vmul.f32 1.442695, %v1838_v41  ;;  %v7320_v56 = vld [vmem:[#allocation104_spill] sm:$0xff] }
 0x42a   : > { %v1969_v42 = vmul.f32 1.442695, %v1843_v0  ;;  %2172 = vadd.xlane.f32.xlu1 %v2171_v37  ;;  %v1971_v48 = vmul.f32 1.442695, %v1844_v26  ;;  %7319 = vst [vmem:[#allocation47_spill] sm:$0xff] %v5871_v63  ;;  %v2030_v37 = vsub.f32 %v7320_v56, %v5819_v17  ;;  %4447 = vpow2.f32 %v2159_v30  ;;  %v5877_v60 = vpop.eup %4423  ;;  %v7323_v26 = vld [vmem:[#allocation107_spill] sm:$0xff] }
 0x42b   : > { %2277 = vadd.xlane.f32.xlu0 %v2276_v5  ;;  %v2267_v0 = vadd.f32 %v5851_v24, %v5847_v16  ;;  %7321 = vst [vmem:[#allocation49_spill] sm:$0xff] %v5877_v60  ;;  %4449 = vpow2.f32 %v1957_v47  ;;  %v1839_v62 = vsub.f32 %v7322_v45, %v5855_v10  ;;  %v2161_v12 = vmul.f32 1.442695, %v2035_v32  ;;  %v5881_v22 = vpop.eup %4425  ;;  %v7324_v5 = vld [vmem:[#allocation93_spill] sm:$0xff]  ;;  %v7326_v32 = vld [vmem:[#allocation95_spill] sm:$0xff] }
 0x42c   : > { %v1840_v41 = vsub.f32 %v7323_v26, %v5855_v10  ;;  %4451 = vpow2.f32 %v1969_v42  ;;  %v2163_v13 = vmul.f32 1.442695, %v2036_v54  ;;  %v2174_v17 = vadd.f32 %v5863_v6, %v5858_v4  ;;  %v5887_v30 = vpop.eup %4427 }
 0x42d   : > { %v1833_v47 = vsub.f32 %v7324_v5, %v5867_v53  ;;  %v2149_v56 = vmul.f32 1.442695, %v2029_v9  ;;  %4453 = vpow2.f32 %v1971_v48  ;;  %v5891_v45 = vpop.eup %4429  ;;  %v1834_v16 = vsub.f32 %v7326_v32, %v5867_v53  ;;  %v7327_v9 = vld [vmem:[#allocation106_spill] sm:$0xff] }
 0x42e   : > { %2268 = vadd.xlane.f32.xlu1 %v2267_v0  ;;  %7325 = vst [vmem:[#allocation35_spill] sm:$0xff] %v5891_v45  ;;  %4455 = vpow2.f32 %v1959_v38  ;;  %v2151_v26 = vmul.f32 1.442695, %v2030_v37  ;;  %v2165_v42 = vadd.f32 %v5877_v60, %v5871_v63  ;;  %v5901_v0 = vmax.f32 %v5717_v44, %v5741_v40  ;;  %v7329_v38 = vld [vmem:[#allocation108_spill] sm:$0xff] }
 0x42f   : > { %2175 = vadd.xlane.f32.xlu0 %v2174_v17  ;;  %v5897_v54 = vpop.eup %4431  ;;  %v1961_v5 = vmul.f32 1.442695, %v1839_v62  ;;  %v2031_v48 = vsub.f32 %v7327_v9, %v5855_v10  ;;  %4457 = vpow2.f32 %v2161_v12  ;;  %v1963_v32 = vmul.f32 1.442695, %v1840_v41  ;;  %v7330_v62 = vld [vmem:[#allocation94_spill] sm:$0xff] }
 0x430   : > { %v5905_v4 = vpop.eup %4433  ;;  %v2032_v37 = vsub.f32 %v7329_v38, %v5855_v10  ;;  %4459 = vpow2.f32 %v2163_v13  ;;  %v2270_v17 = vadd.f32 %v5887_v30, %v5881_v22  ;;  %v5915_v44 = vmax.f32 %v5641_v55, %v5653_v19  ;;  %v7332_v13 = vld [vmem:[#allocation96_spill] sm:$0xff]  ;;  %v7334_v55 = vld [vmem:[#allocation97_spill] sm:$0xff] }
 0x431   : > { %7328 = vst [vmem:[#allocation37_spill] sm:$0xff] %v5905_v4  ;;  %v5911_v63 = vpop.eup %4435  ;;  %v1949_v40 = vmul.f32 1.442695, %v1833_v47  ;;  %v2025_v12 = vsub.f32 %v7330_v62, %v5867_v53  ;;  %4461 = vpow2.f32 %v2149_v56  ;;  %v1951_v9 = vmul.f32 1.442695, %v1834_v16  ;;  %v7335_v56 = vld [vmem:[#allocation99_spill] sm:$0xff] }
 0x432   : > { %2166 = vadd.xlane.f32.xlu1 %v2165_v42  ;;  %v5919_v41 = vpop.eup %4437  ;;  %v2026_v10 = vsub.f32 %v7332_v13, %v5867_v53  ;;  %4463 = vpow2.f32 %v2151_v26  ;;  %v2261_v42 = vadd.f32 %v5897_v54, %v5891_v45  ;;  %v1835_v19 = vsub.f32 %v7334_v55, %v5901_v0 }
 0x433   : > { %7331 = vst [vmem:[#allocation38_spill] sm:$0xff] %v5919_v41  ;;  %2271 = vadd.xlane.f32.xlu0 %v2270_v17  ;;  %v5925_v38 = vpop.eup %4439  ;;  %4465 = vpow2.f32 %v1961_v5  ;;  %v2153_v47 = vmul.f32 1.442695, %v2031_v48  ;;  %v1836_v16 = vsub.f32 %v7335_v56, %v5901_v0  ;;  %v2155_v60 = vmul.f32 1.442695, %v2032_v37  ;;  %v7336_v17 = vld [vmem:[#allocation85_spill] sm:$0xff] }
 0x434   : > { %7333 = vst [vmem:[#allocation40_spill] sm:$0xff] %v5925_v38  ;;  %v5929_v62 = vpop.eup %4441  ;;  %4467 = vpow2.f32 %v1963_v32  ;;  %v2168_v53 = vadd.f32 %v5911_v63, %v5905_v4  ;;  %v1829_v13 = vsub.f32 %v7336_v17, %v5915_v44  ;;  %v2141_v55 = vmul.f32 1.442695, %v2025_v12  ;;  %v7338_v48 = vld [vmem:[#allocation87_spill] sm:$0xff] }
 0x435   : > { %v5935_v26 = vpop.eup %4443  ;;  %4469 = vpow2.f32 %v1949_v40  ;;  %v1830_v45 = vsub.f32 %v7338_v48, %v5915_v44  ;;  %v2143_v56 = vmul.f32 1.442695, %v2026_v10  ;;  %v2255_v32 = vadd.f32 %v5925_v38, %v5919_v41  ;;  %v7340_v40 = vld [vmem:[#allocation98_spill] sm:$0xff]  ;;  %v1715_v38 = vpop.xlane.xlu1 %1714 }
 0x436   : > { %2262 = vadd.xlane.f32.xlu1 %v2261_v42  ;;  %v5939_v5 = vpop.eup %4445  ;;  %4471 = vpow2.f32 %v1951_v9  ;;  %v5949_v42 = vmax.f32 %v5669_v28, %v5697_v14  ;;  %v1953_v17 = vmul.f32 1.442695, %v1835_v19  ;;  %v2027_v12 = vsub.f32 %v7340_v40, %v5901_v0  ;;  %v7342_v9 = vld [vmem:[#allocation100_spill] sm:$0xff]  ;;  %v7344_v19 = vld [vmem:[#allocation86_spill] sm:$0xff] }
 0x437   : > { %7337 = vst [vmem:[#allocation26_spill] sm:$0xff] %v5939_v5  ;;  %2169 = vadd.xlane.f32.xlu0 %v2168_v53  ;;  %v5945_v37 = vpop.eup %4447  ;;  %4473 = vpow2.f32 %v2153_v47  ;;  %v1955_v48 = vmul.f32 1.442695, %v1836_v16  ;;  %v2028_v10 = vsub.f32 %v7342_v9, %v5901_v0  ;;  %v2264_v53 = vadd.f32 %v5935_v26, %v5929_v62 }
 0x438   : > { %7339 = vst [vmem:[#allocation28_spill] sm:$0xff] %v5945_v37  ;;  %v5953_v4 = vpop.eup %4449  ;;  %4475 = vpow2.f32 %v2155_v60  ;;  %v5963_v28 = vmax.f32 %v5609_v7, %v5627_v3  ;;  %v1941_v14 = vmul.f32 1.442695, %v1829_v13  ;;  %v2021_v47 = vsub.f32 %v7344_v19, %v5915_v44  ;;  %v7346_v60 = vld [vmem:[#allocation88_spill] sm:$0xff]  ;;  %v7348_v7 = vld [vmem:[#allocation89_spill] sm:$0xff] }
 0x439   : > { %7341 = vst [vmem:[#allocation39_spill] sm:$0xff] %v5953_v4  ;;  %v5959_v41 = vpop.eup %4451  ;;  %4477 = vpow2.f32 %v2141_v55  ;;  %v1943_v40 = vmul.f32 1.442695, %v1830_v45  ;;  %v2022_v0 = vsub.f32 %v7346_v60, %v5915_v44  ;;  %v1831_v3 = vsub.f32 %v7348_v7, %v5949_v42  ;;  %v7349_v45 = vld [vmem:[#allocation91_spill] sm:$0xff]  ;;  %v7350_v60 = vld [vmem:[#allocation77_spill] sm:$0xff] }
 0x43a   : > { %2256 = vadd.xlane.f32.xlu1 %v2255_v32  ;;  %7343 = vst [vmem:[#allocation41_spill] sm:$0xff] %v5959_v41  ;;  %v5967_v16 = vpop.eup %4453  ;;  %4479 = vpow2.f32 %v2143_v56  ;;  %v2351_v32 = vadd.f32 %v5945_v37, %v5939_v5  ;;  %v2145_v13 = vmul.f32 1.442695, %v2027_v12  ;;  %v1832_v44 = vsub.f32 %v7349_v45, %v5949_v42  ;;  %v7352_v12 = vld [vmem:[#allocation79_spill] sm:$0xff]  ;;  %v7354_v45 = vld [vmem:[#allocation90_spill] sm:$0xff]  ;;  %v7356_v37 = vld [vmem:[#allocation92_spill] sm:$0xff] }
 0x43b   : > { %7345 = vst [vmem:[#allocation27_spill] sm:$0xff] %v5967_v16  ;;  %2265 = vadd.xlane.f32.xlu0 %v2264_v53  ;;  %v5973_v9 = vpop.eup %4455  ;;  %4481 = vpow2.f32 %v1953_v17  ;;  %v2258_v55 = vadd.f32 %v5967_v16, %v5959_v41  ;;  %v2147_v56 = vmul.f32 1.442695, %v2028_v10  ;;  %v1825_v5 = vsub.f32 %v7350_v60, %v5963_v28 }
 0x43c   : > { %7347 = vst [vmem:[#allocation29_spill] sm:$0xff] %v5973_v9  ;;  %v5979_v19 = vpop.eup %4457  ;;  %4483 = vpow2.f32 %v1955_v48  ;;  %v2133_v7 = vmul.f32 1.442695, %v2021_v47  ;;  %v1826_v41 = vsub.f32 %v7352_v12, %v5963_v28  ;;  %v2135_v16 = vmul.f32 1.442695, %v2022_v0 }
 0x43d   : > { %v5983_v53 = vpop.eup %4459  ;;  %4485 = vpow2.f32 %v1941_v14  ;;  %v2249_v48 = vadd.f32 %v5973_v9, %v5953_v4  ;;  %v2023_v60 = vsub.f32 %v7354_v45, %v5949_v42  ;;  %v1947_v47 = vmul.f32 1.442695, %v1832_v44 }
 0x43e   : > { %2352 = vadd.xlane.f32.xlu1 %v2351_v32  ;;  %v5987_v17 = vpop.eup %4461  ;;  %4487 = vpow2.f32 %v1943_v40  ;;  %v1945_v32 = vmul.f32 1.442695, %v1831_v3  ;;  %v2024_v12 = vsub.f32 %v7356_v37, %v5949_v42  ;;  %v2354_v40 = vadd.f32 %v5983_v53, %v5979_v19  ;;  %v7358_v3 = vld [vmem:[#allocation78_spill] sm:$0xff]  ;;  %v7360_v37 = vld [vmem:[#allocation80_spill] sm:$0xff] }
 0x43f   : > { %7351 = vst [vmem:[#allocation30_spill] sm:$0xff] %v5987_v17  ;;  %2259 = vadd.xlane.f32.xlu0 %v2258_v55  ;;  %v5993_v10 = vpop.eup %4463  ;;  %4489 = vpow2.f32 %v2145_v13  ;;  %v1933_v55 = vmul.f32 1.442695, %v1825_v5  ;;  %v2017_v4 = vsub.f32 %v7358_v3, %v5963_v28  ;;  %v6008_v13 = vmax.f32 %v5596_v46, %v1715_v38  ;;  %v7362_v5 = vld [vmem:[#allocation81_spill] sm:$0xff]  ;;  %v7363_v38 = vld [vmem:[#allocation83_spill] sm:$0xff] }
 0x440   : > { %7353 = vst [vmem:[#allocation32_spill] sm:$0xff] %v5993_v10  ;;  %v5997_v14 = vpop.eup %4465  ;;  %4491 = vpow2.f32 %v2147_v56  ;;  %v1935_v44 = vmul.f32 1.442695, %v1826_v41  ;;  %v2018_v42 = vsub.f32 %v7360_v37, %v5963_v28  ;;  %v2345_v56 = vadd.f32 %v5993_v10, %v5987_v17  ;;  %v1718_v28 = vpop.xlane.xlu0 %1717 }
 0x441   : > { %7355 = vst [vmem:[#allocation109_spill] sm:$0xff] %v5997_v14  ;;  %v6003_v0 = vpop.eup %4467  ;;  %4493 = vpow2.f32 %v2133_v7  ;;  %v1827_v3 = vsub.f32 %v7362_v5, %v5660_v31  ;;  %v2137_v7 = vmul.f32 1.442695, %v2023_v60  ;;  %v1828_v41 = vsub.f32 %v7363_v38, %v5660_v31  ;;  %v7364_v5 = vld [vmem:[#allocation69_spill] sm:$0xff]  ;;  %v7366_v38 = vld [vmem:[#allocation71_spill] sm:$0xff] }
 0x442   : > { %2250 = vadd.xlane.f32.xlu1 %v2249_v48  ;;  %7357 = vst [vmem:[#allocation111_spill] sm:$0xff] %v6003_v0  ;;  %v6010_v45 = vpop.eup %4469  ;;  %4495 = vpow2.f32 %v2135_v16  ;;  %v2139_v9 = vmul.f32 1.442695, %v2024_v12  ;;  %v2252_v16 = vadd.f32 %v6003_v0, %v5997_v14  ;;  %v2125_v37 = vmul.f32 1.442695, %v2017_v4 }
 0x443   : > { %7359 = vst [vmem:[#allocation31_spill] sm:$0xff] %v6010_v45  ;;  %2355 = vadd.xlane.f32.xlu0 %v2354_v40  ;;  %v6016_v48 = vpop.eup %4471  ;;  %4497 = vpow2.f32 %v1945_v32  ;;  %v1821_v32 = vsub.f32 %v7364_v5, %v6008_v13  ;;  %v2127_v17 = vmul.f32 1.442695, %v2018_v42  ;;  %v1937_v14 = vmul.f32 1.442695, %v1827_v3  ;;  %v7369_v42 = vld [vmem:[#allocation84_spill] sm:$0xff] }
 0x444   : > { %7361 = vst [vmem:[#allocation33_spill] sm:$0xff] %v6016_v48  ;;  %v6020_v46 = vpop.eup %4473  ;;  %4499 = vpow2.f32 %v1947_v47  ;;  %v1822_v47 = vsub.f32 %v7366_v38, %v6008_v13  ;;  %v2243_v12 = vadd.f32 %v6016_v48, %v6010_v45  ;;  %v1770_v5 = vmax.f32 %v5625_v34, %v1718_v28  ;;  %v7375_v48 = vld [vmem:[#allocation75_spill] sm:$0xff] }
 0x445   : > { %v6026_v40 = vpop.eup %4475  ;;  %4501 = vpow2.f32 %v1933_v55  ;;  %v7367_v55 = vld [vmem:[#allocation82_spill] sm:$0xff]  ;;  %v2020_v10 = vsub.f32 %v7369_v42, %v5660_v31  ;;  %v1925_v3 = vmul.f32 1.442695, %v1821_v32 }
 0x446   : > { %2346 = vadd.xlane.f32.xlu1 %v2345_v56  ;;  %v6030_v60 = vpop.eup %4477  ;;  %4503 = vpow2.f32 %v1935_v44  ;;  %v2019_v4 = vsub.f32 %v7367_v55, %v5660_v31  ;;  %v1939_v44 = vmul.f32 1.442695, %v1828_v41  ;;  %v7370_v55 = vld [vmem:[#allocation70_spill] sm:$0xff]  ;;  %v1927_v34 = vmul.f32 1.442695, %v1822_v47  ;;  %v7372_v41 = vld [vmem:[#allocation72_spill] sm:$0xff] }
 0x447   : > { %7365 = vst [vmem:[#allocation110_spill] sm:$0xff] %v6030_v60  ;;  %2253 = vadd.xlane.f32.xlu0 %v2252_v16  ;;  %v6036_v56 = vpop.eup %4479  ;;  %4505 = vpow2.f32 %v2137_v7  ;;  %v2348_v16 = vadd.f32 %v6026_v40, %v6020_v46  ;;  %v2013_v7 = vsub.f32 %v7370_v55, %v6008_v13  ;;  %v2014_v28 = vsub.f32 %v7372_v41, %v6008_v13 }
 0x448   : > { %v6041_v0 = vpop.eup %4481  ;;  %4507 = vpow2.f32 %v2139_v9  ;;  %v2339_v31 = vadd.f32 %v6036_v56, %v6030_v60  ;;  %v2131_v55 = vmul.f32 1.442695, %v2020_v10 }
 0x449   : > { %7368 = vst [vmem:[#allocation112_spill] sm:$0xff] %v6041_v0  ;;  %v6047_v38 = vpop.eup %4483  ;;  %4509 = vpow2.f32 %v2125_v37  ;;  %v7374_v37 = vld [vmem:[#allocation73_spill] sm:$0xff] }
 0x44a   : > { %2244 = vadd.xlane.f32.xlu1 %v2243_v12  ;;  %v6051_v45 = vpop.eup %4485  ;;  %4511 = vpow2.f32 %v2127_v17  ;;  %v2129_v12 = vmul.f32 1.442695, %v2019_v4  ;;  %v1823_v32 = vsub.f32 %v7374_v37, %v1770_v5  ;;  %v1824_v17 = vsub.f32 %v7375_v48, %v1770_v5  ;;  %v7378_v48 = vld [vmem:[#allocation74_spill] sm:$0xff] }
 0x44b   : > { %7371 = vst [vmem:[#allocation101_spill] sm:$0xff] %v6051_v45  ;;  %2349 = vadd.xlane.f32.xlu0 %v2348_v16  ;;  %v6057_v9 = vpop.eup %4487  ;;  %4513 = vpow2.f32 %v1937_v14  ;;  %v2246_v13 = vadd.f32 %v6047_v38, %v6041_v0  ;;  %v2117_v16 = vmul.f32 1.442695, %v2013_v7  ;;  %v2119_v14 = vmul.f32 1.442695, %v2014_v28 }
 0x44c   : > { %7373 = vst [vmem:[#allocation103_spill] sm:$0xff] %v6057_v9  ;;  %v6060_v42 = vpop.eup %4489  ;;  %4515 = vpow2.f32 %v1939_v44  ;;  %v2237_v4 = vadd.f32 %v6057_v9, %v6051_v45  ;;  %v1929_v10 = vmul.f32 1.442695, %v1823_v32  ;;  %v1931_v0 = vmul.f32 1.442695, %v1824_v17 }
 0x44d   : > { %v6065_v47 = vpop.eup %4491  ;;  %4517 = vpow2.f32 %v1925_v3  ;;  %v7380_v3 = vld [vmem:[#allocation76_spill] sm:$0xff] }
 0x44e   : > { %2340 = vadd.xlane.f32.xlu1 %v2339_v31  ;;  %v6067_v41 = vpop.eup %4493  ;;  %4519 = vpow2.f32 %v1927_v34  ;;  %v2015_v31 = vsub.f32 %v7378_v48, %v1770_v5  ;;  %v2016_v7 = vsub.f32 %v7380_v3, %v1770_v5  ;;  %v2342_v34 = vadd.f32 %v6065_v47, %v6060_v42 }
 0x44f   : > { %7376 = vst [vmem:[#allocation113_spill] sm:$0xff] %v6067_v41  ;;  %2247 = vadd.xlane.f32.xlu0 %v2246_v13  ;;  %v6071_v44 = vpop.eup %4495  ;;  %4521 = vpow2.f32 %v2129_v12 }
 0x450   : > { %7377 = vst [vmem:[#allocation114_spill] sm:$0xff] %v6071_v44  ;;  %v6074_v37 = vpop.eup %4497  ;;  %4523 = vpow2.f32 %v2131_v55  ;;  %v2333_v12 = vadd.f32 %v6071_v44, %v6067_v41  ;;  %v2121_v55 = vmul.f32 1.442695, %v2015_v31  ;;  %v2123_v5 = vmul.f32 1.442695, %v2016_v7 }
 0x451   : > { %7379 = vst [vmem:[#allocation115_spill] sm:$0xff] %v6074_v37  ;;  %v6079_v28 = vpop.eup %4499  ;;  %4525 = vpow2.f32 %v2117_v16 }
 0x452   : > { %2238 = vadd.xlane.f32.xlu1 %v2237_v4  ;;  %7381 = vst [vmem:[#allocation116_spill] sm:$0xff] %v6079_v28  ;;  %v6081_v13 = vpop.eup %4501  ;;  %4527 = vpow2.f32 %v2119_v14  ;;  %v2240_v4 = vadd.f32 %v6079_v28, %v6074_v37 }
 0x453   : > { %7382 = vst [vmem:[#allocation102_spill] sm:$0xff] %v6081_v13  ;;  %2343 = vadd.xlane.f32.xlu0 %v2342_v34  ;;  %v6085_v32 = vpop.eup %4503  ;;  %4529 = vpow2.f32 %v1929_v10 }
 0x454   : > { %7383 = vst [vmem:[#allocation104_spill] sm:$0xff] %v6085_v32  ;;  %v6087_v17 = vpop.eup %4505  ;;  %4531 = vpow2.f32 %v1931_v0  ;;  %v2231_v14 = vadd.f32 %v6085_v32, %v6081_v13 }
 0x455   : > { %7384 = vst [vmem:[#allocation105_spill] sm:$0xff] %v6087_v17  ;;  %v6091_v16 = vpop.eup %4507  ;;  %4533 = vpow2.f32 %v2121_v55 }
 0x456   : > { %2334 = vadd.xlane.f32.xlu1 %v2333_v12  ;;  %7385 = vst [vmem:[#allocation107_spill] sm:$0xff] %v6091_v16  ;;  %v6093_v48 = vpop.eup %4509  ;;  %4535 = vpow2.f32 %v2123_v5  ;;  %v2336_v0 = vadd.f32 %v6091_v16, %v6087_v17 }
 0x457   : > { %7386 = vst [vmem:[#allocation93_spill] sm:$0xff] %v6093_v48  ;;  %2241 = vadd.xlane.f32.xlu0 %v2240_v4  ;;  %v6097_v3 = vpop.eup %4511 }
 0x458   : > { %7387 = vst [vmem:[#allocation95_spill] sm:$0xff] %v6097_v3  ;;  %v6099_v10 = vpop.eup %4513  ;;  %v2327_v34 = vadd.f32 %v6097_v3, %v6093_v48 }
 0x459   : > { %7388 = vst [vmem:[#allocation106_spill] sm:$0xff] %v6099_v10  ;;  %v6103_v31 = vpop.eup %4515 }
 0x45a   : > { %2232 = vadd.xlane.f32.xlu1 %v2231_v14  ;;  %7389 = vst [vmem:[#allocation108_spill] sm:$0xff] %v6103_v31  ;;  %v6105_v7 = vpop.eup %4517  ;;  %v2234_v55 = vadd.f32 %v6103_v31, %v6099_v10 }
 0x45b   : > { %7390 = vst [vmem:[#allocation94_spill] sm:$0xff] %v6105_v7  ;;  %2337 = vadd.xlane.f32.xlu0 %v2336_v0  ;;  %v6109_v12 = vpop.eup %4519 }
 0x45c   : > { %7391 = vst [vmem:[#allocation96_spill] sm:$0xff] %v6109_v12  ;;  %v6111_v4 = vpop.eup %4521  ;;  %v2225_v13 = vadd.f32 %v6109_v12, %v6105_v7 }
 0x45d   : > { %7392 = vst [vmem:[#allocation97_spill] sm:$0xff] %v6111_v4  ;;  %v6115_v5 = vpop.eup %4523 }
 0x45e   : > { %2328 = vadd.xlane.f32.xlu1 %v2327_v34  ;;  %7393 = vst [vmem:[#allocation99_spill] sm:$0xff] %v6115_v5  ;;  %v6117_v14 = vpop.eup %4525  ;;  %v2330_v48 = vadd.f32 %v6115_v5, %v6111_v4 }
 0x45f   : > { %7394 = vst [vmem:[#allocation85_spill] sm:$0xff] %v6117_v14  ;;  %2235 = vadd.xlane.f32.xlu0 %v2234_v55  ;;  %v6121_v0 = vpop.eup %4527 }
 0x460   : > { %7395 = vst [vmem:[#allocation87_spill] sm:$0xff] %v6121_v0  ;;  %v6123_v32 = vpop.eup %4529  ;;  %v2321_v10 = vadd.f32 %v6121_v0, %v6117_v14 }
 0x461   : > { %7396 = vst [vmem:[#allocation98_spill] sm:$0xff] %v6123_v32  ;;  %v6127_v34 = vpop.eup %4531 }
 0x462   : > { %2226 = vadd.xlane.f32.xlu1 %v2225_v13  ;;  %7397 = vst [vmem:[#allocation100_spill] sm:$0xff] %v6127_v34  ;;  %v6131_v31 = vpop.eup %4533  ;;  %v2228_v55 = vadd.f32 %v6127_v34, %v6123_v32 }
 0x463   : > { %2331 = vadd.xlane.f32.xlu0 %v2330_v48  ;;  %7398 = vst [vmem:[#allocation86_spill] sm:$0xff] %v6131_v31  ;;  %v6135_v7 = vpop.eup %4535 }
 0x464   : > { %7399 = vst [vmem:[#allocation88_spill] sm:$0xff] %v6135_v7  ;;  %v2324_v13 = vadd.f32 %v6135_v7, %v6131_v31 }
 0x466   : > { %2322 = vadd.xlane.f32.xlu1 %v2321_v10 }
 0x467   : > { %2229 = vadd.xlane.f32.xlu0 %v2228_v55 }
 0x46b   : > { %2325 = vadd.xlane.f32.xlu0 %v2324_v13 }
 0x470   : > { %v2197_v12 = vpop.xlane.xlu1 %2196 }
 0x473   : > { %v2200_v5 = vpop.xlane.xlu0 %2199 }
 0x474   : > { %v2293_v4 = vpop.xlane.xlu1 %2292 }
 0x475   : > { %v2367_v41 = vadd.f32 %v2293_v4, %v2197_v12 }
 0x477   : > { %v2296_v3 = vpop.xlane.xlu0 %2295 }
 0x478   : > { %v2368_v7 = vadd.f32 %v2296_v3, %v2200_v5 }
 0x47a   : > { %v2203_v48 = vpop.xlane.xlu1 %2202 }
 0x47c   : > { %v2206_v14 = vpop.xlane.xlu0 %2205 }
 0x47f   : > { %v2299_v37 = vpop.xlane.xlu1 %2298 }
 0x480   : > { %v2369_v10 = vadd.f32 %v2299_v37, %v2203_v48 }
 0x481   : > { %v2302_v45 = vpop.xlane.xlu0 %2301 }
 0x482   : > { %v2370_v28 = vadd.f32 %v2302_v45, %v2206_v14  ;;  %4537 = vrcp.f32 %v2369_v10 }
 0x483   : > { %v2209_v0 = vpop.xlane.xlu1 %2208 }
 0x484   : > { %4539 = vrcp.f32 %v2370_v28 }
 0x487   : > { %v2305_v17 = vpop.xlane.xlu1 %2304  ;;  %v2212_v34 = vpop.xlane.xlu0 %2211 }
 0x488   : > { %v2371_v32 = vadd.f32 %v2305_v17, %v2209_v0 }
 0x48a   : > { %4541 = vrcp.f32 %v2371_v32 }
 0x48b   : > { %v1613_v55 = vpop.xlane.xlu1 %1612  ;;  %v2308_v31 = vpop.xlane.xlu0 %2307 }
 0x48c   : > { %v2372_v13 = vadd.f32 %v2308_v31, %v2212_v34 }
 0x48e   : > { %4543 = vrcp.f32 %v2372_v13 }
 0x48f   : > { %v1709_v16 = vpop.xlane.xlu1 %1708  ;;  %v1616_v44 = vpop.xlane.xlu0 %1615  ;;  %4545 = vrcp.f32 %v2368_v7 }
 0x490   : > { %v1767_v9 = vmax.f32 %v1613_v55, %v1709_v16  ;;  %4547 = vrcp.f32 %v2367_v41  ;;  %v6143_v4 = vpop.eup %4537 }
 0x492   : > { %v1817_v60 = vsub.f32 %v5307_v25, %v1767_v9  ;;  %v1818_v37 = vsub.f32 %v5311_v21, %v1767_v9  ;;  %v2009_v45 = vsub.f32 %v7248_v27, %v1767_v9  ;;  %v2010_v17 = vsub.f32 %v5313_v11, %v1767_v9  ;;  %v6148_v27 = vpop.eup %4539 }
 0x493   : > { %v2191_v14 = vpop.xlane.xlu1 %2190  ;;  %v1712_v5 = vpop.xlane.xlu0 %1711 }
 0x494   : > { %v1917_v28 = vmul.f32 1.442695, %v1817_v60  ;;  %v1919_v32 = vmul.f32 1.442695, %v1818_v37  ;;  %v2109_v31 = vmul.f32 1.442695, %v2009_v45  ;;  %v1768_v12 = vmax.f32 %v1616_v44, %v1712_v5 }
 0x495   : > { %v2111_v3 = vmul.f32 1.442695, %v2010_v17 }
 0x496   : > { %4549 = vpow2.f32 %v1917_v28  ;;  %v1819_v21 = vsub.f32 %v7253_v49, %v1768_v12  ;;  %v1820_v25 = vsub.f32 %v7252_v2, %v1768_v12  ;;  %v2011_v11 = vsub.f32 %v7261_v33, %v1768_v12 }
 0x497   : > { %4551 = vpow2.f32 %v1919_v32  ;;  %v2287_v16 = vpop.xlane.xlu1 %2286  ;;  %v2012_v60 = vsub.f32 %v7260_v50, %v1768_v12  ;;  %v2194_v41 = vpop.xlane.xlu0 %2193  ;;  %v2542_v49 = vmul.f32 %v6143_v4, %v5583_v59  ;;  %v2544_v33 = vmul.f32 %v6148_v27, %v5591_v39 }
 0x498   : > { %4553 = vpow2.f32 %v2109_v31  ;;  %v2365_v9 = vadd.f32 %v2287_v16, %v2191_v14  ;;  %v4542_v7 = vpop.eup %4541  ;;  %v1921_v44 = vmul.f32 1.442695, %v1819_v21  ;;  %v1923_v0 = vmul.f32 1.442695, %v1820_v25  ;;  %v7401_v31 = vld [vmem:[#allocation132_spill] sm:$0xff]  ;;  %v7402_v25 = vld [vmem:[#allocation127_spill] sm:$0xff] }
 0x499   : > { %4555 = vpow2.f32 %v2111_v3  ;;  %v2113_v34 = vmul.f32 1.442695, %v2011_v11  ;;  %v2115_v48 = vmul.f32 1.442695, %v2012_v60  ;;  %v2448_v2 = vmul.f32 %v6148_v27, %v5569_v51  ;;  %v7400_v51 = vld [vmem:[#allocation131_spill] sm:$0xff] }
 0x49a   : > { %4557 = vrcp.f32 %v2365_v9  ;;  %v2546_v13 = vmul.f32 %v4542_v7, %v5617_v8  ;;  %v2450_v37 = vmul.f32 %v4542_v7, %v5603_v52  ;;  %v2545_v45 = vmul.f32 %v4542_v7, %v5611_v57  ;;  %v7404_v9 = vld [vmem:[#allocation58_spill] sm:$0xff] }
 0x49b   : > { %v1607_v10 = vpop.xlane.xlu1 %1606  ;;  %4559 = vpow2.f32 %v1921_v44  ;;  %v4544_v50 = vpop.eup %4543  ;;  %v2449_v32 = vmul.f32 %v4542_v7, %v7400_v51  ;;  %v2446_v11 = vmul.f32 %v6143_v4, %v7402_v25  ;;  %v7405_v7 = vld [vmem:[#allocation57_spill] sm:$0xff]  ;;  %v7413_v25 = vld [vmem:[#allocation122_spill] sm:$0xff] }
 0x49c   : > { %4561 = vpow2.f32 %v1923_v0  ;;  %v2290_v55 = vpop.xlane.xlu0 %2289  ;;  %v2548_v14 = vmul.f32 %v4544_v50, %v5638_v35  ;;  %v2452_v59 = vmul.f32 %v4544_v50, %v5629_v58  ;;  %v2547_v28 = vmul.f32 %v4544_v50, %v5633_v23  ;;  %v6165_v5 = vpop.eup %4545  ;;  %v7403_v23 = vld [vmem:[#allocation56_spill] sm:$0xff]  ;;  %v7406_v0 = vld [vmem:[#allocation59_spill] sm:$0xff] }
 0x49d   : > { %4563 = vpow2.f32 %v2113_v34  ;;  %v2366_v17 = vadd.f32 %v2290_v55, %v2194_v41  ;;  %v2451_v3 = vmul.f32 %v4544_v50, %v7401_v31  ;;  %v6167_v12 = vpop.eup %4547  ;;  %v2594_v58 = vpack.c.bf16 %v2544_v33, %v2542_v49  ;;  %v7407_v55 = vld [vmem:[#allocation130_spill] sm:$0xff]  ;;  %v7408_v33 = vld [vmem:[#allocation125_spill] sm:$0xff] }
 0x49e   : > { %4565 = vpow2.f32 %v2115_v48  ;;  %v2596_v8 = vpack.c.bf16 %v2548_v14, %v2546_v13  ;;  %v2500_v57 = vpack.c.bf16 %v2452_v59, %v2450_v37  ;;  %v2595_v35 = vpack.c.bf16 %v2547_v28, %v2545_v45  ;;  %v7409_v59 = vld [vmem:[#allocation123_spill] sm:$0xff]  ;;  %v7410_v31 = vld [vmem:[#allocation129_spill] sm:$0xff] }
 0x49f   : > { %v1703_v39 = vpop.xlane.xlu1 %1702  ;;  %4567 = vrcp.f32 %v2366_v17  ;;  %v2499_v21 = vpack.c.bf16 %v2451_v3, %v2449_v32  ;;  %v2543_v49 = vmul.f32 %v6148_v27, %v7407_v55  ;;  %v2540_v13 = vmul.f32 %v6165_v5, %v7408_v33  ;;  %v7417_v55 = vld [vmem:[#allocation61_spill] sm:$0xff] }
 0x4a0   : > { %v1765_v52 = vmax.f32 %v1607_v10, %v1703_v39  ;;  %v1610_v16 = vpop.xlane.xlu0 %1609  ;;  %2613 = vmatprep.subr.bf16.mxu1 %v2596_v8  ;;  %2666 = vmatprep.subr.bf16.mxu0 %v2500_v57  ;;  %v2498_v10 = vpack.c.bf16 %v2448_v2, %v2446_v11  ;;  %v2538_v39 = vmul.f32 %v6167_v12, %v7409_v59 }
 0x4a1   : > { %2614 = vmatpush1.bf16.xpose.msra.mxu1 %v2595_v35  ;;  %2667 = vmatpush1.bf16.xpose.msra.mxu0 %v2499_v21  ;;  %v2541_v3 = vmul.f32 %v6143_v4, %v7410_v31  ;;  %v7412_v21 = vld [vmem:[#allocation128_spill] sm:$0xff]  ;;  %v2444_v11 = vmul.f32 %v6165_v5, %v7413_v25 }
 0x4a2   : > { %v1813_v60 = vsub.f32 %v7403_v23, %v1765_v52  ;;  %v1814_v41 = vsub.f32 %v7404_v9, %v1765_v52  ;;  %v2005_v44 = vsub.f32 %v7405_v7, %v1765_v52  ;;  %v2006_v34 = vsub.f32 %v7406_v0, %v1765_v52  ;;  %2615 = vmatprep.subr.bf16.mxu1 %v2594_v58  ;;  %v7411_v52 = vld [vmem:[#allocation119_spill] sm:$0xff]  ;;  %v7414_v9 = vld [vmem:[#allocation126_spill] sm:$0xff]  ;;  %v7415_v0 = vld [vmem:[#allocation60_spill] sm:$0xff] }
 0x4a3   : > { %v6175_v48 = vpop.eup %4549  ;;  %v2185_v50 = vpop.xlane.xlu1 %2184  ;;  %2668 = vmatprep.subr.bf16.mxu0 %v2498_v10  ;;  %v2442_v8 = vmul.f32 %v6167_v12, %v7411_v52  ;;  %v2447_v58 = vmul.f32 %v6148_v27, %v7412_v21  ;;  %v2592_v7 = vpack.c.bf16 %v2540_v13, %v2538_v39  ;;  %v7419_v25 = vld [vmem:[#allocation124_spill] sm:$0xff] }
 0x4a4   : > { %v6181_v37 = vpop.eup %4551  ;;  %v1909_v45 = vmul.f32 1.442695, %v1813_v60  ;;  %v1911_v17 = vmul.f32 1.442695, %v1814_v41  ;;  %v2101_v14 = vmul.f32 1.442695, %v2005_v44  ;;  %v1706_v51 = vpop.xlane.xlu0 %1705  ;;  %v2593_v60 = vpack.c.bf16 %v2543_v49, %v2541_v3 }
 0x4a5   : > { %v6185_v28 = vpop.eup %4553  ;;  %v2103_v2 = vmul.f32 1.442695, %v2006_v34  ;;  %v2219_v32 = vadd.f32 %v6181_v37, %v6175_v48  ;;  %v1766_v35 = vmax.f32 %v1610_v16, %v1706_v51  ;;  %v2445_v41 = vmul.f32 %v6143_v4, %v7414_v9  ;;  %v7416_v16 = vld [vmem:[#allocation62_spill] sm:$0xff]  ;;  %v7421_v9 = vld [vmem:[#allocation65_spill] sm:$0xff] }
 0x4a6   : > { %v6193_v57 = vpop.eup %4555  ;;  %4569 = vpow2.f32 %v1909_v45  ;;  %v7418_v45 = vld [vmem:[#allocation63_spill] sm:$0xff] }
 0x4a7   : > { %4571 = vpow2.f32 %v1911_v17  ;;  %2220 = vadd.xlane.f32.xlu1 %v2219_v32  ;;  %v2281_v23 = vpop.xlane.xlu1 %2280  ;;  %v6201_v44 = vpop.eup %4557  ;;  %v1815_v34 = vsub.f32 %v7415_v0, %v1766_v35  ;;  %v1816_v10 = vsub.f32 %v7416_v16, %v1766_v35  ;;  %v2007_v27 = vsub.f32 %v7417_v55, %v1766_v35 }
 0x4a8   : > { %4573 = vpow2.f32 %v2101_v14  ;;  %v6206_v33 = vpop.eup %4559  ;;  %v2008_v17 = vsub.f32 %v7418_v45, %v1766_v35  ;;  %v2363_v59 = vadd.f32 %v2281_v23, %v2185_v50  ;;  %v2188_v49 = vpop.xlane.xlu0 %2187  ;;  %v2315_v4 = vadd.f32 %v6193_v57, %v6185_v28 }
 0x4a9   : > { %4575 = vpow2.f32 %v2103_v2  ;;  %v6211_v13 = vpop.eup %4561  ;;  %v1913_v39 = vmul.f32 1.442695, %v1815_v34  ;;  %v1915_v14 = vmul.f32 1.442695, %v1816_v10  ;;  %v2105_v51 = vmul.f32 1.442695, %v2007_v27  ;;  %2616 = vmatpush1.bf16.xpose.msra.mxu1 %v2593_v60 }
 0x4aa   : > { %v2497_v32 = vpack.c.bf16 %v2447_v58, %v2445_v41  ;;  %v6213_v31 = vpop.eup %4563  ;;  %v2107_v3 = vmul.f32 1.442695, %v2008_v17  ;;  %4577 = vrcp.f32 %v2363_v59  ;;  %v2496_v2 = vpack.c.bf16 %v2444_v11, %v2442_v8  ;;  %2617 = vmatprep.subr.bf16.mxu1 %v2592_v7  ;;  %v7420_v8 = vld [vmem:[#allocation121_spill] sm:$0xff]  ;;  %v7422_v34 = vld [vmem:[#allocation120_spill] sm:$0xff]  ;;  %v7424_v27 = vld [vmem:[#allocation118_spill] sm:$0xff] }
 0x4ab   : > { %2316 = vadd.xlane.f32.xlu1 %v2315_v4  ;;  %v2222_v50 = vadd.f32 %v6211_v13, %v6206_v33  ;;  %v2179_v52 = vpop.xlane.xlu1 %2178  ;;  %v6217_v35 = vpop.eup %4565  ;;  %4579 = vpow2.f32 %v1913_v39  ;;  %v2539_v23 = vmul.f32 %v6165_v5, %v7419_v25  ;;  %v2443_v11 = vmul.f32 %v6165_v5, %v7420_v8  ;;  %v7423_v10 = vld [vmem:[#allocation53_spill] sm:$0xff]  ;;  %v7425_v17 = vld [vmem:[#allocation64_spill] sm:$0xff]  ;;  %v7426_v39 = vld [vmem:[#allocation51_spill] sm:$0xff] }
 0x4ac   : > { %2669 = vmatpush1.bf16.xpose.msra.mxu0 %v2497_v32  ;;  %v4568_v21 = vpop.eup %4567  ;;  %4581 = vpow2.f32 %v1915_v14  ;;  %v2284_v58 = vpop.xlane.xlu0 %2283  ;;  %v2318_v0 = vadd.f32 %v6217_v35, %v6213_v31  ;;  %v2537_v16 = vmul.f32 %v6167_v12, %v7422_v34  ;;  %v2441_v45 = vmul.f32 %v6167_v12, %v7424_v27 }
 0x4ad   : > { %2670 = vmatprep.subr.bf16.mxu0 %v2496_v2  ;;  %2223 = vadd.xlane.f32.xlu0 %v2222_v50  ;;  %4583 = vpow2.f32 %v2105_v51  ;;  %v2364_v60 = vadd.f32 %v2284_v58, %v2188_v49  ;;  %v2536_v41 = vmul.f32 %v4568_v21, %v7421_v9  ;;  %v2440_v55 = vmul.f32 %v4568_v21, %v7423_v10  ;;  %v7428_v9 = vld [vmem:[#allocation54_spill] sm:$0xff] }
 0x4ae   : > { %4585 = vpow2.f32 %v2107_v3  ;;  %v2534_v59 = vmul.f32 %v6201_v44, %v7425_v17  ;;  %v2591_v4 = vpack.c.bf16 %v2539_v23, %v2537_v16  ;;  %v2438_v14 = vmul.f32 %v6201_v44, %v7426_v39  ;;  %v7427_v23 = vld [vmem:[#allocation67_spill] sm:$0xff]  ;;  %v7430_v10 = vld [vmem:[#allocation50_spill] sm:$0xff] }
 0x4af   : > { %v2275_v7 = vpop.xlane.xlu1 %2274  ;;  %4587 = vrcp.f32 %v2364_v60  ;;  %v2495_v51 = vpack.c.bf16 %v2443_v11, %v2441_v45  ;;  %v2535_v60 = vmul.f32 %v4568_v21, %v7427_v23 }
 0x4b0   : > { %v2361_v5 = vadd.f32 %v2275_v7, %v2179_v52  ;;  %v2182_v49 = vpop.xlane.xlu0 %2181  ;;  %v2590_v32 = vpack.c.bf16 %v2536_v41, %v2534_v59  ;;  %v2494_v2 = vpack.c.bf16 %v2440_v55, %v2438_v14  ;;  %v2439_v41 = vmul.f32 %v4568_v21, %v7428_v9  ;;  %v7429_v7 = vld [vmem:[#allocation52_spill] sm:$0xff] }
 0x4b1   : > { %2319 = vadd.xlane.f32.xlu0 %v2318_v0  ;;  %2618 = vmatpush1.bf16.xpose.msra.mxu1 %v2591_v4  ;;  %v2533_v34 = vmul.f32 %v6201_v44, %v7429_v7  ;;  %v2437_v55 = vmul.f32 %v6201_v44, %v7430_v10  ;;  %v7433_v7 = vld [vmem:[#allocation117_spill] sm:$0xff]  ;;  %v7434_v10 = vld [vmem:[#allocation42_spill] sm:$0xff] }
 0x4b2   : > { %2619 = vmatprep.subr.bf16.mxu1 %v2590_v32  ;;  %4589 = vrcp.f32 %v2361_v5 }
 0x4b3   : > { %v6235_v3 = vpop.eup %4569  ;;  %v2173_v50 = vpop.xlane.xlu1 %2172  ;;  %v2589_v59 = vpack.c.bf16 %v2535_v60, %v2533_v34  ;;  %v2493_v21 = vpack.c.bf16 %v2439_v41, %v2437_v55 }
 0x4b4   : > { %v6237_v58 = vpop.eup %4571  ;;  %2671 = vmatpush1.bf16.xpose.msra.mxu0 %v2495_v51  ;;  %v2278_v52 = vpop.xlane.xlu0 %2277 }
 0x4b5   : > { %v6239_v12 = vpop.eup %4573  ;;  %2672 = vmatprep.subr.bf16.mxu0 %v2494_v2  ;;  %v2213_v25 = vadd.f32 %v6237_v58, %v6235_v3  ;;  %v2362_v11 = vadd.f32 %v2278_v52, %v2182_v49 }
 0x4b6   : > { %v6244_v8 = vpop.eup %4575 }
 0x4b7   : > { %2214 = vadd.xlane.f32.xlu1 %v2213_v25  ;;  %v2269_v0 = vpop.xlane.xlu1 %2268  ;;  %v4578_v16 = vpop.eup %4577  ;;  %4591 = vrcp.f32 %v2362_v11  ;;  %v2309_v5 = vadd.f32 %v6244_v8, %v6239_v12  ;;  %v7432_v11 = vld [vmem:[#allocation68_spill] sm:$0xff] }
 0x4b8   : > { %v6251_v27 = vpop.eup %4579  ;;  %v2359_v45 = vadd.f32 %v2269_v0, %v2173_v50  ;;  %v2176_v17 = vpop.xlane.xlu0 %2175  ;;  %v2530_v2 = vmul.f32 %v4578_v16, %v5763_v36  ;;  %v7431_v50 = vld [vmem:[#allocation44_spill] sm:$0xff]  ;;  %v2529_v34 = vmul.f32 %v4578_v16, %v7433_v7  ;;  %v2433_v55 = vmul.f32 %v4578_v16, %v7434_v10  ;;  %v7438_v7 = vld [vmem:[#allocation45_spill] sm:$0xff] }
 0x4b9   : > { %v6255_v49 = vpop.eup %4581  ;;  %2620 = vmatpush1.bf16.xpose.msra.mxu1 %v2589_v59  ;;  %v2434_v52 = vmul.f32 %v4578_v16, %v7431_v50 }
 0x4ba   : > { %v6257_v4 = vpop.eup %4583  ;;  %v2216_v39 = vadd.f32 %v6255_v49, %v6251_v27  ;;  %4593 = vrcp.f32 %v2359_v45  ;;  %v7435_v45 = vld [vmem:[#allocation55_spill] sm:$0xff] }
 0x4bb   : > { %2310 = vadd.xlane.f32.xlu1 %v2309_v5  ;;  %v2167_v14 = vpop.xlane.xlu1 %2166  ;;  %v6261_v44 = vpop.eup %4585 }
 0x4bc   : > { %2673 = vmatpush1.bf16.xpose.msra.mxu0 %v2493_v21  ;;  %v4588_v51 = vpop.eup %4587  ;;  %2217 = vadd.xlane.f32.xlu0 %v2216_v39  ;;  %v2272_v32 = vpop.xlane.xlu0 %2271  ;;  %v2312_v41 = vadd.f32 %v6261_v44, %v6257_v4 }
 0x4bd   : > { %v2360_v25 = vadd.f32 %v2272_v32, %v2176_v17  ;;  %v2532_v23 = vmul.f32 %v4588_v51, %v5799_v29  ;;  %v2436_v60 = vmul.f32 %v4588_v51, %v5777_v20  ;;  %v2531_v9 = vmul.f32 %v4588_v51, %v7432_v11 }
 0x4be   : > { %v2435_v59 = vmul.f32 %v4588_v51, %v7435_v45  ;;  %v7436_v51 = vld [vmem:[#allocation43_spill] sm:$0xff] }
 0x4bf   : > { %v2263_v0 = vpop.xlane.xlu1 %2262  ;;  %4595 = vrcp.f32 %v2360_v25  ;;  %v2588_v36 = vpack.c.bf16 %v2532_v23, %v2530_v2  ;;  %v2492_v5 = vpack.c.bf16 %v2436_v60, %v2434_v52  ;;  %v2587_v21 = vpack.c.bf16 %v2531_v9, %v2529_v34  ;;  %v4590_v39 = vpop.eup %4589 }
 0x4c0   : > { %2313 = vadd.xlane.f32.xlu0 %v2312_v41  ;;  %v2357_v17 = vadd.f32 %v2263_v0, %v2167_v14  ;;  %v2170_v29 = vpop.xlane.xlu0 %2169  ;;  %v2491_v20 = vpack.c.bf16 %v2435_v59, %v2433_v55  ;;  %v2526_v16 = vmul.f32 %v4590_v39, %v5808_v18  ;;  %v2430_v25 = vmul.f32 %v4590_v39, %v7436_v51  ;;  %v7437_v41 = vld [vmem:[#allocation66_spill] sm:$0xff] }
 0x4c1   : > { %2621 = vmatprep.subr.bf16.mxu1 %v2588_v36  ;;  %2674 = vmatprep.subr.bf16.mxu0 %v2492_v5  ;;  %v2525_v9 = vmul.f32 %v4590_v39, %v5805_v61  ;;  %v2429_v0 = vmul.f32 %v4590_v39, %v7437_v41  ;;  %v7440_v51 = vld [vmem:[#allocation34_spill] sm:$0xff] }
 0x4c2   : > { %2622 = vmatpush1.bf16.xpose.msra.mxu1 %v2587_v21  ;;  %4597 = vrcp.f32 %v2357_v17  ;;  %v2804_v17 = vld [vmem:[%s6913_s10] sm:$0xff]  ;;  %v7439_v21 = vld [vmem:[#allocation48_spill] sm:$0xff] }
 0x4c3   : > { %v2257_v32 = vpop.xlane.xlu1 %2256 }
 0x4c4   : > { %2675 = vmatpush1.bf16.xpose.msra.mxu0 %v2491_v20  ;;  %v4592_v50 = vpop.eup %4591  ;;  %v2266_v11 = vpop.xlane.xlu0 %2265 }
 0x4c5   : > { %v2358_v2 = vadd.f32 %v2266_v11, %v2170_v29  ;;  %v2528_v52 = vmul.f32 %v4592_v50, %v5841_v15  ;;  %v2432_v14 = vmul.f32 %v4592_v50, %v5821_v1  ;;  %v2527_v23 = vmul.f32 %v4592_v50, %v5837_v43  ;;  %v2806_v1 = vld [vmem:[%s6913_s10 + $0x10] sm:$0xff] }
 0x4c6   : > { %v2431_v34 = vmul.f32 %v4592_v50, %v7438_v7 }
 0x4c7   : > { %v2353_v60 = vpop.xlane.xlu1 %2352  ;;  %4599 = vrcp.f32 %v2358_v2  ;;  %v2586_v10 = vpack.c.bf16 %v2528_v52, %v2526_v16  ;;  %v2490_v55 = vpack.c.bf16 %v2432_v14, %v2430_v25  ;;  %v2585_v59 = vpack.c.bf16 %v2527_v23, %v2525_v9  ;;  %v4594_v15 = vpop.eup %4593  ;;  %v7441_v2 = vld [vmem:[#allocation46_spill] sm:$0xff]  ;;  %v7442_v14 = vld [vmem:[#allocation36_spill] sm:$0xff] }
 0x4c8   : > { %v2387_v18 = vadd.f32 %v2353_v60, %v2257_v32  ;;  %v2260_v45 = vpop.xlane.xlu0 %2259  ;;  %v2489_v36 = vpack.c.bf16 %v2431_v34, %v2429_v0  ;;  %v2522_v29 = vmul.f32 %v4594_v15, %v5851_v24  ;;  %v2426_v20 = vmul.f32 %v4594_v15, %v7439_v21  ;;  %v2807_v34 = vld [vmem:[%s6913_s10 + $0x18] sm:$0xff] }
 0x4c9   : > { %2623 = vmatprep.subr.bf16.mxu1 %v2586_v10  ;;  %2676 = vmatprep.subr.bf16.mxu0 %v2490_v55  ;;  %v2521_v25 = vmul.f32 %v4594_v15, %v7440_v51  ;;  %v2425_v52 = vmul.f32 %v4594_v15, %v7441_v2  ;;  %v7447_v2 = vld [vmem:[#allocation28_spill] sm:$0xff] }
 0x4ca   : > { %2624 = vmatpush1.bf16.xpose.msra.mxu1 %v2585_v59  ;;  %4601 = vrcp.f32 %v2387_v18 }
 0x4cb   : > { %v2251_v61 = vpop.xlane.xlu1 %2250 }
 0x4cc   : > { %2677 = vmatpush1.bf16.xpose.msra.mxu0 %v2489_v36  ;;  %2820 = vperm.xlu1 %4281, %v2806_v1   ;;  %v4596_v43 = vpop.eup %4595  ;;  %v2356_v5 = vpop.xlane.xlu0 %2355 }
 0x4cd   : > { %v2388_v39 = vadd.f32 %v2356_v5, %v2260_v45  ;;  %v2524_v32 = vmul.f32 %v4596_v43, %v5887_v30  ;;  %v2428_v50 = vmul.f32 %v4596_v43, %v5863_v6  ;;  %v2523_v11 = vmul.f32 %v4596_v43, %v5881_v22  ;;  %v2805_v6 = vld [vmem:[%s6913_s10 + $0x8] sm:$0xff]  ;;  %v7443_v45 = vld [vmem:[#allocation49_spill] sm:$0xff] }
 0x4ce   : > { %v2427_v23 = vmul.f32 %v4596_v43, %v7442_v14  ;;  %v7444_v5 = vld [vmem:[#allocation35_spill] sm:$0xff]  ;;  %v7448_v14 = vld [vmem:[#allocation40_spill] sm:$0xff] }
 0x4cf   : > { %v2347_v16 = vpop.xlane.xlu1 %2346  ;;  %4603 = vrcp.f32 %v2388_v39  ;;  %v2584_v60 = vpack.c.bf16 %v2524_v32, %v2522_v29  ;;  %v2488_v24 = vpack.c.bf16 %v2428_v50, %v2426_v20  ;;  %v2583_v0 = vpack.c.bf16 %v2523_v11, %v2521_v25  ;;  %v4598_v22 = vpop.eup %4597  ;;  %v7445_v29 = vld [vmem:[#allocation47_spill] sm:$0xff]  ;;  %v7446_v20 = vld [vmem:[#allocation37_spill] sm:$0xff] }
 0x4d0   : > { %2810 = vperm.xlu1 %4281, %v2804_v17   ;;  %v2385_v9 = vadd.f32 %v2347_v16, %v2251_v61  ;;  %v2254_v41 = vpop.xlane.xlu0 %2253  ;;  %v2487_v7 = vpack.c.bf16 %v2427_v23, %v2425_v52  ;;  %v2518_v18 = vmul.f32 %v4598_v22, %v5897_v54  ;;  %v2422_v59 = vmul.f32 %v4598_v22, %v7443_v45 }
 0x4d1   : > { %2625 = vmatprep.subr.bf16.mxu1 %v2584_v60  ;;  %2678 = vmatprep.subr.bf16.mxu0 %v2488_v24  ;;  %v2517_v17 = vmul.f32 %v4598_v22, %v7444_v5  ;;  %v2421_v21 = vmul.f32 %v4598_v22, %v7445_v29  ;;  %v7453_v5 = vld [vmem:[#allocation32_spill] sm:$0xff]  ;;  %v7454_v29 = vld [vmem:[#allocation29_spill] sm:$0xff] }
 0x4d2   : > { %2626 = vmatpush1.bf16.xpose.msra.mxu1 %v2583_v0  ;;  %4605 = vrcp.f32 %v2385_v9  ;;  %v7449_v9 = vld [vmem:[#allocation27_spill] sm:$0xff] }
 0x4d3   : > { %v2245_v30 = vpop.xlane.xlu1 %2244 }
 0x4d4   : > { %2679 = vmatpush1.bf16.xpose.msra.mxu0 %v2487_v7  ;;  %2815 = vperm.xlu1 %4281, %v2805_v6   ;;  %v4600_v10 = vpop.eup %4599  ;;  %v2350_v55 = vpop.xlane.xlu0 %2349  ;;  %v7450_v6 = vld [vmem:[#allocation26_spill] sm:$0xff] }
 0x4d5   : > { %v2386_v36 = vadd.f32 %v2350_v55, %v2254_v41  ;;  %v2520_v1 = vmul.f32 %v4600_v10, %v5935_v26  ;;  %v2424_v15 = vmul.f32 %v4600_v10, %v5911_v63  ;;  %v2519_v61 = vmul.f32 %v4600_v10, %v5929_v62 }
 0x4d6   : > { %2825 = vperm.xlu0 %4280, %v2807_v34   ;;  %v2423_v39 = vmul.f32 %v4600_v10, %v7446_v20  ;;  %v7452_v10 = vld [vmem:[#allocation41_spill] sm:$0xff] }
 0x4d7   : > { %v2341_v43 = vpop.xlane.xlu1 %2340  ;;  %4607 = vrcp.f32 %v2386_v36  ;;  %v2582_v32 = vpack.c.bf16 %v2520_v1, %v2518_v18  ;;  %v2486_v54 = vpack.c.bf16 %v2424_v15, %v2422_v59  ;;  %v2581_v16 = vpack.c.bf16 %v2519_v61, %v2517_v17  ;;  %v4602_v26 = vpop.eup %4601 }
 0x4d8   : > { %v2383_v50 = vadd.f32 %v2341_v43, %v2245_v30  ;;  %v2248_v11 = vpop.xlane.xlu0 %2247  ;;  %v2485_v51 = vpack.c.bf16 %v2423_v39, %v2421_v21  ;;  %v2578_v52 = vmul.f32 %v4602_v26, %v7447_v2  ;;  %v2482_v23 = vmul.f32 %v4602_v26, %v7448_v14  ;;  %v7451_v30 = vld [vmem:[#allocation38_spill] sm:$0xff] }
 0x4d9   : > { %2627 = vmatprep.subr.bf16.mxu1 %v2582_v32  ;;  %2680 = vmatprep.subr.bf16.mxu0 %v2486_v54  ;;  %v2577_v22 = vmul.f32 %v4602_v26, %v7450_v6  ;;  %v2481_v34 = vmul.f32 %v4602_v26, %v7451_v30  ;;  %v7455_v32 = vld [vmem:[#allocation111_spill] sm:$0xff] }
 0x4da   : > { %2628 = vmatpush1.bf16.xpose.msra.mxu1 %v2581_v16  ;;  %4609 = vrcp.f32 %v2383_v50  ;;  %v7456_v16 = vld [vmem:[#allocation30_spill] sm:$0xff]  ;;  %v7457_v26 = vld [vmem:[#allocation39_spill] sm:$0xff] }
 0x4db   : > { %v2239_v63 = vpop.xlane.xlu1 %2238 }
 0x4dc   : > { %2681 = vmatpush1.bf16.xpose.msra.mxu0 %v2485_v51  ;;  %v4604_v62 = vpop.eup %4603  ;;  %v2344_v25 = vpop.xlane.xlu0 %2343 }
 0x4dd   : > { %v2384_v60 = vadd.f32 %v2344_v25, %v2248_v11  ;;  %v2580_v24 = vmul.f32 %v4604_v62, %v5983_v53  ;;  %v2484_v41 = vmul.f32 %v4604_v62, %v7449_v9  ;;  %v2579_v0 = vmul.f32 %v4604_v62, %v5979_v19 }
 0x4de   : > { %v2483_v55 = vmul.f32 %v4604_v62, %v7452_v10  ;;  %v7458_v62 = vld [vmem:[#allocation109_spill] sm:$0xff] }
 0x4df   : > { %v2335_v7 = vpop.xlane.xlu1 %2334  ;;  %4611 = vrcp.f32 %v2384_v60  ;;  %v2612_v18 = vpack.c.bf16 %v2580_v24, %v2578_v52  ;;  %v2516_v45 = vpack.c.bf16 %v2484_v41, %v2482_v23  ;;  %v2611_v1 = vpack.c.bf16 %v2579_v0, %v2577_v22  ;;  %v4606_v61 = vpop.eup %4605 }
 0x4e0   : > { %v2381_v59 = vadd.f32 %v2335_v7, %v2239_v63  ;;  %v2242_v36 = vpop.xlane.xlu0 %2241  ;;  %v2515_v15 = vpack.c.bf16 %v2483_v55, %v2481_v34  ;;  %v2574_v17 = vmul.f32 %v4606_v61, %v7453_v5  ;;  %v2478_v21 = vmul.f32 %v4606_v61, %v7454_v29  ;;  %v7459_v7 = vld [vmem:[#allocation33_spill] sm:$0xff] }
 0x4e1   : > { %2629 = vmatprep.subr.bf16.mxu1 %v2612_v18  ;;  %2682 = vmatprep.subr.bf16.mxu0 %v2516_v45  ;;  %v2573_v51 = vmul.f32 %v4606_v61, %v7456_v16  ;;  %v2477_v63 = vmul.f32 %v4606_v61, %v7457_v26  ;;  %v7460_v18 = vld [vmem:[#allocation110_spill] sm:$0xff]  ;;  %v7467_v16 = vld [vmem:[#allocation116_spill] sm:$0xff]  ;;  %v7468_v26 = vld [vmem:[#allocation105_spill] sm:$0xff] }
 0x4e2   : > { %2630 = vmatpush2.bf16.xpose.msra.mxu1 %v2611_v1  ;;  %4613 = vrcp.f32 %v2381_v59  ;;  %v7461_v59 = vld [vmem:[#allocation31_spill] sm:$0xff]  ;;  %v7462_v1 = vld [vmem:[#allocation112_spill] sm:$0xff] }
 0x4e3   : > { %v2233_v53 = vpop.xlane.xlu1 %2232 }
 0x4e4   : > { %2683 = vmatpush2.bf16.xpose.msra.mxu0 %v2515_v15  ;;  %v4608_v19 = vpop.eup %4607  ;;  %v2338_v43 = vpop.xlane.xlu0 %2337 }
 0x4e5   : > { %v2382_v20 = vadd.f32 %v2338_v43, %v2242_v36  ;;  %v2576_v39 = vmul.f32 %v4608_v19, %v6026_v40  ;;  %v2480_v54 = vmul.f32 %v4608_v19, %v7455_v32  ;;  %v2575_v50 = vmul.f32 %v4608_v19, %v6020_v46 }
 0x4e6   : > { %v2479_v25 = vmul.f32 %v4608_v19, %v7458_v62  ;;  %v7469_v62 = vld [vmem:[#allocation101_spill] sm:$0xff] }
 0x4e7   : > { %v2329_v11 = vpop.xlane.xlu1 %2328  ;;  %4615 = vrcp.f32 %v2382_v20  ;;  %v2610_v2 = vpack.c.bf16 %v2576_v39, %v2574_v17  ;;  %v2514_v52 = vpack.c.bf16 %v2480_v54, %v2478_v21  ;;  %v2609_v60 = vpack.c.bf16 %v2575_v50, %v2573_v51  ;;  %v4610_v9 = vpop.eup %4609  ;;  %v7464_v21 = vld [vmem:[#allocation103_spill] sm:$0xff]  ;;  %v7465_v39 = vld [vmem:[#allocation113_spill] sm:$0xff] }
 0x4e8   : > { %v2379_v14 = vadd.f32 %v2329_v11, %v2233_v53  ;;  %v2236_v23 = vpop.xlane.xlu0 %2235  ;;  %v2513_v24 = vpack.c.bf16 %v2479_v25, %v2477_v63  ;;  %v2570_v0 = vmul.f32 %v4610_v9, %v6036_v56  ;;  %v2474_v6 = vmul.f32 %v4610_v9, %v7459_v7  ;;  %v7466_v50 = vld [vmem:[#allocation107_spill] sm:$0xff] }
 0x4e9   : > { %2631 = vmatprep.subr.bf16.mxu1 %v2610_v2  ;;  %2684 = vmatprep.subr.bf16.mxu0 %v2514_v52  ;;  %v2569_v45 = vmul.f32 %v4610_v9, %v7460_v18  ;;  %v2473_v36 = vmul.f32 %v4610_v9, %v7461_v59  ;;  %v7470_v2 = vld [vmem:[#allocation115_spill] sm:$0xff]  ;;  %v7476_v18 = vld [vmem:[#allocation108_spill] sm:$0xff]  ;;  %v7477_v59 = vld [vmem:[#allocation97_spill] sm:$0xff] }
 0x4ea   : > { %2632 = vmatpush2.bf16.xpose.msra.mxu1 %v2609_v60  ;;  %4617 = vrcp.f32 %v2379_v14 }
 0x4eb   : > { %v2227_v40 = vpop.xlane.xlu1 %2226 }
 0x4ec   : > { %2685 = vmatpush2.bf16.xpose.msra.mxu0 %v2513_v24  ;;  %v4612_v46 = vpop.eup %4611  ;;  %v2332_v41 = vpop.xlane.xlu0 %2331 }
 0x4ed   : > { %v2380_v22 = vadd.f32 %v2332_v41, %v2236_v23  ;;  %v2572_v30 = vmul.f32 %v4612_v46, %v6065_v47  ;;  %v2476_v34 = vmul.f32 %v4612_v46, %v6047_v38  ;;  %v2571_v10 = vmul.f32 %v4612_v46, %v6060_v42  ;;  %v7463_v47 = vld [vmem:[#allocation114_spill] sm:$0xff] }
 0x4ee   : > { %v2475_v15 = vmul.f32 %v4612_v46, %v7462_v1  ;;  %v7471_v46 = vld [vmem:[#allocation95_spill] sm:$0xff]  ;;  %v7478_v1 = vld [vmem:[#allocation106_spill] sm:$0xff] }
 0x4ef   : > { %v2323_v55 = vpop.xlane.xlu1 %2322  ;;  %4619 = vrcp.f32 %v2380_v22  ;;  %v2608_v61 = vpack.c.bf16 %v2572_v30, %v2570_v0  ;;  %v2512_v53 = vpack.c.bf16 %v2476_v34, %v2474_v6  ;;  %v2607_v43 = vpack.c.bf16 %v2571_v10, %v2569_v45  ;;  %v4614_v17 = vpop.eup %4613  ;;  %v7472_v0 = vld [vmem:[#allocation104_spill] sm:$0xff]  ;;  %v7473_v6 = vld [vmem:[#allocation93_spill] sm:$0xff]  ;;  %v7474_v30 = vld [vmem:[#allocation102_spill] sm:$0xff] }
 0x4f0   : > { %v2377_v56 = vadd.f32 %v2323_v55, %v2227_v40  ;;  %v2230_v19 = vpop.xlane.xlu0 %2229  ;;  %v2511_v5 = vpack.c.bf16 %v2475_v15, %v2473_v36  ;;  %v2566_v29 = vmul.f32 %v4614_v17, %v7463_v47  ;;  %v2470_v20 = vmul.f32 %v4614_v17, %v7464_v21  ;;  %v7475_v10 = vld [vmem:[#allocation99_spill] sm:$0xff] }
 0x4f1   : > { %2633 = vmatprep.subr.bf16.mxu1 %v2608_v61  ;;  %2686 = vmatprep.subr.bf16.mxu0 %v2512_v53  ;;  %v2565_v32 = vmul.f32 %v4614_v17, %v7465_v39  ;;  %v2469_v25 = vmul.f32 %v4614_v17, %v7469_v62  ;;  %v7479_v17 = vld [vmem:[#allocation87_spill] sm:$0xff] }
 0x4f2   : > { %2634 = vmatpush2.bf16.xpose.msra.mxu1 %v2607_v43  ;;  %4621 = vrcp.f32 %v2377_v56 }
 0x4f4   : > { %2687 = vmatpush2.bf16.xpose.msra.mxu0 %v2511_v5  ;;  %v4616_v38 = vpop.eup %4615  ;;  %v2326_v42 = vpop.xlane.xlu0 %2325 }
 0x4f5   : > { %v2378_v54 = vadd.f32 %v2326_v42, %v2230_v19  ;;  %v2568_v11 = vmul.f32 %v4616_v38, %v7466_v50  ;;  %v2472_v51 = vmul.f32 %v4616_v38, %v7467_v16  ;;  %v2567_v63 = vmul.f32 %v4616_v38, %v7468_v26  ;;  %v7480_v42 = vld [vmem:[#allocation96_spill] sm:$0xff]  ;;  %v7485_v16 = vld [vmem:[#allocation86_spill] sm:$0xff] }
 0x4f6   : > { %v2471_v52 = vmul.f32 %v4616_v38, %v7470_v2  ;;  %v7484_v50 = vld [vmem:[#allocation100_spill] sm:$0xff]  ;;  %v7486_v26 = vld [vmem:[#allocation98_spill] sm:$0xff] }
 0x4f7   : > { %4623 = vrcp.f32 %v2378_v54  ;;  %v2606_v14 = vpack.c.bf16 %v2568_v11, %v2566_v29  ;;  %v2510_v23 = vpack.c.bf16 %v2472_v51, %v2470_v20  ;;  %v2605_v60 = vpack.c.bf16 %v2567_v63, %v2565_v32  ;;  %v4618_v9 = vpop.eup %4617  ;;  %v7481_v29 = vld [vmem:[#allocation85_spill] sm:$0xff]  ;;  %v7482_v20 = vld [vmem:[#allocation94_spill] sm:$0xff]  ;;  %v7483_v32 = vld [vmem:[#allocation88_spill] sm:$0xff] }
 0x4f8   : > { %v2509_v24 = vpack.c.bf16 %v2471_v52, %v2469_v25  ;;  %v2562_v41 = vmul.f32 %v4618_v9, %v7471_v46  ;;  %v2466_v7 = vmul.f32 %v4618_v9, %v7472_v0  ;;  %v2561_v22 = vmul.f32 %v4618_v9, %v7473_v6 }
 0x4f9   : > { %2635 = vmatprep.subr.bf16.mxu1 %v2606_v14  ;;  %2688 = vmatprep.subr.bf16.mxu0 %v2510_v23  ;;  %v2465_v34 = vmul.f32 %v4618_v9, %v7474_v30 }
 0x4fa   : > { %2636 = vmatpush2.bf16.xpose.msra.mxu1 %v2605_v60 }
 0x4fc   : > { %2689 = vmatpush2.bf16.xpose.msra.mxu0 %v2509_v24  ;;  %v4620_v40 = vpop.eup %4619 }
 0x4fd   : > { %v2564_v55 = vmul.f32 %v4620_v40, %v7475_v10  ;;  %v2468_v45 = vmul.f32 %v4620_v40, %v7476_v18  ;;  %v2563_v36 = vmul.f32 %v4620_v40, %v7477_v59  ;;  %v2467_v15 = vmul.f32 %v4620_v40, %v7478_v1 }
 0x4ff   : > { %v2604_v61 = vpack.c.bf16 %v2564_v55, %v2562_v41  ;;  %v2508_v53 = vpack.c.bf16 %v2468_v45, %v2466_v7  ;;  %v2603_v56 = vpack.c.bf16 %v2563_v36, %v2561_v22  ;;  %v2507_v19 = vpack.c.bf16 %v2467_v15, %v2465_v34  ;;  %v4622_v43 = vpop.eup %4621 }
 0x500   : > { %v2558_v38 = vmul.f32 %v4622_v43, %v7479_v17  ;;  %v2462_v47 = vmul.f32 %v4622_v43, %v7480_v42  ;;  %v2557_v21 = vmul.f32 %v4622_v43, %v7481_v29  ;;  %v2461_v39 = vmul.f32 %v4622_v43, %v7482_v20  ;;  %v7490_v29 = vld [vmem:[#allocation25_spill] sm:$0xff] }
 0x501   : > { %2637 = vmatprep.subr.bf16.mxu1 %v2604_v61  ;;  %2690 = vmatprep.subr.bf16.mxu0 %v2508_v53 }
 0x502   : > { %2638 = vmatpush2.bf16.xpose.msra.mxu1 %v2603_v56 }
 0x504   : > { %2691 = vmatpush2.bf16.xpose.msra.mxu0 %v2507_v19  ;;  %v4624_v5 = vpop.eup %4623 }
 0x505   : > { %v2560_v54 = vmul.f32 %v4624_v5, %v7483_v32  ;;  %v2464_v11 = vmul.f32 %v4624_v5, %v7484_v50  ;;  %v2559_v51 = vmul.f32 %v4624_v5, %v7485_v16  ;;  %v2463_v63 = vmul.f32 %v4624_v5, %v7486_v26  ;;  %v7497_v32 = vld [vmem:[#allocation22_spill] sm:$0xff]  ;;  %v7501_v16 = vld [vmem:[#allocation19_spill] sm:$0xff] }
 0x506   : > { %v7503_v26 = vmov 0  }
 0x507   : > { %v2602_v62 = vpack.c.bf16 %v2560_v54, %v2558_v38  ;;  %v2506_v25 = vpack.c.bf16 %v2464_v11, %v2462_v47  ;;  %v2601_v2 = vpack.c.bf16 %v2559_v51, %v2557_v21  ;;  %v2505_v52 = vpack.c.bf16 %v2463_v63, %v2461_v39  ;;  %v7491_v21 = vld [vmem:[#allocation16_spill] sm:$0xff]  ;;  %v7498_v54 = vld [vmem:[#allocation18_spill] sm:$0xff]  ;;  %v7500_v11 = vld [vmem:[#allocation23_spill] sm:$0xff] }
 0x508   : > { %v7499_v50 = vpack.c.bf16 %v7497_v32, %v7498_v54  ;;  %v7502_v51 = vpack.c.bf16 %v7500_v11, %v7501_v16  ;;  %v7511_v11 = vld [vmem:[#allocation13_spill] sm:$0xff] }
 0x509   : > { %2639 = vmatprep.subr.bf16.mxu1 %v2602_v62  ;;  %2692 = vmatprep.subr.bf16.mxu0 %v2506_v25 }
 0x50a   : > { %2640 = vmatpush2.bf16.xpose.msra.mxu1 %v2601_v2 }
 0x50c   : > { %2693 = vmatpush2.bf16.xpose.msra.mxu0 %v2505_v52 }
 0x530   : > { %v2221_v14 = vpop.xlane.xlu1 %2220 }
 0x534   : > { %v2317_v23 = vpop.xlane.xlu1 %2316 }
 0x535   : > { %v2375_v60 = vadd.f32 %v2317_v23, %v2221_v14 }
 0x536   : > { %v2224_v24 = vpop.xlane.xlu0 %2223 }
 0x537   : > { %4625 = vrcp.f32 %v2375_v60 }
 0x53a   : > { %v2320_v9 = vpop.xlane.xlu0 %2319 }
 0x53b   : > { %v2376_v40 = vadd.f32 %v2320_v9, %v2224_v24 }
 0x53d   : > { %4627 = vrcp.f32 %v2376_v40 }
 0x540   : > { %v2215_v46 = vpop.xlane.xlu1 %2214 }
 0x544   : > { %v2311_v41 = vpop.xlane.xlu1 %2310  ;;  %v4626_v6 = vpop.eup %4625 }
 0x545   : > { %v2373_v0 = vadd.f32 %v2311_v41, %v2215_v46  ;;  %v2218_v7 = vpop.xlane.xlu0 %2217  ;;  %v2554_v34 = vmul.f32 %v4626_v6, %v6193_v57  ;;  %v2458_v10 = vmul.f32 %v4626_v6, %v6181_v37  ;;  %v2553_v55 = vmul.f32 %v4626_v6, %v6185_v28 }
 0x546   : > { %v2457_v1 = vmul.f32 %v4626_v6, %v6175_v48 }
 0x547   : > { %4629 = vrcp.f32 %v2373_v0 }
 0x549   : > { %v2314_v30 = vpop.xlane.xlu0 %2313 }
 0x54a   : > { %v4628_v22 = vpop.eup %4627  ;;  %v2374_v18 = vadd.f32 %v2314_v30, %v2218_v7 }
 0x54b   : > { %v2556_v45 = vmul.f32 %v4628_v22, %v6217_v35  ;;  %v2460_v59 = vmul.f32 %v4628_v22, %v6211_v13  ;;  %v2555_v36 = vmul.f32 %v4628_v22, %v6213_v31  ;;  %v2459_v15 = vmul.f32 %v4628_v22, %v6206_v33 }
 0x54c   : > { %4631 = vrcp.f32 %v2374_v18 }
 0x54d   : > { %v2600_v61 = vpack.c.bf16 %v2556_v45, %v2554_v34  ;;  %v2504_v53 = vpack.c.bf16 %v2460_v59, %v2458_v10  ;;  %v2599_v56 = vpack.c.bf16 %v2555_v36, %v2553_v55  ;;  %v2503_v57 = vpack.c.bf16 %v2459_v15, %v2457_v1 }
 0x54f   : > { %2641 = vmatprep.subr.bf16.mxu1 %v2600_v61  ;;  %2694 = vmatprep.subr.bf16.mxu0 %v2504_v53  ;;  %v4295_v53 = vld [vmem:[%s6912_s9] sm:$0xff]  }
 0x550   : > { %2642 = vmatpush2.bf16.xpose.msra.mxu1 %v2599_v56  ;;  %2695 = vmatpush2.bf16.xpose.msra.mxu0 %v2503_v57  ;;  %v4296_v56 = vld [vmem:[%s6912_s9 + $0x8] sm:$0xff]  }
 0x554   : > { %v4630_v37 = vpop.eup %4629 }
 0x555   : > { %v2550_v35 = vmul.f32 %v4630_v37, %v6244_v8  ;;  %v2454_v13 = vmul.f32 %v4630_v37, %v6237_v58  ;;  %v2549_v31 = vmul.f32 %v4630_v37, %v6239_v12  ;;  %v2453_v48 = vmul.f32 %v4630_v37, %v6235_v3  ;;  %v7487_v58 = vld [vmem:[#allocation20_spill] sm:$0xff]  ;;  %v7489_v3 = vld [vmem:[#allocation21_spill] sm:$0xff] }
 0x556   : > { %v7488_v12 = vld [vmem:[#allocation24_spill] sm:$0xff] }
 0x557   : > { %v856_v8 = vpack.c.bf16 %v7488_v12, %v7487_v58  ;;  %v7507_v58 = vld [vmem:[#allocation10_spill] sm:$0xff] }
 0x559   : > { %v4632_v28 = vpop.eup %4631 }
 0x55a   : > { %v2552_v33 = vmul.f32 %v4632_v28, %v6261_v44  ;;  %v2456_v19 = vmul.f32 %v4632_v28, %v6255_v49  ;;  %v2551_v43 = vmul.f32 %v4632_v28, %v6257_v4  ;;  %v2455_v5 = vmul.f32 %v4632_v28, %v6251_v27  ;;  %v7492_v49 = vld [vmem:[#allocation14_spill] sm:$0xff]  ;;  %v7494_v4 = vld [vmem:[#allocation17_spill] sm:$0xff]  ;;  %v7495_v27 = vld [vmem:[#allocation15_spill] sm:$0xff]  ;;  %v2821_v28 = vpop.permute.xlu1 %2820 }
 0x55b   : > { %v1090_v44 = vpack.c.bf16 %v7490_v29, %v7489_v3  ;;  %v7493_v20 = vpack.c.bf16 %v7491_v21, %v7492_v49  ;;  %v7496_v39 = vpack.c.bf16 %v7494_v4, %v7495_v27  ;;  %v2826_v3 = vpop.permute.xlu0 %2825  ;;  %v7508_v29 = vld [vmem:[#allocation11_spill] sm:$0xff]  ;;  %v7509_v21 = vld [vmem:[#allocation9_spill] sm:$0xff]  ;;  %v7510_v4 = vld [vmem:[#allocation12_spill] sm:$0xff] }
 0x55c   : > { %v2598_v17 = vpack.c.bf16 %v2552_v33, %v2550_v35  ;;  %v2502_v38 = vpack.c.bf16 %v2456_v19, %v2454_v13  ;;  %v2597_v42 = vpack.c.bf16 %v2551_v43, %v2549_v31  ;;  %v2501_v47 = vpack.c.bf16 %v2455_v5, %v2453_v48  ;;  %v7504_v43 = vld [vmem:[#allocation7_spill] sm:$0xff] }
 0x55e   : > { %2643 = vmatprep.subr.bf16.mxu1 %v2598_v17  ;;  %2696 = vmatprep.subr.bf16.mxu0 %v2502_v38  ;;  %v2811_v48 = vpop.permute.xlu1 %2810  ;;  %v7505_v17 = vld [vmem:[#allocation8_spill] sm:$0xff] }
 0x55f   : > { %2644 = vmatpush2.bf16.xpose.msra.mxu1 %v2597_v42  ;;  %2697 = vmatpush2.bf16.xpose.msra.mxu0 %v2501_v47  ;;  %v7506_v42 = vld [vmem:[#allocation6_spill] sm:$0xff] }
 0x566   : > { %2646 = vmatmul.mubr.bf16.vlgmr.msra.gmra.mxu1 %v7493_v20  ;;  %2699 = vmatmul.mubr.bf16.vlgmr.msra.gmra.mxu0 %v7496_v39  ;;  %v2816_v20 = vpop.permute.xlu1 %2815 }
 0x567   : > { %2655 = vmatprep.mubr.bf16.mxu1 %v856_v8  ;;  %2708 = vmatprep.mubr.bf16.mxu0 %v1090_v44 }
 0x56e   : > { %2656 = vmatmul.mubr.bf16.gmra.mxu1 %v7499_v50  ;;  %2709 = vmatmul.mubr.bf16.gmra.mxu0 %v7502_v51 }
 0x56f   : > { %2775 = vmatprep.mubr.bf16.mxu1 %v7503_v26 }
 0x626   : > { %v2647_v63 = vpop.f32.mrf.mxu1  ;;  %v2700_v62 = vpop.f32.mrf.mxu0 }
 0x627   : > { %v2701_v15 = vadd.f32 %v2700_v62, %v2647_v63 }
 0x628   : > { %v2649_v25 = vpop.f32.mrf.mxu1  ;;  %v2702_v2 = vpop.f32.mrf.mxu0 }
 0x629   : > { %v2703_v18 = vadd.f32 %v2702_v2, %v2649_v25 }
 0x62a   : > { %v2651_v52 = vpop.f32.mrf.mxu1  ;;  %v2704_v14 = vpop.f32.mrf.mxu0 }
 0x62b   : > { %v2705_v59 = vadd.f32 %v2704_v14, %v2651_v52 }
 0x62c   : > { %v2653_v23 = vpop.f32.mrf.mxu1  ;;  %v2706_v60 = vpop.f32.mrf.mxu0 }
 0x62d   : > { %v2707_v30 = vadd.f32 %v2706_v60, %v2653_v23  ;;  %v2723_v61 = vpack.c.bf16 %v2705_v59, %v2701_v15  ;;  %v4299_v23 = vld [vmem:[%s4915_s24 + $0x38] sm:$0xff]   ;;  %v4308_v15 = vld [vmem:[%s6915_s12 + $0x8] sm:$0xff]  }
 0x62e   : > { %v2657_v24 = vpop.f32.mrf.mxu1  ;;  %v2710_v9 = vpop.f32.mrf.mxu0 }
 0x62f   : > { %v2711_v55 = vadd.f32 %v2710_v9, %v2657_v24  ;;  %v2724_v1 = vpack.c.bf16 %v2707_v30, %v2703_v18  ;;  %v4297_v24 = vld [vmem:[%s7512_s21] sm:$0xff]   ;;  %v3035_v9 = vsel %vm763_vm2, %v4299_v23, 0 }
 0x630   : > { %v2659_v40 = vpop.f32.mrf.mxu1  ;;  %v2712_v46 = vpop.f32.mrf.mxu0 }
 0x631   : > { %v2713_v34 = vadd.f32 %v2712_v46, %v2659_v40  ;;  %v4300_v40 = vld [vmem:[%s4915_s24 + $0x30] sm:$0xff]   ;;  %v4298_v46 = vld [vmem:[%s7512_s21 + $0x8] sm:$0xff]  }
 0x632   : > { %v2661_v41 = vpop.f32.mrf.mxu1  ;;  %v2714_v0 = vpop.f32.mrf.mxu0 }
 0x633   : > { %v2715_v7 = vadd.f32 %v2714_v0, %v2661_v41  ;;  %v4307_v41 = vld [vmem:[%s6915_s12] sm:$0xff]   ;;  %v3032_v0 = vsel %vm763_vm2, %v4300_v40, 0 }
 0x634   : > { %v2663_v6 = vpop.f32.mrf.mxu1  ;;  %v2716_v22 = vpop.f32.mrf.mxu0 }
 0x635   : > { %v2717_v10 = vadd.f32 %v2716_v22, %v2663_v6  ;;  %v2725_v36 = vpack.c.bf16 %v2715_v7, %v2711_v55  ;;  %v4301_v7 = vld [vmem:[%s4915_s24 + $0x28] sm:$0xff]   ;;  %v4302_v22 = vld [vmem:[%s4915_s24 + $0x20] sm:$0xff]   ;;  %v4304_v55 = vld [vmem:[%s4915_s24 + $0x10] sm:$0xff]  }
 0x636   : > { %v3029_v6 = vsel %vm763_vm2, %v4301_v7, 0  ;;  %v3026_v30 = vsel %vm763_vm2, %v4302_v22, 0  ;;  %v3020_v18 = vsel %vm763_vm2, %v4304_v55, 0 }
 0x637   : > { %v2726_v45 = vpack.c.bf16 %v2717_v10, %v2713_v34  ;;  %v4303_v34 = vld [vmem:[%s4915_s24 + $0x18] sm:$0xff]  }
 0x638   : > { %v3023_v10 = vsel %vm763_vm2, %v4303_v34, 0 }
 0x639   : > { %2755 = vmatprep.subr.bf16.mxu1 %v2726_v45  ;;  %v4305_v45 = vld [vmem:[%s4915_s24 + $0x8] sm:$0xff]  }
 0x63a   : > { %2756 = vmatpush1.bf16.msra.mxu1 %v2725_v36  ;;  %v3017_v59 = vsel %vm763_vm2, %v4305_v45, 0  ;;  %v4306_v36 = vld [vmem:[%s4915_s24] sm:$0xff]  }
 0x63b   : > { %2757 = vmatprep.subr.bf16.mxu1 %v2724_v1  ;;  %v3014_v1 = vsel %vm763_vm2, %v4306_v36, 0 }
 0x63e   : > { %2758 = vmatpush1.bf16.msra.mxu1 %v2723_v61 }
 0x641   : > { %4101 = vmatmul.mubr.msk.bf16.vlgmr.msra.gmra.mxu1 %vm763_vm2, %v4295_v53 }
 0x642   : > { %2785 = vmatprep.mubr.bf16.mxu1 %v7503_v26 }
 0x649   : > { %4102 = vmatmul.mubr.msk.bf16.gmra.mxu1 %vm763_vm2, %v4296_v56 }
 0x64a   : > { %2892 = vmatprep.mubr.bf16.mxu1 %v7503_v26 }
 0x701   : > { %v2777_v57 = vpop.f32.mrf.mxu1 }
 0x702   : > { %v2796_v16 = vadd.f32 %v2777_v57, %v7511_v11 }
 0x703   : > { %v2779_v37 = vpop.f32.mrf.mxu1 }
 0x704   : > { %v2797_v44 = vadd.f32 %v2779_v37, %v7508_v29  ;;  %v6428_v14 = vadd.f32 %v2811_v48, %v2796_v16 }
 0x705   : > { %v2781_v35 = vpop.f32.mrf.mxu1 }
 0x706   : > { %v2798_v27 = vadd.f32 %v2781_v35, %v7510_v4  ;;  %v6418_v63 = vadd.f32 %v2811_v48, %v2797_v44 }
 0x707   : > { %v2783_v13 = vpop.f32.mrf.mxu1 }
 0x708   : > { %v2799_v5 = vadd.f32 %v2783_v13, %v7504_v43  ;;  %v6422_v25 = vadd.f32 %v2816_v20, %v2798_v27 }
 0x709   : > { %v2787_v31 = vpop.f32.mrf.mxu1 }
 0x70a   : > { %v2800_v12 = vadd.f32 %v2787_v31, %v7507_v58  ;;  %v6409_v32 = vadd.f32 %v2816_v20, %v2799_v5  ;;  %v2840_v60 = vpack.c.bf16 %v6422_v25, %v6428_v14 }
 0x70b   : > { %v2789_v33 = vpop.f32.mrf.mxu1 }
 0x70c   : > { %v2801_v38 = vadd.f32 %v2789_v33, %v7505_v17  ;;  %v6416_v51 = vadd.f32 %v2821_v28, %v2800_v12  ;;  %v2841_v52 = vpack.c.bf16 %v6409_v32, %v6418_v63 }
 0x70d   : > { %v2791_v19 = vpop.f32.mrf.mxu1 }
 0x70e   : > { %v2802_v47 = vadd.f32 %v2791_v19, %v7506_v42  ;;  %v6411_v54 = vadd.f32 %v2821_v28, %v2801_v38 }
 0x70f   : > { %v2793_v8 = vpop.f32.mrf.mxu1 }
 0x710   : > { %v2803_v49 = vadd.f32 %v2793_v8, %v7509_v21  ;;  %v6407_v39 = vadd.f32 %v2826_v3, %v2802_v47 }
 0x712   : > { %v6413_v50 = vadd.f32 %v2826_v3, %v2803_v49  ;;  %v2842_v2 = vpack.c.bf16 %v6407_v39, %v6416_v51 }
 0x714   : > { %v2843_v62 = vpack.c.bf16 %v6413_v50, %v6411_v54 }
 0x716   : > { %2872 = vmatprep.subr.bf16.mxu1 %v2843_v62 }
 0x717   : > { %2873 = vmatpush1.bf16.msra.mxu1 %v2842_v2 }
 0x718   : > { %2874 = vmatprep.subr.bf16.mxu1 %v2841_v52 }
 0x71b   : > { %2875 = vmatpush1.bf16.msra.mxu1 %v2840_v60 }
 0x71c   : > { %4262 = vmatprep.subr.msk.bf16.mxu1 %vm763_vm2, %v4299_v23  ;;  %v3347_v23 = vlaneseq }
 0x71e   : > { %4105 = vmatmul.mubr.msk.bf16.vlgmr.msra.gmra.mxu1 %vm763_vm2, %v4297_v24  ;;  %v6491_v24 = vand.u32 127, %v3347_v23 }
 0x71f   : > { %2902 = vmatprep.mubr.bf16.mxu1 %v7503_v26  ;;  %4203 = vmatpush3.bf16.xpose.msra.mxu1 %v3035_v9 }
 0x720   : > { %4263 = vmatprep.subr.msk.bf16.mxu1 %vm763_vm2, %v4300_v40  ;;  %vm3349_vm3 = vcmp.lt.s32.totalorder %v6491_v24, 8 }
 0x726   : > { %4106 = vmatmul.mubr.msk.bf16.gmra.mxu1 %vm763_vm2, %v4298_v46 }
 0x727   : > { %4205 = vmatpush3.bf16.xpose.msra.mxu1 %v3032_v0  ;;  %4218 = vmatprep.mubr.msk.bf16.mxu1 %vm763_vm2, %v4307_v41 }
 0x728   : > { %4264 = vmatprep.subr.msk.bf16.mxu1 %vm763_vm2, %v4301_v7 }
 0x72f   : > { %4207 = vmatpush3.bf16.xpose.msra.mxu1 %v3029_v6 }
 0x730   : > { %4265 = vmatprep.subr.msk.bf16.mxu1 %vm763_vm2, %v4302_v22 }
 0x737   : > { %4209 = vmatpush3.bf16.xpose.msra.mxu1 %v3026_v30 }
 0x738   : > { %4266 = vmatprep.subr.msk.bf16.mxu1 %vm763_vm2, %v4303_v34 }
 0x73f   : > { %4211 = vmatpush3.bf16.xpose.msra.mxu1 %v3023_v10 }
 0x740   : > { %4267 = vmatprep.subr.msk.bf16.mxu1 %vm763_vm2, %v4304_v55 }
 0x747   : > { %4213 = vmatpush3.bf16.xpose.msra.mxu1 %v3020_v18 }
 0x748   : > { %4268 = vmatprep.subr.msk.bf16.mxu1 %vm763_vm2, %v4305_v45 }
 0x74f   : > { %4215 = vmatpush3.bf16.xpose.msra.mxu1 %v3017_v59 }
 0x750   : > { %4269 = vmatprep.subr.msk.bf16.mxu1 %vm763_vm2, %v4306_v36 }
 0x757   : > { %4217 = vmatpush3.bf16.xpose.msra.mxu1 %v3014_v1 }
 0x75e   : > { %4219 = vmatmul.mubr.msk.bf16.vlgmr.msra.gmra.mxu1 %vm763_vm2, %v4308_v15 }
 0x7de   : > { %v2894_v61 = vpop.f32.mrf.mxu1 }
 0x7e0   : > { %v2896_v53 = vpop.f32.mrf.mxu1 }
 0x7e2   : > { %v2898_v56 = vpop.f32.mrf.mxu1 }
 0x7e3   : > { %v2913_v57 = vpack.c.bf16 %v2898_v56, %v2894_v61 }
 0x7e4   : > { %v2900_v37 = vpop.f32.mrf.mxu1 }
 0x7e5   : > { %v2914_v28 = vpack.c.bf16 %v2900_v37, %v2896_v53  ;;  %3106 = vxpose.xlu0.c.b16.start [1/2] (short) %v2913_v57, 128 }
 0x7e6   : > { %v2904_v35 = vpop.f32.mrf.mxu1 }
 0x7e7   : > { %3122 = vxpose.xlu1.c.b16.start [1/2] (short) %v2914_v28, 128 }
 0x7e8   : > { %v2906_v13 = vpop.f32.mrf.mxu1 }
 0x7ea   : > { %v2908_v31 = vpop.f32.mrf.mxu1 }
 0x7eb   : > { %v2915_v48 = vpack.c.bf16 %v2908_v31, %v2904_v35 }
 0x7ec   : > { %v2910_v33 = vpop.f32.mrf.mxu1 }
 0x7ed   : > { %v2916_v19 = vpack.c.bf16 %v2910_v33, %v2906_v13  ;;  %3107 = vxpose.xlu0.c.b16.end [2/2] (short) %v2915_v48, 128 }
 0x7ef   : > { %3123 = vxpose.xlu1.c.b16.end [2/2] (short) %v2916_v19, 128 }
 0x81e   : > { %v4220_v43 = vpop.f32.mrf.mxu1 }
 0x820   : > { %v3071_v5 = vpop.f32.mrf.mxu1 }
 0x822   : > { %v4221_v17 = vpop.f32.mrf.mxu1 }
 0x823   : > { %v3103_v38 = vpack.c.bf16 %v4221_v17, %v4220_v43 }
 0x824   : > { %v3074_v42 = vpop.f32.mrf.mxu1 }
 0x825   : > { %4226 = vmatprep.subr.bf16.mxu0 %v3103_v38  ;;  %v3102_v47 = vpack.c.bf16 %v3074_v42, %v3071_v5 }
 0x826   : > { %4227 = vmatpush3.bf16.msra.mxu0 %v3103_v38 }
 0x827   : > { %4228 = vmatprep.subr.bf16.mxu0 %v3102_v47 }
 0x82a   : > { %4229 = vmatpush3.bf16.msra.mxu0 %v3102_v47 }
 0x84b   : > { %v3114_v58 = vpop.trf.xlu0 }
 0x84c   : > { %4230 = vmatprep.mubr.msk.bf16.mxu0 %vm763_vm2, %v3114_v58 }
 0x84d   : > { %v3130_v29 = vpop.trf.xlu1 }
 0x84f   : > { %v3115_v12 = vpop.trf.xlu0 }
 0x850   : > { %4231 = vmatmul.mubr.msk.bf16.vlgmr.msra.gmra.mxu0 %vm763_vm2, %v3115_v12 }
 0x851   : > { %v3131_v49 = vpop.trf.xlu1 }
 0x853   : > { %v3116_v8 = vpop.trf.xlu0 }
 0x854   : > { %4234 = vmatprep.mubr.msk.bf16.mxu0 %vm763_vm2, %v3116_v8 }
 0x855   : > { %v3132_v4 = vpop.trf.xlu1 }
 0x857   : > { %v3117_v3 = vpop.trf.xlu0 }
 0x858   : > { %4235 = vmatmul.mubr.msk.bf16.gmra.mxu0 %vm763_vm2, %v3117_v3 }
 0x859   : > { %v3133_v11 = vpop.trf.xlu1 }
 0x85b   : > { %v3118_v44 = vpop.trf.xlu0 }
 0x85c   : > { %4238 = vmatprep.mubr.msk.bf16.mxu0 %vm763_vm2, %v3118_v44 }
 0x85d   : > { %v3134_v16 = vpop.trf.xlu1 }
 0x85f   : > { %v3119_v21 = vpop.trf.xlu0 }
 0x860   : > { %4239 = vmatmul.mubr.msk.bf16.gmra.mxu0 %vm763_vm2, %v3119_v21 }
 0x861   : > { %v3135_v62 = vpop.trf.xlu1 }
 0x863   : > { %v3120_v20 = vpop.trf.xlu0 }
 0x864   : > { %4242 = vmatprep.mubr.msk.bf16.mxu0 %vm763_vm2, %v3120_v20 }
 0x865   : > { %v3136_v2 = vpop.trf.xlu1 }
 0x867   : > { %v3121_v27 = vpop.trf.xlu0 }
 0x868   : > { %4243 = vmatmul.mubr.msk.bf16.gmra.mxu0 %vm763_vm2, %v3121_v27 }
 0x869   : > { %4246 = vmatprep.mubr.msk.bf16.mxu0 %vm763_vm2, %v3130_v29  ;;  %v3137_v52 = vpop.trf.xlu1 }
 0x870   : > { %4247 = vmatmul.mubr.msk.bf16.gmra.mxu0 %vm763_vm2, %v3131_v49 }
 0x871   : > { %4250 = vmatprep.mubr.msk.bf16.mxu0 %vm763_vm2, %v3132_v4 }
 0x878   : > { %4251 = vmatmul.mubr.msk.bf16.gmra.mxu0 %vm763_vm2, %v3133_v11 }
 0x879   : > { %4254 = vmatprep.mubr.msk.bf16.mxu0 %vm763_vm2, %v3134_v16 }
 0x880   : > { %4255 = vmatmul.mubr.msk.bf16.gmra.mxu0 %vm763_vm2, %v3135_v62 }
 0x881   : > { %4258 = vmatprep.mubr.msk.bf16.mxu0 %vm763_vm2, %v3136_v2 }
 0x888   : > { %4259 = vmatmul.mubr.msk.bf16.gmra.mxu0 %vm763_vm2, %v3137_v52 }
 0x910   : > { %v6489_v60 = vpop.f32.mrf.mxu0 }
 0x912   : > { %v6493_v9 = vpop.f32.mrf.mxu0 }
 0x914   : > { %v6495_v40 = vpop.f32.mrf.mxu0 }
 0x916   : > { %v3223_v46 = vpop.f32.mrf.mxu0 }
 0x917   : > { %v6500_v41 = vsel %vm3349_vm3, %v3223_v46, -1e+30 }
 0x918   : > { %v4236_v0 = vpop.f32.mrf.mxu0 }
 0x919   : > { %v6603_v62 = vsel %vm3349_vm3, %v4236_v0, -1e+30 }
 0x91a   : > { %v6502_v7 = vpop.f32.mrf.mxu0 }
 0x91b   : > { %v6625_v46 = vsel %vm3349_vm3, %v6502_v7, -1e+30  ;;  %v6648_v7 = vsel %vm3349_vm3, %v6489_v60, -1e+30  ;;  %v6668_v60 = vsel %vm3349_vm3, %v6495_v40, -1e+30 }
 0x91c   : > { %v6504_v6 = vpop.f32.mrf.mxu0 }
 0x91d   : > { %v6614_v52 = vsel %vm3349_vm3, %v6504_v6, -1e+30 }
 0x91e   : > { %v6506_v22 = vpop.f32.mrf.mxu0 }
 0x91f   : > { %v6636_v6 = vsel %vm3349_vm3, %v6506_v22, -1e+30  ;;  %v4309_v22 = vld [vmem:[%s6915_s12 + $0x10] sm:$0xff]  }
 0x920   : > { %v4240_v30 = vpop.f32.mrf.mxu0  ;;  %4222 = vmatprep.mubr.msk.bf16.mxu1 %vm763_vm2, %v4309_v22 }
 0x921   : > { %v6563_v44 = vsel %vm3349_vm3, %v4240_v30, -1e+30 }
 0x922   : > { %v3252_v34 = vpop.f32.mrf.mxu0 }
 0x923   : > { %v6583_v4 = vsel %vm3349_vm3, %v3252_v34, -1e+30 }
 0x924   : > { %v4241_v10 = vpop.f32.mrf.mxu0 }
 0x925   : > { %v6573_v49 = vsel %vm3349_vm3, %v4241_v10, -1e+30  ;;  %v4310_v10 = vld [vmem:[%s6915_s12 + $0x18] sm:$0xff]  }
 0x926   : > { %v3255_v55 = vpop.f32.mrf.mxu0  ;;  %4223 = vmatmul.mubr.msk.bf16.gmra.mxu1 %vm763_vm2, %v4310_v10 }
 0x927   : > { %v6593_v11 = vsel %vm3349_vm3, %v3255_v55, -1e+30  ;;  %3797 = vmatprep.mubr.bf16.mxu1 %v7503_v26 }
 0x928   : > { %v4244_v18 = vpop.f32.mrf.mxu0 }
 0x929   : > { %v6523_v17 = vsel %vm3349_vm3, %v4244_v18, -1e+30  ;;  %v6681_v18 = vsel %vm3349_vm3, %v6493_v9, -1e+30 }
 0x92a   : > { %v3268_v45 = vpop.f32.mrf.mxu0 }
 0x92b   : > { %v6543_v12 = vsel %vm3349_vm3, %v3268_v45, -1e+30 }
 0x92c   : > { %v4245_v59 = vpop.f32.mrf.mxu0 }
 0x92d   : > { %v6533_v42 = vsel %vm3349_vm3, %v4245_v59, -1e+30 }
 0x92e   : > { %v3271_v36 = vpop.f32.mrf.mxu0 }
 0x92f   : > { %v6553_v3 = vsel %vm3349_vm3, %v3271_v36, -1e+30 }
 0x930   : > { %v6508_v1 = vpop.f32.mrf.mxu0 }
 0x931   : > { %v6641_v30 = vsel %vm3349_vm3, %v6508_v1, -1e+30 }
 0x932   : > { %v6510_v15 = vpop.f32.mrf.mxu0 }
 0x933   : > { %v6673_v55 = vsel %vm3349_vm3, %v6510_v15, -1e+30 }
 0x934   : > { %v6512_v61 = vpop.f32.mrf.mxu0 }
 0x935   : > { %v6653_v34 = vsel %vm3349_vm3, %v6512_v61, -1e+30 }
 0x936   : > { %v6514_v53 = vpop.f32.mrf.mxu0 }
 0x937   : > { %v6686_v40 = vsel %vm3349_vm3, %v6514_v53, -1e+30 }
 0x938   : > { %v4252_v56 = vpop.f32.mrf.mxu0 }
 0x939   : > { %v6597_v16 = vsel %vm3349_vm3, %v4252_v56, -1e+30 }
 0x93a   : > { %v3300_v57 = vpop.f32.mrf.mxu0 }
 0x93b   : > { %v6618_v23 = vsel %vm3349_vm3, %v3300_v57, -1e+30 }
 0x93c   : > { %v4253_v37 = vpop.f32.mrf.mxu0 }
 0x93d   : > { %v6607_v2 = vsel %vm3349_vm3, %v4253_v37, -1e+30 }
 0x93e   : > { %v3303_v28 = vpop.f32.mrf.mxu0 }
 0x93f   : > { %v6629_v0 = vsel %vm3349_vm3, %v3303_v28, -1e+30 }
 0x940   : > { %v4256_v35 = vpop.f32.mrf.mxu0 }
 0x941   : > { %v6557_v29 = vsel %vm3349_vm3, %v4256_v35, -1e+30 }
 0x942   : > { %v3316_v13 = vpop.f32.mrf.mxu0 }
 0x943   : > { %v6577_v20 = vsel %vm3349_vm3, %v3316_v13, -1e+30 }
 0x944   : > { %v4257_v31 = vpop.f32.mrf.mxu0 }
 0x945   : > { %v6567_v21 = vsel %vm3349_vm3, %v4257_v31, -1e+30 }
 0x946   : > { %v3319_v48 = vpop.f32.mrf.mxu0 }
 0x947   : > { %v6587_v27 = vsel %vm3349_vm3, %v3319_v48, -1e+30 }
 0x948   : > { %v4260_v33 = vpop.f32.mrf.mxu0 }
 0x949   : > { %v6518_v19 = vsel %vm3349_vm3, %v4260_v33, -1e+30 }
 0x94a   : > { %3444 = vmax.xlane.f32.xlu0 %v6518_v19  ;;  %v3332_v43 = vpop.f32.mrf.mxu0 }
 0x94b   : > { %v6537_v47 = vsel %vm3349_vm3, %v3332_v43, -1e+30 }
 0x94c   : > { %v4261_v5 = vpop.f32.mrf.mxu0 }
 0x94d   : > { %v6527_v38 = vsel %vm3349_vm3, %v4261_v5, -1e+30 }
 0x94e   : > { %3412 = vmax.xlane.f32.xlu0 %v6523_v17  ;;  %3446 = vmax.xlane.f32.xlu1 %v6527_v38  ;;  %v3335_v58 = vpop.f32.mrf.mxu0 }
 0x94f   : > { %v6547_v8 = vsel %vm3349_vm3, %v3335_v58, -1e+30 }
 0x952   : > { %3414 = vmax.xlane.f32.xlu0 %v6533_v42  ;;  %3440 = vmax.xlane.f32.xlu1 %v6537_v47 }
 0x956   : > { %3408 = vmax.xlane.f32.xlu1 %v6543_v12  ;;  %3442 = vmax.xlane.f32.xlu0 %v6547_v8 }
 0x95a   : > { %3436 = vmax.xlane.f32.xlu1 %v6557_v29  ;;  %3410 = vmax.xlane.f32.xlu0 %v6553_v3 }
 0x95e   : > { %3404 = vmax.xlane.f32.xlu1 %v6563_v44  ;;  %3438 = vmax.xlane.f32.xlu0 %v6567_v21 }
 0x962   : > { %3432 = vmax.xlane.f32.xlu1 %v6577_v20  ;;  %3406 = vmax.xlane.f32.xlu0 %v6573_v49 }
 0x966   : > { %3400 = vmax.xlane.f32.xlu1 %v6583_v4  ;;  %3434 = vmax.xlane.f32.xlu0 %v6587_v27 }
 0x96a   : > { %3428 = vmax.xlane.f32.xlu1 %v6597_v16  ;;  %3402 = vmax.xlane.f32.xlu0 %v6593_v11 }
 0x96e   : > { %3396 = vmax.xlane.f32.xlu1 %v6603_v62  ;;  %3430 = vmax.xlane.f32.xlu0 %v6607_v2 }
 0x972   : > { %3424 = vmax.xlane.f32.xlu1 %v6618_v23  ;;  %3398 = vmax.xlane.f32.xlu0 %v6614_v52 }
 0x976   : > { %3392 = vmax.xlane.f32.xlu1 %v6625_v46  ;;  %3426 = vmax.xlane.f32.xlu0 %v6629_v0 }
 0x97a   : > { %3420 = vmax.xlane.f32.xlu1 %v6641_v30  ;;  %3394 = vmax.xlane.f32.xlu0 %v6636_v6 }
 0x97e   : > { %3388 = vmax.xlane.f32.xlu1 %v6648_v7  ;;  %3422 = vmax.xlane.f32.xlu0 %v6653_v34 }
 0x982   : > { %3416 = vmax.xlane.f32.xlu1 %v6673_v55  ;;  %3390 = vmax.xlane.f32.xlu0 %v6668_v60 }
 0x986   : > { %3384 = vmax.xlane.f32.xlu1 %v6681_v18  ;;  %3418 = vmax.xlane.f32.xlu0 %v6686_v40 }
 0x98a   : > { %3386 = vmax.xlane.f32.xlu0 %v6500_v41 }
 0x9d3   : > { %v3445_v45 = vpop.xlane.xlu0 %3444 }
 0x9d4   : > { %v3478_v59 = vsub.f32 %v6518_v19, %v3445_v45 }
 0x9d6   : > { %v3540_v36 = vmul.f32 1.442695, %v3478_v59 }
 0x9d7   : > { %v3413_v1 = vpop.xlane.xlu0 %3412  ;;  %v3447_v15 = vpop.xlane.xlu1 %3446 }
 0x9d8   : > { %4633 = vpow2.f32 %v3540_v36  ;;  %v3462_v9 = vsub.f32 %v6523_v17, %v3413_v1  ;;  %v3479_v61 = vsub.f32 %v6527_v38, %v3447_v15 }
 0x9da   : > { %v3508_v24 = vmul.f32 1.442695, %v3462_v9  ;;  %v3542_v53 = vmul.f32 1.442695, %v3479_v61 }
 0x9db   : > { %v3415_v56 = vpop.xlane.xlu0 %3414  ;;  %v3441_v57 = vpop.xlane.xlu1 %3440 }
 0x9dc   : > { %4635 = vpow2.f32 %v3508_v24  ;;  %v3463_v37 = vsub.f32 %v6533_v42, %v3415_v56  ;;  %v3476_v28 = vsub.f32 %v6537_v47, %v3441_v57 }
 0x9dd   : > { %4637 = vpow2.f32 %v3542_v53 }
 0x9de   : > { %v3510_v35 = vmul.f32 1.442695, %v3463_v37  ;;  %v3536_v13 = vmul.f32 1.442695, %v3476_v28 }
 0x9df   : > { %v3409_v31 = vpop.xlane.xlu1 %3408  ;;  %v3443_v48 = vpop.xlane.xlu0 %3442 }
 0x9e0   : > { %4639 = vpow2.f32 %v3510_v35  ;;  %v3460_v33 = vsub.f32 %v6543_v12, %v3409_v31  ;;  %v3477_v19 = vsub.f32 %v6547_v8, %v3443_v48 }
 0x9e1   : > { %4641 = vpow2.f32 %v3536_v13 }
 0x9e2   : > { %v3504_v43 = vmul.f32 1.442695, %v3460_v33  ;;  %v3538_v5 = vmul.f32 1.442695, %v3477_v19 }
 0x9e3   : > { %v3437_v17 = vpop.xlane.xlu1 %3436  ;;  %v3411_v38 = vpop.xlane.xlu0 %3410 }
 0x9e4   : > { %4643 = vpow2.f32 %v3504_v43  ;;  %v3474_v42 = vsub.f32 %v6557_v29, %v3437_v17  ;;  %v3461_v47 = vsub.f32 %v6553_v3, %v3411_v38 }
 0x9e5   : > { %v6700_v58 = vpop.eup %4633  ;;  %4645 = vpow2.f32 %v3538_v5 }
 0x9e6   : > { %v3532_v22 = vmul.f32 1.442695, %v3474_v42  ;;  %v3506_v10 = vmul.f32 1.442695, %v3461_v47  ;;  %3604 = vadd.xlane.f32.xlu1 %v6700_v58 }
 0x9e7   : > { %v3405_v12 = vpop.xlane.xlu1 %3404  ;;  %v3439_v45 = vpop.xlane.xlu0 %3438 }
 0x9e8   : > { %4647 = vpow2.f32 %v3532_v22  ;;  %v3458_v8 = vsub.f32 %v6563_v44, %v3405_v12  ;;  %v3475_v59 = vsub.f32 %v6567_v21, %v3439_v45 }
 0x9e9   : > { %v6705_v36 = vpop.eup %4635  ;;  %4649 = vpow2.f32 %v3506_v10 }
 0x9ea   : > { %v6707_v29 = vpop.eup %4637  ;;  %v3500_v3 = vmul.f32 1.442695, %v3458_v8  ;;  %v3534_v1 = vmul.f32 1.442695, %v3475_v59  ;;  %3572 = vadd.xlane.f32.xlu1 %v6705_v36 }
 0x9eb   : > { %3606 = vadd.xlane.f32.xlu0 %v6707_v29  ;;  %v3433_v15 = vpop.xlane.xlu1 %3432  ;;  %v3407_v9 = vpop.xlane.xlu0 %3406 }
 0x9ec   : > { %4651 = vpow2.f32 %v3500_v3  ;;  %v3472_v61 = vsub.f32 %v6577_v20, %v3433_v15  ;;  %v3459_v44 = vsub.f32 %v6573_v49, %v3407_v9 }
 0x9ed   : > { %v6713_v24 = vpop.eup %4639  ;;  %4653 = vpow2.f32 %v3534_v1 }
 0x9ee   : > { %v6715_v21 = vpop.eup %4641  ;;  %v3528_v53 = vmul.f32 1.442695, %v3472_v61  ;;  %v3502_v56 = vmul.f32 1.442695, %v3459_v44 }
 0x9ef   : > { %3600 = vadd.xlane.f32.xlu1 %v6715_v21  ;;  %3574 = vadd.xlane.f32.xlu0 %v6713_v24  ;;  %v3401_v57 = vpop.xlane.xlu1 %3400  ;;  %v3435_v37 = vpop.xlane.xlu0 %3434 }
 0x9f0   : > { %4655 = vpow2.f32 %v3528_v53  ;;  %v3456_v28 = vsub.f32 %v6583_v4, %v3401_v57  ;;  %v3473_v20 = vsub.f32 %v6587_v27, %v3435_v37 }
 0x9f1   : > { %v6721_v35 = vpop.eup %4643  ;;  %4657 = vpow2.f32 %v3502_v56 }
 0x9f2   : > { %v6723_v49 = vpop.eup %4645  ;;  %v3496_v13 = vmul.f32 1.442695, %v3456_v28  ;;  %v3530_v31 = vmul.f32 1.442695, %v3473_v20 }
 0x9f3   : > { %3568 = vadd.xlane.f32.xlu1 %v6721_v35  ;;  %3602 = vadd.xlane.f32.xlu0 %v6723_v49  ;;  %v3429_v48 = vpop.xlane.xlu1 %3428  ;;  %v3403_v33 = vpop.xlane.xlu0 %3402 }
 0x9f4   : > { %4659 = vpow2.f32 %v3496_v13  ;;  %v3470_v19 = vsub.f32 %v6597_v16, %v3429_v48  ;;  %v3457_v4 = vsub.f32 %v6593_v11, %v3403_v33 }
 0x9f5   : > { %v6729_v43 = vpop.eup %4647  ;;  %4661 = vpow2.f32 %v3530_v31 }
 0x9f6   : > { %v6731_v27 = vpop.eup %4649  ;;  %v3524_v5 = vmul.f32 1.442695, %v3470_v19  ;;  %v3498_v17 = vmul.f32 1.442695, %v3457_v4 }
 0x9f7   : > { %3596 = vadd.xlane.f32.xlu1 %v6729_v43  ;;  %3570 = vadd.xlane.f32.xlu0 %v6731_v27  ;;  %v3397_v38 = vpop.xlane.xlu1 %3396  ;;  %v3431_v42 = vpop.xlane.xlu0 %3430 }
 0x9f8   : > { %4663 = vpow2.f32 %v3524_v5  ;;  %v3454_v47 = vsub.f32 %v6603_v62, %v3397_v38  ;;  %v3471_v16 = vsub.f32 %v6607_v2, %v3431_v42 }
 0x9f9   : > { %v6737_v22 = vpop.eup %4651  ;;  %4665 = vpow2.f32 %v3498_v17 }
 0x9fa   : > { %v6739_v11 = vpop.eup %4653  ;;  %v3492_v10 = vmul.f32 1.442695, %v3454_v47  ;;  %v3526_v12 = vmul.f32 1.442695, %v3471_v16 }
 0x9fb   : > { %3564 = vadd.xlane.f32.xlu1 %v6737_v22  ;;  %3598 = vadd.xlane.f32.xlu0 %v6739_v11  ;;  %v3425_v45 = vpop.xlane.xlu1 %3424  ;;  %v3399_v8 = vpop.xlane.xlu0 %3398 }
 0x9fc   : > { %4667 = vpow2.f32 %v3492_v10  ;;  %v3468_v59 = vsub.f32 %v6618_v23, %v3425_v45  ;;  %v3455_v62 = vsub.f32 %v6614_v52, %v3399_v8 }
 0x9fd   : > { %v6745_v3 = vpop.eup %4655  ;;  %4669 = vpow2.f32 %v3526_v12 }
 0x9fe   : > { %v6747_v2 = vpop.eup %4657  ;;  %v3520_v1 = vmul.f32 1.442695, %v3468_v59  ;;  %v3494_v15 = vmul.f32 1.442695, %v3455_v62 }
 0x9ff   : > { %3592 = vadd.xlane.f32.xlu1 %v6745_v3  ;;  %3566 = vadd.xlane.f32.xlu0 %v6747_v2  ;;  %v3393_v9 = vpop.xlane.xlu1 %3392  ;;  %v3427_v61 = vpop.xlane.xlu0 %3426 }
 0xa00   : > { %4671 = vpow2.f32 %v3520_v1  ;;  %v3452_v44 = vsub.f32 %v6625_v46, %v3393_v9  ;;  %v3469_v23 = vsub.f32 %v6629_v0, %v3427_v61 }
 0xa01   : > { %v6753_v53 = vpop.eup %4659  ;;  %4673 = vpow2.f32 %v3494_v15 }
 0xa02   : > { %v6755_v52 = vpop.eup %4661  ;;  %v3488_v56 = vmul.f32 1.442695, %v3452_v44  ;;  %v3522_v57 = vmul.f32 1.442695, %v3469_v23 }
 0xa03   : > { %3560 = vadd.xlane.f32.xlu1 %v6753_v53  ;;  %3594 = vadd.xlane.f32.xlu0 %v6755_v52  ;;  %v3421_v37 = vpop.xlane.xlu1 %3420  ;;  %v3395_v28 = vpop.xlane.xlu0 %3394 }
 0xa04   : > { %4675 = vpow2.f32 %v3488_v56  ;;  %v3466_v20 = vsub.f32 %v6641_v30, %v3421_v37  ;;  %v3453_v46 = vsub.f32 %v6636_v6, %v3395_v28 }
 0xa05   : > { %v6761_v13 = vpop.eup %4663  ;;  %4677 = vpow2.f32 %v3522_v57 }
 0xa06   : > { %v6763_v0 = vpop.eup %4665  ;;  %v3516_v31 = vmul.f32 1.442695, %v3466_v20  ;;  %v3490_v48 = vmul.f32 1.442695, %v3453_v46 }
 0xa07   : > { %3588 = vadd.xlane.f32.xlu1 %v6761_v13  ;;  %3562 = vadd.xlane.f32.xlu0 %v6763_v0  ;;  %v3389_v33 = vpop.xlane.xlu1 %3388  ;;  %v3423_v19 = vpop.xlane.xlu0 %3422 }
 0xa08   : > { %4679 = vpow2.f32 %v3516_v31  ;;  %v3450_v4 = vsub.f32 %v6648_v7, %v3389_v33  ;;  %v3467_v30 = vsub.f32 %v6653_v34, %v3423_v19  ;;  %v3828_v31 = vld [vmem:[%s6917_s14 + $0x10] sm:$0xff]  ;;  %v3827_v33 = vld [vmem:[%s6917_s14 + $0x8] sm:$0xff]  ;;  %v3829_v19 = vld [vmem:[%s6917_s14 + $0x18] sm:$0xff] }
 0xa09   : > { %v6769_v5 = vpop.eup %4667  ;;  %4681 = vpow2.f32 %v3490_v48  ;;  %v3826_v48 = vld [vmem:[%s6917_s14] sm:$0xff] }
 0xa0a   : > { %v6771_v6 = vpop.eup %4669  ;;  %v3484_v17 = vmul.f32 1.442695, %v3450_v4  ;;  %v3518_v38 = vmul.f32 1.442695, %v3467_v30  ;;  %v3863_v4 = vld [vmem:[%s6919_s16] sm:$0xf]  ;;  %v4224_v30 = vpop.f32.mrf.mxu1 }
 0xa0b   : > { %3556 = vadd.xlane.f32.xlu1 %v6769_v5  ;;  %3590 = vadd.xlane.f32.xlu0 %v6771_v6  ;;  %v3417_v42 = vpop.xlane.xlu1 %3416  ;;  %v3391_v47 = vpop.xlane.xlu0 %3390 }
 0xa0c   : > { %4683 = vpow2.f32 %v3484_v17  ;;  %v3464_v16 = vsub.f32 %v6673_v55, %v3417_v42  ;;  %v3451_v7 = vsub.f32 %v6668_v60, %v3391_v47  ;;  %v3087_v17 = vpop.f32.mrf.mxu1 }
 0xa0d   : > { %v6777_v10 = vpop.eup %4671  ;;  %4685 = vpow2.f32 %v3518_v38 }
 0xa0e   : > { %v6779_v34 = vpop.eup %4673  ;;  %v3512_v12 = vmul.f32 1.442695, %v3464_v16  ;;  %v3486_v45 = vmul.f32 1.442695, %v3451_v7  ;;  %v4225_v38 = vpop.f32.mrf.mxu1 }
 0xa0f   : > { %3584 = vadd.xlane.f32.xlu1 %v6777_v10  ;;  %3558 = vadd.xlane.f32.xlu0 %v6779_v34  ;;  %v3385_v8 = vpop.xlane.xlu1 %3384  ;;  %v3419_v59 = vpop.xlane.xlu0 %3418  ;;  %v6834_v42 = vpack.c.bf16 %v4225_v38, %v4224_v30 }
 0xa10   : > { %4687 = vpow2.f32 %v3512_v12  ;;  %v3448_v62 = vsub.f32 %v6681_v18, %v3385_v8  ;;  %v3465_v55 = vsub.f32 %v6686_v40, %v3419_v59  ;;  %v3090_v47 = vpop.f32.mrf.mxu1 }
 0xa11   : > { %v6785_v1 = vpop.eup %4675  ;;  %4689 = vpow2.f32 %v3486_v45  ;;  %v6836_v16 = vpack.c.bf16 %v3090_v47, %v3087_v17 }
 0xa12   : > { %v6787_v60 = vpop.eup %4677  ;;  %v3480_v15 = vmul.f32 1.442695, %v3448_v62  ;;  %v3514_v9 = vmul.f32 1.442695, %v3465_v55 }
 0xa13   : > { %3552 = vadd.xlane.f32.xlu1 %v6785_v1  ;;  %3586 = vadd.xlane.f32.xlu0 %v6787_v60  ;;  %v3387_v61 = vpop.xlane.xlu0 %3386 }
 0xa14   : > { %4691 = vpow2.f32 %v3480_v15  ;;  %v3449_v44 = vsub.f32 %v6500_v41, %v3387_v61  ;;  %4198 = vmatprep.mubr.bf16.mxu0 %v6836_v16 }
 0xa15   : > { %v6792_v23 = vpop.eup %4679  ;;  %4693 = vpow2.f32 %v3514_v9 }
 0xa16   : > { %v6794_v18 = vpop.eup %4681  ;;  %v3482_v40 = vmul.f32 1.442695, %v3449_v44 }
 0xa17   : > { %3580 = vadd.xlane.f32.xlu1 %v6792_v23  ;;  %3554 = vadd.xlane.f32.xlu0 %v6794_v18 }
 0xa18   : > { %4695 = vpow2.f32 %v3482_v40 }
 0xa19   : > { %v6798_v56 = vpop.eup %4683 }
 0xa1a   : > { %v6800_v57 = vpop.eup %4685 }
 0xa1b   : > { %3548 = vadd.xlane.f32.xlu1 %v6798_v56  ;;  %3582 = vadd.xlane.f32.xlu0 %v6800_v57 }
 0xa1d   : > { %v6804_v41 = vpop.eup %4687 }
 0xa1e   : > { %v6806_v37 = vpop.eup %4689 }
 0xa1f   : > { %3576 = vadd.xlane.f32.xlu1 %v6804_v41  ;;  %3550 = vadd.xlane.f32.xlu0 %v6806_v37 }
 0xa21   : > { %v6810_v28 = vpop.eup %4691 }
 0xa22   : > { %v6812_v20 = vpop.eup %4693 }
 0xa23   : > { %3544 = vadd.xlane.f32.xlu1 %v6810_v28  ;;  %3578 = vadd.xlane.f32.xlu0 %v6812_v20 }
 0xa25   : > { %v6816_v46 = vpop.eup %4695 }
 0xa27   : > { %3546 = vadd.xlane.f32.xlu0 %v6816_v46 }
 0xa34   : > { %3842 = vperm.xlu1 %4281, %v3828_v31  }
 0xa38   : > { %3832 = vperm.xlu1 %4281, %v3826_v48  }
 0xa3c   : > { %3837 = vperm.xlu1 %4281, %v3827_v33  }
 0xa3d   : > { %3847 = vperm.xlu0 %4280, %v3829_v19  }
 0xa41   : > { %3866 = vperm.xlu0 %4280, %v3863_v4  }
 0xa6f   : > { %v3605_v7 = vpop.xlane.xlu1 %3604 }
 0xa70   : > { %4697 = vrcp.f32 %v3605_v7 }
 0xa73   : > { %v3573_v12 = vpop.xlane.xlu1 %3572 }
 0xa74   : > { %v3607_v45 = vpop.xlane.xlu0 %3606 }
 0xa75   : > { %4699 = vrcp.f32 %v3607_v45 }
 0xa76   : > { %4701 = vrcp.f32 %v3573_v12 }
 0xa78   : > { %v3601_v8 = vpop.xlane.xlu1 %3600  ;;  %v3575_v59 = vpop.xlane.xlu0 %3574 }
 0xa79   : > { %4703 = vrcp.f32 %v3575_v59 }
 0xa7a   : > { %4705 = vrcp.f32 %v3601_v8 }
 0xa7c   : > { %v3569_v62 = vpop.xlane.xlu1 %3568  ;;  %v3603_v55 = vpop.xlane.xlu0 %3602 }
 0xa7d   : > { %4707 = vrcp.f32 %v3603_v55  ;;  %v4698_v15 = vpop.eup %4697 }
 0xa7e   : > { %4709 = vrcp.f32 %v3569_v62  ;;  %v3670_v40 = vmul.f32 %v4698_v15, %v6700_v58 }
 0xa80   : > { %v3597_v9 = vpop.xlane.xlu1 %3596  ;;  %v3571_v61 = vpop.xlane.xlu0 %3570 }
 0xa81   : > { %4711 = vrcp.f32 %v3571_v61 }
 0xa82   : > { %v4700_v44 = vpop.eup %4699  ;;  %4713 = vrcp.f32 %v3597_v9 }
 0xa83   : > { %v3671_v31 = vmul.f32 %v4700_v44, %v6707_v29  ;;  %v4702_v19 = vpop.eup %4701 }
 0xa84   : > { %v3565_v48 = vpop.xlane.xlu1 %3564  ;;  %v3599_v33 = vpop.xlane.xlu0 %3598  ;;  %v3654_v47 = vmul.f32 %v4702_v19, %v6705_v36 }
 0xa85   : > { %v3687_v4 = vpack.c.bf16 %v3671_v31, %v3670_v40  ;;  %4715 = vrcp.f32 %v3599_v33 }
 0xa86   : > { %v4704_v30 = vpop.eup %4703  ;;  %4717 = vrcp.f32 %v3565_v48 }
 0xa87   : > { %4182 = vmatprep.subr.bf16.mxu0 %v3687_v4  ;;  %v3655_v7 = vmul.f32 %v4704_v30, %v6713_v24  ;;  %v4706_v12 = vpop.eup %4705 }
 0xa88   : > { %v3593_v17 = vpop.xlane.xlu1 %3592  ;;  %v3567_v38 = vpop.xlane.xlu0 %3566  ;;  %v3668_v59 = vmul.f32 %v4706_v12, %v6715_v21 }
 0xa89   : > { %4719 = vrcp.f32 %v3567_v38  ;;  %v3679_v58 = vpack.c.bf16 %v3655_v7, %v3654_v47 }
 0xa8a   : > { %v4708_v45 = vpop.eup %4707  ;;  %4721 = vrcp.f32 %v3593_v17 }
 0xa8b   : > { %4183 = vmatpush3.bf16.xpose.msra.mxu0 %v3679_v58  ;;  %v3669_v62 = vmul.f32 %v4708_v45, %v6723_v49  ;;  %v4710_v55 = vpop.eup %4709 }
 0xa8c   : > { %v3561_v29 = vpop.xlane.xlu1 %3560  ;;  %v3595_v8 = vpop.xlane.xlu0 %3594  ;;  %v3652_v61 = vmul.f32 %v4710_v55, %v6721_v35 }
 0xa8d   : > { %4723 = vrcp.f32 %v3595_v8  ;;  %v3686_v15 = vpack.c.bf16 %v3669_v62, %v3668_v59 }
 0xa8e   : > { %v4712_v9 = vpop.eup %4711  ;;  %4725 = vrcp.f32 %v3561_v29 }
 0xa8f   : > { %4184 = vmatprep.subr.bf16.mxu0 %v3686_v15  ;;  %v3653_v44 = vmul.f32 %v4712_v9, %v6731_v27  ;;  %v4714_v40 = vpop.eup %4713 }
 0xa90   : > { %v3589_v36 = vpop.xlane.xlu1 %3588  ;;  %v3563_v24 = vpop.xlane.xlu0 %3562  ;;  %v3666_v33 = vmul.f32 %v4714_v40, %v6729_v43 }
 0xa91   : > { %4727 = vrcp.f32 %v3563_v24  ;;  %v3678_v31 = vpack.c.bf16 %v3653_v44, %v3652_v61 }
 0xa92   : > { %v4716_v48 = vpop.eup %4715  ;;  %4729 = vrcp.f32 %v3589_v36 }
 0xa93   : > { %4185 = vmatpush3.bf16.xpose.msra.mxu0 %v3678_v31  ;;  %v3667_v19 = vmul.f32 %v4716_v48, %v6739_v11  ;;  %v4718_v4 = vpop.eup %4717 }
 0xa94   : > { %v3557_v21 = vpop.xlane.xlu1 %3556  ;;  %v3591_v49 = vpop.xlane.xlu0 %3590  ;;  %v3650_v38 = vmul.f32 %v4718_v4, %v6737_v22 }
 0xa95   : > { %4731 = vrcp.f32 %v3591_v49  ;;  %v3685_v30 = vpack.c.bf16 %v3667_v19, %v3666_v33 }
 0xa96   : > { %v4720_v17 = vpop.eup %4719  ;;  %4733 = vrcp.f32 %v3557_v21 }
 0xa97   : > { %4186 = vmatprep.subr.bf16.mxu0 %v3685_v30  ;;  %v3651_v47 = vmul.f32 %v4720_v17, %v6747_v2  ;;  %v4722_v7 = vpop.eup %4721 }
 0xa98   : > { %v3585_v35 = vpop.xlane.xlu1 %3584  ;;  %v3559_v27 = vpop.xlane.xlu0 %3558  ;;  %v3664_v45 = vmul.f32 %v4722_v7, %v6745_v3 }
 0xa99   : > { %4735 = vrcp.f32 %v3559_v27  ;;  %v3677_v12 = vpack.c.bf16 %v3651_v47, %v3650_v38 }
 0xa9a   : > { %v4724_v58 = vpop.eup %4723  ;;  %4737 = vrcp.f32 %v3585_v35 }
 0xa9b   : > { %4187 = vmatpush3.bf16.xpose.msra.mxu0 %v3677_v12  ;;  %v3665_v29 = vmul.f32 %v4724_v58, %v6755_v52  ;;  %v4726_v8 = vpop.eup %4725 }
 0xa9c   : > { %v3553_v43 = vpop.xlane.xlu1 %3552  ;;  %v3587_v11 = vpop.xlane.xlu0 %3586  ;;  %v3648_v55 = vmul.f32 %v4726_v8, %v6753_v53 }
 0xa9d   : > { %4739 = vrcp.f32 %v3587_v11  ;;  %v3684_v59 = vpack.c.bf16 %v3665_v29, %v3664_v45 }
 0xa9e   : > { %v4728_v62 = vpop.eup %4727  ;;  %4741 = vrcp.f32 %v3553_v43 }
 0xa9f   : > { %4188 = vmatprep.subr.bf16.mxu0 %v3684_v59  ;;  %v3649_v15 = vmul.f32 %v4728_v62, %v6763_v0  ;;  %v4730_v9 = vpop.eup %4729 }
 0xaa0   : > { %v3581_v22 = vpop.xlane.xlu1 %3580  ;;  %v3555_v2 = vpop.xlane.xlu0 %3554  ;;  %v3662_v61 = vmul.f32 %v4730_v9, %v6761_v13 }
 0xaa1   : > { %4743 = vrcp.f32 %v3555_v2  ;;  %v3676_v36 = vpack.c.bf16 %v3649_v15, %v3648_v55 }
 0xaa2   : > { %v4732_v24 = vpop.eup %4731  ;;  %4745 = vrcp.f32 %v3581_v22 }
 0xaa3   : > { %4189 = vmatpush3.bf16.xpose.msra.mxu0 %v3676_v36  ;;  %v3663_v44 = vmul.f32 %v4732_v24, %v6771_v6  ;;  %v4734_v40 = vpop.eup %4733 }
 0xaa4   : > { %v3549_v3 = vpop.xlane.xlu1 %3548  ;;  %v3583_v52 = vpop.xlane.xlu0 %3582  ;;  %v3646_v21 = vmul.f32 %v4734_v40, %v6769_v5 }
 0xaa5   : > { %4747 = vrcp.f32 %v3583_v52  ;;  %v3683_v31 = vpack.c.bf16 %v3663_v44, %v3662_v61 }
 0xaa6   : > { %v4736_v48 = vpop.eup %4735  ;;  %4749 = vrcp.f32 %v3549_v3 }
 0xaa7   : > { %4190 = vmatprep.subr.bf16.mxu0 %v3683_v31  ;;  %v3647_v49 = vmul.f32 %v4736_v48, %v6779_v34  ;;  %v4738_v33 = vpop.eup %4737 }
 0xaa8   : > { %v3577_v53 = vpop.xlane.xlu1 %3576  ;;  %v3551_v0 = vpop.xlane.xlu0 %3550  ;;  %v3660_v30 = vmul.f32 %v4738_v33, %v6777_v10 }
 0xaa9   : > { %4751 = vrcp.f32 %v3551_v0  ;;  %v3675_v19 = vpack.c.bf16 %v3647_v49, %v3646_v21 }
 0xaaa   : > { %v4740_v4 = vpop.eup %4739  ;;  %4753 = vrcp.f32 %v3577_v53 }
 0xaab   : > { %4191 = vmatpush3.bf16.xpose.msra.mxu0 %v3675_v19  ;;  %v3661_v17 = vmul.f32 %v4740_v4, %v6787_v60  ;;  %v4742_v35 = vpop.eup %4741 }
 0xaac   : > { %v3545_v13 = vpop.xlane.xlu1 %3544  ;;  %v3579_v6 = vpop.xlane.xlu0 %3578  ;;  %v3644_v34 = vmul.f32 %v4742_v35, %v6785_v1 }
 0xaad   : > { %4755 = vrcp.f32 %v3579_v6  ;;  %v3682_v27 = vpack.c.bf16 %v3661_v17, %v3660_v30 }
 0xaae   : > { %v4744_v38 = vpop.eup %4743  ;;  %4757 = vrcp.f32 %v3545_v13 }
 0xaaf   : > { %4192 = vmatprep.subr.bf16.mxu0 %v3682_v27  ;;  %v3645_v47 = vmul.f32 %v4744_v38, %v6794_v18  ;;  %v4746_v7 = vpop.eup %4745 }
 0xab0   : > { %v3547_v5 = vpop.xlane.xlu0 %3546  ;;  %v3658_v10 = vmul.f32 %v4746_v7, %v6792_v23  ;;  %v3843_v48 = vpop.permute.xlu1 %3842 }
 0xab1   : > { %4759 = vrcp.f32 %v3547_v5  ;;  %v3674_v12 = vpack.c.bf16 %v3645_v47, %v3644_v34 }
 0xab2   : > { %v4748_v58 = vpop.eup %4747 }
 0xab3   : > { %4193 = vmatpush3.bf16.xpose.msra.mxu0 %v3674_v12  ;;  %v3659_v60 = vmul.f32 %v4748_v58, %v6800_v57  ;;  %v4750_v43 = vpop.eup %4749 }
 0xab4   : > { %v3642_v29 = vmul.f32 %v4750_v43, %v6798_v56  ;;  %v3833_v49 = vpop.permute.xlu1 %3832 }
 0xab5   : > { %v3681_v11 = vpack.c.bf16 %v3659_v60, %v3658_v10 }
 0xab6   : > { %v4752_v45 = vpop.eup %4751 }
 0xab7   : > { %4194 = vmatprep.subr.bf16.mxu0 %v3681_v11  ;;  %v3643_v8 = vmul.f32 %v4752_v45, %v6806_v37  ;;  %v4754_v1 = vpop.eup %4753 }
 0xab8   : > { %v3656_v22 = vmul.f32 %v4754_v1, %v6804_v41  ;;  %v3848_v35 = vpop.permute.xlu0 %3847  ;;  %v3838_v38 = vpop.permute.xlu1 %3837 }
 0xab9   : > { %v3673_v59 = vpack.c.bf16 %v3643_v8, %v3642_v29 }
 0xaba   : > { %v4756_v18 = vpop.eup %4755 }
 0xabb   : > { %v4758_v62 = vpop.eup %4757  ;;  %4195 = vmatpush3.bf16.xpose.msra.mxu0 %v3673_v59  ;;  %v3657_v2 = vmul.f32 %v4756_v18, %v6812_v20 }
 0xabc   : > { %v3640_v57 = vmul.f32 %v4758_v62, %v6810_v28  ;;  %v3867_v43 = vpop.permute.xlu0 %3866 }
 0xabd   : > { %v3680_v55 = vpack.c.bf16 %v3657_v2, %v3656_v22 }
 0xabe   : > { %v4760_v23 = vpop.eup %4759 }
 0xabf   : > { %v3641_v15 = vmul.f32 %v4760_v23, %v6816_v46  ;;  %4196 = vmatprep.subr.bf16.mxu0 %v3680_v55 }
 0xac1   : > { %v3672_v9 = vpack.c.bf16 %v3641_v15, %v3640_v57 }
 0xac3   : > { %4197 = vmatpush3.bf16.xpose.msra.mxu0 %v3672_v9 }
 0xaca   : > { %4199 = vmatmul.mubr.bf16.vlgmr.msra.gmra.mxu0 %v6836_v16  ;;  %v4311_v16 = vld [vmem:[%s6916_s13] sm:$0xff]  }
 0xacb   : > { %4200 = vmatprep.mubr.bf16.mxu0 %v6834_v42 }
 0xad2   : > { %4201 = vmatmul.mubr.bf16.gmra.mxu0 %v6834_v42  ;;  %v4312_v42 = vld [vmem:[%s6916_s13 + $0x8] sm:$0xff]  }
 0xb8a   : > { %v3722_v56 = vpop.f32.mrf.mxu0 }
 0xb8c   : > { %v3724_v37 = vpop.f32.mrf.mxu0 }
 0xb8e   : > { %v3726_v41 = vpop.f32.mrf.mxu0 }
 0xb8f   : > { %v3745_v44 = vpack.c.bf16 %v3726_v41, %v3722_v56 }
 0xb90   : > { %v3728_v36 = vpop.f32.mrf.mxu0 }
 0xb91   : > { %v3746_v46 = vpack.c.bf16 %v3728_v36, %v3724_v37 }
 0xb92   : > { %v3732_v20 = vpop.f32.mrf.mxu0 }
 0xb94   : > { %v3734_v24 = vpop.f32.mrf.mxu0 }
 0xb96   : > { %v3736_v3 = vpop.f32.mrf.mxu0 }
 0xb97   : > { %v3747_v61 = vpack.c.bf16 %v3736_v3, %v3732_v20 }
 0xb98   : > { %v3738_v52 = vpop.f32.mrf.mxu0 }
 0xb99   : > { %v3748_v28 = vpack.c.bf16 %v3738_v52, %v3734_v24 }
 0xb9b   : > { %3777 = vmatprep.subr.bf16.mxu1 %v3748_v28 }
 0xb9c   : > { %3778 = vmatpush1.bf16.msra.mxu1 %v3747_v61 }
 0xb9d   : > { %3779 = vmatprep.subr.bf16.mxu1 %v3746_v46 }
 0xba0   : > { %3780 = vmatpush1.bf16.msra.mxu1 %v3745_v44 }
 0xba3   : > { %4141 = vmatmul.mubr.msk.bf16.vlgmr.msra.gmra.mxu1 %vm763_vm2, %v4311_v16 }
 0xba4   : > { %3807 = vmatprep.mubr.bf16.mxu1 %v7503_v26 }
 0xbab   : > { %4142 = vmatmul.mubr.msk.bf16.gmra.mxu1 %vm763_vm2, %v4312_v42 }
 0xbac   : > { %3904 = vmatprep.mubr.bf16.mxu1 %v7503_v26 }
 0xc63   : > { %v3799_v40 = vpop.f32.mrf.mxu1 }
 0xc65   : > { %v3801_v31 = vpop.f32.mrf.mxu1 }
 0xc66   : > { %v3819_v26 = vadd.f32 %v3801_v31, %v6418_v63 }
 0xc67   : > { %v3803_v53 = vpop.f32.mrf.mxu1 }
 0xc68   : > { %v3820_v5 = vadd.f32 %v3803_v53, %v6422_v25  ;;  %v3851_v58 = vadd.f32 %v3833_v49, %v3819_v26  ;;  %v3858_v25 = vld [vmem:[%s6918_s15] sm:$0x3] }
 0xc69   : > { %v3805_v0 = vpop.f32.mrf.mxu1 }
 0xc6a   : > { %v3821_v4 = vadd.f32 %v3805_v0, %v6409_v32  ;;  %v3818_v32 = vadd.f32 %v3799_v40, %v6428_v14  ;;  %v3852_v10 = vadd.f32 %v3838_v38, %v3820_v5 }
 0xc6b   : > { %v3809_v21 = vpop.f32.mrf.mxu1 }
 0xc6c   : > { %v3822_v30 = vadd.f32 %v3809_v21, %v6416_v51  ;;  %v3853_v47 = vadd.f32 %v3838_v38, %v3821_v4  ;;  %v3850_v63 = vadd.f32 %v3833_v49, %v3818_v32 }
 0xc6d   : > { %v3811_v33 = vpop.f32.mrf.mxu1 }
 0xc6e   : > { %v3823_v13 = vadd.f32 %v3811_v33, %v6411_v54  ;;  %v3854_v54 = vadd.f32 %v3843_v48, %v3822_v30  ;;  %v3860_v60 = vpack.c.bf16 %v3853_v47, %v3851_v58 }
 0xc6f   : > { %v3813_v19 = vpop.f32.mrf.mxu1 }
 0xc70   : > { %v3824_v6 = vadd.f32 %v3813_v19, %v6407_v39  ;;  %v3855_v7 = vadd.f32 %v3843_v48, %v3823_v13 }
 0xc71   : > { %v3815_v17 = vpop.f32.mrf.mxu1 }
 0xc72   : > { %v3825_v27 = vadd.f32 %v3815_v17, %v6413_v50  ;;  %v3856_v34 = vadd.f32 %v3848_v35, %v3824_v6  ;;  %v3859_v50 = vpack.c.bf16 %v3852_v10, %v3850_v63 }
 0xc74   : > { %v3857_v12 = vadd.f32 %v3848_v35, %v3825_v27  ;;  %v3861_v51 = vpack.c.bf16 %v3856_v34, %v3854_v54 }
 0xc76   : > { %v3862_v39 = vpack.c.bf16 %v3857_v12, %v3855_v7 }
 0xc78   : > { %3884 = vmatprep.subr.bf16.mxu1 %v3862_v39 }
 0xc79   : > { %3885 = vmatpush1.bf16.msra.mxu1 %v3861_v51 }
 0xc7a   : > { %3886 = vmatprep.subr.bf16.mxu1 %v3860_v60 }
 0xc7d   : > { %3887 = vmatpush1.bf16.msra.mxu1 %v3859_v50 }
 0xc80   : > { %4143 = vmatmul.mubr.msk.bf16.vlgmr.msra.gmra.mxu1 %vm763_vm2, %v3858_v25 }
 0xd40   : > { %v3906_v14 = vpop.f32.mrf.mxu1 }
 0xd41   : > { %v3907_v45 = vadd.f32 %v3906_v14, %v3867_v43 }
 0xd42   : > { %v3908_v11 = vpop.f32.mrf.mxu1 }
 0xd43   : > { %v3909_v29 = vadd.f32 %v3908_v11, %v3867_v43 }
 0xd44   : > { %v3910_v8 = vpop.f32.mrf.mxu1 }
 0xd45   : > { %v3915_v1 = vcombine.low %v3907_v45, %v3909_v29 }
 0xd46   : > { %v3911_v59 = vpop.f32.mrf.mxu1 }
 0xd47   : > { %3917 = vst [vmem:[%s608_s22] sm:$0xff] %v3915_v1 }
 0xd48 PF: > { %s7513_s30 = sld [smem:[#allocation5_spill]] }
 0xd4e   : > { %s33_s29 = sadd.s32 1, %s7513_s30  }
 0xd4f   : > { %p30_p9 = scmp.ge.s32.totalorder %s33_s29, 4  }
 0xd51   :  { %32 = sbr.rel (!%p30_p9) target bundleno = 25 (0x19), region = 126 }

</bundles_post_ra>
